<compile_context>
chip_gen: v7x
topology: tpu7x:2x2x1
jax: 0.10.0
libtpu: 0.0.40
codegen_flags: <defaults>
</compile_context>

<pallas_src>
import math
from functools import partial

import jax
import jax.numpy as jnp
from jax.experimental import pallas as pl
from jax.experimental.pallas import tpu as pltpu

LANE = 128
BN_EPS = 1e-5


def _round_up(x, m):
    return (x + m - 1) // m * m


def _pad_vec(v, n):
    return jnp.pad(v, (0, n - v.shape[0]))


def _pick_row_tile(m, cap=256):
    """Row tile: multiple of 16, <= cap, and (when possible) >= 2 grid programs
    so both TensorCores of a v7x megacore get work even on small early layers."""
    half = _round_up(max(1, (m + 1) // 2), 16)
    return max(16, min(cap, half))


# ------------------------------ Pallas kernels --------------------------------

def _mm_bias_kernel(a_ref, w_ref, b_ref, o_ref, acc_ref):
    """Grouped matmul + bias.  grid = (G, Mt, Nt, Kt); K is the reduction axis."""
    k = pl.program_id(3)

    @pl.when(k == 0)
    def _():
        acc_ref[...] = jnp.zeros_like(acc_ref)

    acc_ref[...] += jnp.dot(a_ref[0], w_ref[0],
                            preferred_element_type=jnp.float32)

    @pl.when(k == pl.num_programs(3) - 1)
    def _():
        o_ref[0] = (acc_ref[...] + b_ref[0]).astype(o_ref.dtype)


def _mm_stats_kernel(a_ref, w_ref, o_ref, sum_ref, ssq_ref, acc_ref):
    """Matmul (no bias) with a fused per-tile BatchNorm statistics epilogue."""
    k = pl.program_id(2)

    @pl.when(k == 0)
    def _():
        acc_ref[...] = jnp.zeros_like(acc_ref)

    acc_ref[...] += jnp.dot(a_ref[...], w_ref[...],
                            preferred_element_type=jnp.float32)

    @pl.when(k == pl.num_programs(2) - 1)
    def _():
        y = acc_ref[...]
        o_ref[...] = y.astype(o_ref.dtype)
        s = jnp.sum(y, axis=0, keepdims=True)
        q = jnp.sum(y * y, axis=0, keepdims=True)
        sum_ref[...] = jnp.broadcast_to(s, sum_ref.shape)
        ssq_ref[...] = jnp.broadcast_to(q, ssq_ref.shape)


def _affine_kernel(x_ref, s_ref, t_ref, o_ref, *, relu6):
    y = x_ref[...] * s_ref[...] + t_ref[...]
    if relu6:
        y = jnp.clip(y, 0.0, 6.0)
    o_ref[...] = y


def _affine_add_kernel(x_ref, s_ref, t_ref, r_ref, o_ref, *, relu6):
    y = x_ref[...] * s_ref[...] + t_ref[...] + r_ref[...]
    if relu6:
        y = jnp.clip(y, 0.0, 6.0)
    o_ref[...] = y


def _proj_kernel(x_ref, w_ref, b_ref, o_ref):
    o_ref[...] = jnp.sum(x_ref[...] * w_ref[...], axis=1, keepdims=True) + b_ref[...]


# ------------------------------- kernel wrappers -------------------------------

def matmul_bias_grouped(a, w, b):
    """a:(G,M,K) bf16 @ w:(G,K,N) bf16 + b:(G,1,N) f32 -> (G,M,N) f32."""
    G, M, K = a.shape
    N = w.shape[-1]
    tm = _pick_row_tile(M)
    tn = N if N <= 512 else 256
    tk = K if K <= 2048 else 512
    Mp, Kp, Np = _round_up(M, tm), _round_up(K, tk), _round_up(N, tn)
    a = jnp.pad(a, ((0, 0), (0, Mp - M), (0, Kp - K)))
    w = jnp.pad(w, ((0, 0), (0, Kp - K), (0, Np - N)))
    b = jnp.pad(b, ((0, 0), (0, 0), (0, Np - N)))
    out = pl.pallas_call(
        _mm_bias_kernel,
        out_shape=jax.ShapeDtypeStruct((G, Mp, Np), jnp.float32),
        grid=(G, Mp // tm, Np // tn, Kp // tk),
        in_specs=[
            pl.BlockSpec((1, tm, tk), lambda g, i, j, k: (g, i, k)),
            pl.BlockSpec((1, tk, tn), lambda g, i, j, k: (g, k, j)),
            pl.BlockSpec((1, 1, tn), lambda g, i, j, k: (g, 0, j)),
        ],
        out_specs=pl.BlockSpec((1, tm, tn), lambda g, i, j, k: (g, i, j)),
        scratch_shapes=[pltpu.VMEM((tm, tn), jnp.float32)],
        compiler_params=pltpu.CompilerParams(
            dimension_semantics=("parallel", "parallel", "parallel", "arbitrary"),
            vmem_limit_bytes=32 * 1024 * 1024),
    )(a, w, b)
    return out[:, :M, :N]


def matmul_stats(a, w):
    """a:(M,K) bf16 @ w:(K,N) bf16 -> (y:(M,N) f32, sum:(N,) f32, sumsq:(N,) f32).

    Per-channel sum / sum-of-squares needed by training-mode BatchNorm are
    produced as a fused epilogue of the conv matmul (no extra activation read)."""
    M, K = a.shape
    N = w.shape[-1]
    tm = _pick_row_tile(M)
    tn = N if N <= 512 else 256
    tk = K if K <= 2048 else 512
    Mp, Kp, Np = _round_up(M, tm), _round_up(K, tk), _round_up(N, tn)
    a = jnp.pad(a, ((0, Mp - M), (0, Kp - K)))
    w = jnp.pad(w, ((0, Kp - K), (0, Np - N)))
    mt = Mp // tm
    y, psum, pssq = pl.pallas_call(
        _mm_stats_kernel,
        out_shape=(jax.ShapeDtypeStruct((Mp, Np), jnp.float32),
                   jax.ShapeDtypeStruct((8 * mt, Np), jnp.float32),
                   jax.ShapeDtypeStruct((8 * mt, Np), jnp.float32)),
        grid=(mt, Np // tn, Kp // tk),
        in_specs=[
            pl.BlockSpec((tm, tk), lambda i, j, k: (i, k)),
            pl.BlockSpec((tk, tn), lambda i, j, k: (k, j)),
        ],
        out_specs=(pl.BlockSpec((tm, tn), lambda i, j, k: (i, j)),
                   pl.BlockSpec((8, tn), lambda i, j, k: (i, j)),
                   pl.BlockSpec((8, tn), lambda i, j, k: (i, j))),
        scratch_shapes=[pltpu.VMEM((tm, tn), jnp.float32)],
        compiler_params=pltpu.CompilerParams(
            dimension_semantics=("parallel", "parallel", "arbitrary"),
            vmem_limit_bytes=32 * 1024 * 1024),
    )(a, w)
    s = jnp.sum(psum[0::8], axis=0)[:N]
    q = jnp.sum(pssq[0::8], axis=0)[:N]
    return y[:M, :N], s, q


def bn_affine_apply(x, scale, shift, relu6=False, skip=None):
    """y = clip(x*scale + shift[, 0, 6]) (+ skip), tiled over large row blocks."""
    M, C = x.shape
    tr = _pick_row_tile(M, cap=512)
    Mp = _round_up(M, tr)
    args = [jnp.pad(x, ((0, Mp - M), (0, 0))),
            scale.reshape(1, C), shift.reshape(1, C)]
    in_specs = [
        pl.BlockSpec((tr, C), lambda i: (i, 0)),
        pl.BlockSpec((1, C), lambda i: (0, 0)),
        pl.BlockSpec((1, C), lambda i: (0, 0)),
    ]
    if skip is not None:
        args.append(jnp.pad(skip, ((0, Mp - M), (0, 0))))
        in_specs.append(pl.BlockSpec((tr, C), lambda i: (i, 0)))
        kern = partial(_affine_add_kernel, relu6=relu6)
    else:
        kern = partial(_affine_kernel, relu6=relu6)
    out = pl.pallas_call(
        kern,
        out_shape=jax.ShapeDtypeStruct((Mp, C), jnp.float32),
        grid=(Mp // tr,),
        in_specs=in_specs,
        out_specs=pl.BlockSpec((tr, C), lambda i: (i, 0)),
        compiler_params=pltpu.CompilerParams(dimension_semantics=("parallel",)),
    )(*args)
    return out[:M]


def proj_1x1(x, w_vec, bias):
    """1x1 conv to a single output channel: (M,Cp) f32 -> (M,1) f32.
    Output block last dim == full array dim (1), so only M*4 bytes are stored."""
    M, C = x.shape
    tr = _pick_row_tile(M, cap=512)
    Mp = _round_up(M, tr)
    out = pl.pallas_call(
        _proj_kernel,
        out_shape=jax.ShapeDtypeStruct((Mp, 1), jnp.float32),
        grid=(Mp // tr,),
        in_specs=[
            pl.BlockSpec((tr, C), lambda i: (i, 0)),
            pl.BlockSpec((1, C), lambda i: (0, 0)),
            pl.BlockSpec((1, 1), lambda i: (0, 0)),
        ],
        out_specs=pl.BlockSpec((tr, 1), lambda i: (i, 0)),
        compiler_params=pltpu.CompilerParams(dimension_semantics=("parallel",)),
    )(jnp.pad(x, ((0, Mp - M), (0, 0))),
      w_vec.reshape(1, C).astype(jnp.float32),
      jnp.reshape(bias, (1, 1)).astype(jnp.float32))
    return out[:M]


# --------------------------------- conv glue -----------------------------------

def _im2col_3x3(x_nhwc):
    """3x3 / stride 1 / pad 1 patches (bf16) of a channel-padded NHWC tensor.
    TODO(synk): replace with an in-kernel tap-reduction to avoid the 9x patch
    materialisation in HBM."""
    N, H, W, C = x_nhwc.shape
    xp = jnp.pad(x_nhwc.astype(jnp.bfloat16), ((0, 0), (1, 1), (1, 1), (0, 0)))
    cols = [xp[:, i:i + H, j:j + W, :] for i in range(3) for j in range(3)]
    return jnp.concatenate(cols, axis=-1).reshape(N * H * W, 9 * C)


# ConvTranspose2d(k=4, s=2, p=1): output phase (a, b) in {0,1}^2 only touches a
# 2x2 subset of the 4x4 taps:
#   y[2m+a, 2n+b] = sum_{ti,tj} x[m+D[a][ti], n+D[b][tj]] * W[:, :, J[a][ti], J[b][tj]]
_PH_D = {0: (-1, 0), 1: (0, 1)}      # input offsets per phase
_PH_J = {0: (3, 1), 1: (2, 0)}       # matching kernel-tap indices per phase


def upconv_phase_weights(w_iohw, cin_p, cout_p):
    """(Cin,Cout,4,4) ConvTranspose2d weight -> (4, 4*cin_p, cout_p) bf16."""
    cin, cout = w_iohw.shape[0], w_iohw.shape[1]
    wp = jnp.zeros((cin_p, cout_p, 4, 4), jnp.float32).at[:cin, :cout].set(w_iohw)
    mats = []
    for a in (0, 1):
        for b in (0, 1):
            taps = [wp[:, :, th, tw] for th in _PH_J[a] for tw in _PH_J[b]]
            mats.append(jnp.stack(taps, axis=0).reshape(4 * cin_p, cout_p))
    return jnp.stack(mats, axis=0).astype(jnp.bfloat16)


def conv3x3_weight_mat(w_oihw, cin_p, cout_p):
    """(Cout,Cin,3,3) Conv2d weight -> (9*cin_p, cout_p) bf16 (patch order i,j,cin)."""
    cout, cin = w_oihw.shape[0], w_oihw.shape[1]
    wp = jnp.zeros((cout_p, cin_p, 3, 3), jnp.float32).at[:cout, :cin].set(w_oihw)
    return jnp.transpose(wp, (2, 3, 1, 0)).reshape(9 * cin_p, cout_p).astype(jnp.bfloat16)


def upconv4x4_s2(x_nhwc, w_phases, bias):
    """ConvTranspose2d(cin, cin, 4, stride=2, padding=1, bias=True) via 4
    sub-pixel phase convolutions evaluated in a single grouped pallas matmul."""
    N, H, W, C = x_nhwc.shape
    cout = w_phases.shape[-1]
    xp = jnp.pad(x_nhwc.astype(jnp.bfloat16), ((0, 0), (1, 1), (1, 1), (0, 0)))
    a_list = []
    for a in (0, 1):
        for b in (0, 1):
            cols = [xp[:, 1 + di:1 + di + H, 1 + dj:1 + dj + W, :]
                    for di in _PH_D[a] for dj in _PH_D[b]]
            a_list.append(jnp.concatenate(cols, axis=-1).reshape(N * H * W, 4 * C))
    a_all = jnp.stack(a_list, axis=0)                                   # (4, M, 4C)
    b_all = jnp.broadcast_to(bias.reshape(1, 1, cout), (4, 1, cout))
    y = matmul_bias_grouped(a_all, w_phases, b_all)                     # (4, M, C)
    y = y.reshape(2, 2, N, H, W, cout)
    y = jnp.transpose(y, (2, 3, 0, 4, 1, 5)).reshape(N, 2 * H, 2 * W, cout)
    return y


def bn_scale_shift(s, q, count, gamma, beta, eps=BN_EPS):
    """Training-mode (batch-statistics) BatchNorm folded to y = x*scale + shift.
    TODO(synk): eval-mode running stats and cross-device SyncBatchNorm reduction
    are not implemented (single-device batch statistics only)."""
    mean = s / count
    var = jnp.maximum(q / count - mean * mean, 0.0)   # clamp guards f32 cancellation
    scale = gamma * jax.lax.rsqrt(var + eps)
    return scale, beta - mean * scale


# ----------------------------- LightDecoder forward -----------------------------

def unet_block(x_nhwc, p):
    """Returns the block's pre-BN2 conv2 output (rows, CpOut) plus the bn2
    scale/shift, which the caller fuses into the next stage (or the 1x1 proj)."""
    N, H, W, C = x_nhwc.shape
    x = upconv4x4_s2(x_nhwc, p["up_w"], p["up_b"])            # (N, 2H, 2W, C)
    N2, H2, W2 = N, 2 * H, 2 * W
    M2 = N2 * H2 * W2
    y1, s1, q1 = matmul_stats(_im2col_3x3(x), p["c1_w"])      # conv1 + BN stats
    sc1, sh1 = bn_scale_shift(s1, q1, float(M2), p["bn1_g"], p["bn1_b"])
    h1 = bn_affine_apply(y1, sc1, sh1, relu6=True)            # BN1 + ReLU6
    cout = p["c2_w"].shape[1]
    y2, s2, q2 = matmul_stats(_im2col_3x3(h1.reshape(N2, H2, W2, C)),
                              p["c2_w"])                      # conv2 + BN stats
    sc2, sh2 = bn_scale_shift(s2, q2, float(M2), p["bn2_g"], p["bn2_b"])
    return y2, sc2, sh2, (N2, H2, W2, cout)


def light_decoder_forward(to_dec_nchw, block_params, proj_w_vec, proj_b, cps):
    """to_dec_nchw: list of NCHW tensors (or None), coarsest scale first."""
    x = None          # current block input, NHWC channel-padded
    pending = None    # previous block's (pre-BN2 output, scale, shift, shape)
    for i, p in enumerate(block_params):
        skip = None
        if i < len(to_dec_nchw) and to_dec_nchw[i] is not None:
            t = jnp.transpose(to_dec_nchw[i], (0, 2, 3, 1))   # NCHW -> NHWC
            skip = jnp.pad(t, ((0, 0), (0, 0), (0, 0), (0, cps[i] - t.shape[-1])))
        if pending is None:
            x = skip                                          # x = 0 + to_dec[0]
        else:
            y2, sc2, sh2, (N2, H2, W2, cp) = pending
            sk = skip.reshape(N2 * H2 * W2, cp) if skip is not None else None
            # previous block's BN2 apply fused with the residual skip-add
            x = bn_affine_apply(y2, sc2, sh2, relu6=False, skip=sk)
            x = x.reshape(N2, H2, W2, cp)
        pending = unet_block(x, p)
    # fold the last BN2 (a per-channel affine) into the 1x1 projection
    y2, sc2, sh2, (N2, H2, W2, cp) = pending
    w_eff = sc2 * proj_w_vec
    b_eff = proj_b + jnp.sum(sh2 * proj_w_vec)
    out = proj_1x1(y2, w_eff, b_eff).reshape(N2, H2, W2, 1)
    return jnp.transpose(out, (0, 3, 1, 2))                   # NHWC -> NCHW


# ------------------------------------- main -------------------------------------

if __name__ == "__main__":
    B = 2
    width = 32                     # small stand-in for 768
    up_sample_ratio = 4
    n = round(math.log2(up_sample_ratio))
    channels = [width // (2 ** i) for i in range(n + 1)]       # [32, 16, 8]
    cps = tuple(_round_up(c, LANE) for c in channels)          # lane-padded widths
    H0 = 4                                                     # coarsest spatial size

    keys = iter(jax.random.split(jax.random.PRNGKey(0), 64))

    def tn(k, shape, std=0.02):                                # trunc_normal_(std=.02)
        return std * jax.random.truncated_normal(k, -2.0, 2.0, shape, jnp.float32)

    block_params = []
    for i, (cin, cout) in enumerate(zip(channels[:-1], channels[1:])):
        cpi, cpo = cps[i], cps[i + 1]
        block_params.append(dict(
            up_w=upconv_phase_weights(tn(next(keys), (cin, cin, 4, 4)), cpi, cpi),
            up_b=_pad_vec(jnp.zeros((cin,), jnp.float32), cpi),
            c1_w=conv3x3_weight_mat(tn(next(keys), (cin, cin, 3, 3)), cpi, cpi),
            bn1_g=_pad_vec(jnp.ones((cin,), jnp.float32), cpi),
            bn1_b=_pad_vec(jnp.zeros((cin,), jnp.float32), cpi),
            c2_w=conv3x3_weight_mat(tn(next(keys), (cout, cin, 3, 3)), cpi, cpo),
            bn2_g=_pad_vec(jnp.ones((cout,), jnp.float32), cpo),
            bn2_b=_pad_vec(jnp.zeros((cout,), jnp.float32), cpo),
        ))
    proj_w_vec = _pad_vec(tn(next(keys), (1, channels[-1], 1, 1)).reshape(-1), cps[-1])
    proj_b = jnp.zeros((), jnp.float32)

    # to_dec feature pyramid (NCHW, as the PyTorch module expects)
    to_dec = []
    h = H0
    for c in channels[:-1]:
        to_dec.append(jax.random.normal(next(keys), (B, c, h, h), jnp.float32))
        h *= 2

    @jax.jit
    def fwd(td, params, pw, pb):
        return light_decoder_forward(td, params, pw, pb, cps)

    out = fwd(to_dec, block_params, proj_w_vec, proj_b)
    jax.block_until_ready(out)
    assert out.shape == (B, 1, H0 * up_sample_ratio, H0 * up_sample_ratio), out.shape
    print("KERNEL_OK")
</pallas_src>

<mosaic_0001>
module attributes {stable_mosaic.version = 11 : i64} {
  func.func @_mm_bias_kernel(%arg0: i32, %arg1: i32, %arg2: i32, %arg3: i32, %arg4: memref<1x16x512xbf16, #tpu.memory_space<vmem>>, %arg5: memref<1x512x128xbf16, #tpu.memory_space<vmem>>, %arg6: memref<1x1x128xf32, #tpu.memory_space<vmem>>, %arg7: memref<1x16x128xf32, #tpu.memory_space<vmem>>, %arg8: memref<16x128xf32, #tpu.memory_space<vmem>>) attributes {dimension_semantics = [#tpu.dimension_semantics<parallel>, #tpu.dimension_semantics<parallel>, #tpu.dimension_semantics<parallel>, #tpu.dimension_semantics<arbitrary>], iteration_bounds = array<i64: 4, 2, 1, 1>, scalar_prefetch = 0 : i64, scratch_operands = 1 : i64, tpu.core_type = #tpu.core_type<tc>, window_params = [{transform_indices = @transform_0, window_bounds = array<i64: 1, 16, 512>}, {transform_indices = @transform_1, window_bounds = array<i64: 1, 512, 128>}, {transform_indices = @transform_2, window_bounds = array<i64: 1, 1, 128>}, {transform_indices = @transform_3, window_bounds = array<i64: 1, 16, 128>}]} {
    %c0_i32 = arith.constant 0 : i32
    %0 = arith.cmpi eq, %arg3, %c0_i32 : i32
    %1 = arith.extui %0 : i1 to i32
    %c0_i32_0 = arith.constant 0 : i32
    %2 = arith.cmpi ne, %1, %c0_i32_0 : i32
    scf.if %2 {
      %cst_12 = arith.constant 0.000000e+00 : f32
      %14 = vector.broadcast %cst_12 : f32 to vector<16x128xf32>
      %c0_13 = arith.constant 0 : index
      %c0_14 = arith.constant 0 : index
      %15 = vector.load %arg8[%c0_13, %c0_14] : memref<16x128xf32, #tpu.memory_space<vmem>>, vector<16x128xf32>
      tpu.vector_store %arg8[%c0_13, %c0_14], %14 {strides = array<i32>} : memref<16x128xf32, #tpu.memory_space<vmem>>, vector<16x128xf32>,
    } else {
    }
    %c0 = arith.constant 0 : index
    %c0_1 = arith.constant 0 : index
    %3 = vector.load %arg8[%c0, %c0_1] : memref<16x128xf32, #tpu.memory_space<vmem>>, vector<16x128xf32>
    %c0_2 = arith.constant 0 : index
    %c0_3 = arith.constant 0 : index
    %c0_4 = arith.constant 0 : index
    %4 = vector.load %arg4[%c0_2, %c0_3, %c0_4] : memref<1x16x512xbf16, #tpu.memory_space<vmem>>, vector<1x16x512xbf16>
    %5 = vector.shape_cast %4 : vector<1x16x512xbf16> to vector<16x512xbf16>
    %c0_5 = arith.constant 0 : index
    %c0_6 = arith.constant 0 : index
    %c0_7 = arith.constant 0 : index
    %6 = vector.load %arg5[%c0_5, %c0_6, %c0_7] : memref<1x512x128xbf16, #tpu.memory_space<vmem>>, vector<1x512x128xbf16>
    %7 = vector.shape_cast %6 : vector<1x512x128xbf16> to vector<512x128xbf16>
    %cst = arith.constant dense<0.000000e+00> : vector<16x128xf32>
    %8 = tpu.matmul %5, %7, %cst {dimension_numbers = #tpu.dot_dimension_numbers<[1], [0], [0], [1], [0, 0, 1, 1], [], []>} : vector<16x512xbf16>, vector<512x128xbf16>, vector<16x128xf32> -> vector<16x128xf32>
    %9 = arith.addf %3, %8 : vector<16x128xf32>
    %c0_8 = arith.constant 0 : index
    %c0_9 = arith.constant 0 : index
    %10 = vector.load %arg8[%c0_8, %c0_9] : memref<16x128xf32, #tpu.memory_space<vmem>>, vector<16x128xf32>
    tpu.vector_store %arg8[%c0_8, %c0_9], %9 {strides = array<i32>} : memref<16x128xf32, #tpu.memory_space<vmem>>, vector<16x128xf32>,
    %c0_i32_10 = arith.constant 0 : i32
    %11 = arith.cmpi eq, %arg3, %c0_i32_10 : i32
    %12 = arith.extui %11 : i1 to i32
    %c0_i32_11 = arith.constant 0 : i32
    %13 = arith.cmpi ne, %12, %c0_i32_11 : i32
    scf.if %13 {
      %c0_12 = arith.constant 0 : index
      %c0_13 = arith.constant 0 : index
      %14 = vector.load %arg8[%c0_12, %c0_13] : memref<16x128xf32, #tpu.memory_space<vmem>>, vector<16x128xf32>
      %c0_14 = arith.constant 0 : index
      %c0_15 = arith.constant 0 : index
      %c0_16 = arith.constant 0 : index
      %15 = vector.load %arg6[%c0_14, %c0_15, %c0_16] : memref<1x1x128xf32, #tpu.memory_space<vmem>>, vector<1x1x128xf32>
      %16 = vector.shape_cast %15 : vector<1x1x128xf32> to vector<1x128xf32>
      %17 = vector.broadcast %16 : vector<1x128xf32> to vector<16x128xf32>
      %18 = arith.addf %14, %17 : vector<16x128xf32>
      %c0_17 = arith.constant 0 : index
      %c0_18 = arith.constant 0 : index
      %c0_19 = arith.constant 0 : index
      %19 = vector.load %arg7[%c0_17, %c0_18, %c0_19] : memref<1x16x128xf32, #tpu.memory_space<vmem>>, vector<1x16x128xf32>
      %20 = vector.shape_cast %19 : vector<1x16x128xf32> to vector<16x128xf32>
      %21 = vector.shape_cast %18 : vector<16x128xf32> to vector<1x16x128xf32>
      tpu.vector_store %arg7[%c0_17, %c0_18, %c0_19], %21 {strides = array<i32>} : memref<1x16x128xf32, #tpu.memory_space<vmem>>, vector<1x16x128xf32>,
    } else {
    }
    return
  }
  func.func @transform_0(%arg0: i32, %arg1: i32, %arg2: i32, %arg3: i32) -> (i32, i32, i32) {
    %c0_i32 = arith.constant 0 : i32
    return %arg0, %arg1, %arg3 : i32, i32, i32
  }
  func.func @transform_1(%arg0: i32, %arg1: i32, %arg2: i32, %arg3: i32) -> (i32, i32, i32) {
    %c0_i32 = arith.constant 0 : i32
    return %arg0, %arg3, %arg2 : i32, i32, i32
  }
  func.func @transform_2(%arg0: i32, %arg1: i32, %arg2: i32, %arg3: i32) -> (i32, i32, i32) {
    %c0_i32 = arith.constant 0 : i32
    %c0_i32_0 = arith.constant 0 : i32
    return %arg0, %c0_i32, %arg2 : i32, i32, i32
  }
  func.func @transform_3(%arg0: i32, %arg1: i32, %arg2: i32, %arg3: i32) -> (i32, i32, i32) {
    %c0_i32 = arith.constant 0 : i32
    return %arg0, %arg1, %arg2 : i32, i32, i32
  }
}

module attributes {stable_mosaic.version = 11 : i64} {
  func.func @_mm_stats_kernel(%arg0: i32, %arg1: i32, %arg2: i32, %arg3: memref<64x1152xbf16, #tpu.memory_space<vmem>>, %arg4: memref<1152x128xbf16, #tpu.memory_space<vmem>>, %arg5: memref<64x128xf32, #tpu.memory_space<vmem>>, %arg6: memref<8x128xf32, #tpu.memory_space<vmem>>, %arg7: memref<8x128xf32, #tpu.memory_space<vmem>>, %arg8: memref<64x128xf32, #tpu.memory_space<vmem>>) attributes {dimension_semantics = [#tpu.dimension_semantics<parallel>, #tpu.dimension_semantics<parallel>, #tpu.dimension_semantics<arbitrary>], iteration_bounds = array<i64: 2, 1, 1>, scalar_prefetch = 0 : i64, scratch_operands = 1 : i64, tpu.core_type = #tpu.core_type<tc>, window_params = [{transform_indices = @transform_0, window_bounds = array<i64: 64, 1152>}, {transform_indices = @transform_1, window_bounds = array<i64: 1152, 128>}, {transform_indices = @transform_2, window_bounds = array<i64: 64, 128>}, {transform_indices = @transform_3, window_bounds = array<i64: 8, 128>}, {transform_indices = @transform_4, window_bounds = array<i64: 8, 128>}]} {
    %c0_i32 = arith.constant 0 : i32
    %0 = arith.cmpi eq, %arg2, %c0_i32 : i32
    %1 = arith.extui %0 : i1 to i32
    %c0_i32_0 = arith.constant 0 : i32
    %2 = arith.cmpi ne, %1, %c0_i32_0 : i32
    scf.if %2 {
      %cst_10 = arith.constant 0.000000e+00 : f32
      %12 = vector.broadcast %cst_10 : f32 to vector<64x128xf32>
      %c0_11 = arith.constant 0 : index
      %c0_12 = arith.constant 0 : index
      %13 = vector.load %arg8[%c0_11, %c0_12] : memref<64x128xf32, #tpu.memory_space<vmem>>, vector<64x128xf32>
      tpu.vector_store %arg8[%c0_11, %c0_12], %12 {strides = array<i32>} : memref<64x128xf32, #tpu.memory_space<vmem>>, vector<64x128xf32>,
    } else {
    }
    %c0 = arith.constant 0 : index
    %c0_1 = arith.constant 0 : index
    %3 = vector.load %arg8[%c0, %c0_1] : memref<64x128xf32, #tpu.memory_space<vmem>>, vector<64x128xf32>
    %c0_2 = arith.constant 0 : index
    %c0_3 = arith.constant 0 : index
    %4 = vector.load %arg3[%c0_2, %c0_3] : memref<64x1152xbf16, #tpu.memory_space<vmem>>, vector<64x1152xbf16>
    %c0_4 = arith.constant 0 : index
    %c0_5 = arith.constant 0 : index
    %5 = vector.load %arg4[%c0_4, %c0_5] : memref<1152x128xbf16, #tpu.memory_space<vmem>>, vector<1152x128xbf16>
    %cst = arith.constant dense<0.000000e+00> : vector<64x128xf32>
    %6 = tpu.matmul %4, %5, %cst {dimension_numbers = #tpu.dot_dimension_numbers<[1], [0], [0], [1], [0, 0, 1, 1], [], []>} : vector<64x1152xbf16>, vector<1152x128xbf16>, vector<64x128xf32> -> vector<64x128xf32>
    %7 = arith.addf %3, %6 : vector<64x128xf32>
    %c0_6 = arith.constant 0 : index
    %c0_7 = arith.constant 0 : index
    %8 = vector.load %arg8[%c0_6, %c0_7] : memref<64x128xf32, #tpu.memory_space<vmem>>, vector<64x128xf32>
    tpu.vector_store %arg8[%c0_6, %c0_7], %7 {strides = array<i32>} : memref<64x128xf32, #tpu.memory_space<vmem>>, vector<64x128xf32>,
    %c0_i32_8 = arith.constant 0 : i32
    %9 = arith.cmpi eq, %arg2, %c0_i32_8 : i32
    %10 = arith.extui %9 : i1 to i32
    %c0_i32_9 = arith.constant 0 : i32
    %11 = arith.cmpi ne, %10, %c0_i32_9 : i32
    scf.if %11 {
      %c0_10 = arith.constant 0 : index
      %c0_11 = arith.constant 0 : index
      %12 = vector.load %arg8[%c0_10, %c0_11] : memref<64x128xf32, #tpu.memory_space<vmem>>, vector<64x128xf32>
      %c0_12 = arith.constant 0 : index
      %c0_13 = arith.constant 0 : index
      %13 = vector.load %arg5[%c0_12, %c0_13] : memref<64x128xf32, #tpu.memory_space<vmem>>, vector<64x128xf32>
      tpu.vector_store %arg5[%c0_12, %c0_13], %12 {strides = array<i32>} : memref<64x128xf32, #tpu.memory_space<vmem>>, vector<64x128xf32>,
      %cst_14 = arith.constant dense<0.000000e+00> : vector<128xf32>
      %14 = vector.multi_reduction <add>, %12, %cst_14 [0] : vector<64x128xf32> to vector<128xf32>
      %15 = vector.shape_cast %14 : vector<128xf32> to vector<1x128xf32>
      %16 = arith.mulf %12, %12 : vector<64x128xf32>
      %cst_15 = arith.constant dense<0.000000e+00> : vector<128xf32>
      %17 = vector.multi_reduction <add>, %16, %cst_15 [0] : vector<64x128xf32> to vector<128xf32>
      %18 = vector.shape_cast %17 : vector<128xf32> to vector<1x128xf32>
      %19 = vector.shape_cast %15 : vector<1x128xf32> to vector<1x128xf32>
      %20 = vector.broadcast %19 : vector<1x128xf32> to vector<8x128xf32>
      %c0_16 = arith.constant 0 : index
      %c0_17 = arith.constant 0 : index
      %21 = vector.load %arg6[%c0_16, %c0_17] : memref<8x128xf32, #tpu.memory_space<vmem>>, vector<8x128xf32>
      tpu.vector_store %arg6[%c0_16, %c0_17], %20 {strides = array<i32>} : memref<8x128xf32, #tpu.memory_space<vmem>>, vector<8x128xf32>,
      %22 = vector.shape_cast %18 : vector<1x128xf32> to vector<1x128xf32>
      %23 = vector.broadcast %22 : vector<1x128xf32> to vector<8x128xf32>
      %c0_18 = arith.constant 0 : index
      %c0_19 = arith.constant 0 : index
      %24 = vector.load %arg7[%c0_18, %c0_19] : memref<8x128xf32, #tpu.memory_space<vmem>>, vector<8x128xf32>
      tpu.vector_store %arg7[%c0_18, %c0_19], %23 {strides = array<i32>} : memref<8x128xf32, #tpu.memory_space<vmem>>, vector<8x128xf32>,
    } else {
    }
    return
  }
  func.func @transform_0(%arg0: i32, %arg1: i32, %arg2: i32) -> (i32, i32) {
    %c0_i32 = arith.constant 0 : i32
    return %arg0, %arg2 : i32, i32
  }
  func.func @transform_1(%arg0: i32, %arg1: i32, %arg2: i32) -> (i32, i32) {
    %c0_i32 = arith.constant 0 : i32
    return %arg2, %arg1 : i32, i32
  }
  func.func @transform_2(%arg0: i32, %arg1: i32, %arg2: i32) -> (i32, i32) {
    %c0_i32 = arith.constant 0 : i32
    return %arg0, %arg1 : i32, i32
  }
  func.func @transform_3(%arg0: i32, %arg1: i32, %arg2: i32) -> (i32, i32) {
    %c0_i32 = arith.constant 0 : i32
    return %arg0, %arg1 : i32, i32
  }
  func.func @transform_4(%arg0: i32, %arg1: i32, %arg2: i32) -> (i32, i32) {
    %c0_i32 = arith.constant 0 : i32
    return %arg0, %arg1 : i32, i32
  }
}

module attributes {stable_mosaic.version = 11 : i64} {
  func.func @_affine_kernel(%arg0: i32, %arg1: memref<64x128xf32, #tpu.memory_space<vmem>>, %arg2: memref<1x128xf32, #tpu.memory_space<vmem>>, %arg3: memref<1x128xf32, #tpu.memory_space<vmem>>, %arg4: memref<64x128xf32, #tpu.memory_space<vmem>>) attributes {dimension_semantics = [#tpu.dimension_semantics<parallel>], iteration_bounds = array<i64: 2>, scalar_prefetch = 0 : i64, scratch_operands = 0 : i64, tpu.core_type = #tpu.core_type<tc>, window_params = [{transform_indices = @transform_0, window_bounds = array<i64: 64, 128>}, {pipeline_mode = #tpu.pipeline_mode<synchronous>, transform_indices = @transform_1, window_bounds = array<i64: 1, 128>}, {pipeline_mode = #tpu.pipeline_mode<synchronous>, transform_indices = @transform_2, window_bounds = array<i64: 1, 128>}, {transform_indices = @transform_3, window_bounds = array<i64: 64, 128>}]} {
    %c0 = arith.constant 0 : index
    %c0_0 = arith.constant 0 : index
    %0 = vector.load %arg1[%c0, %c0_0] : memref<64x128xf32, #tpu.memory_space<vmem>>, vector<64x128xf32>
    %c0_1 = arith.constant 0 : index
    %c0_2 = arith.constant 0 : index
    %1 = vector.load %arg2[%c0_1, %c0_2] : memref<1x128xf32, #tpu.memory_space<vmem>>, vector<1x128xf32>
    %2 = vector.broadcast %1 : vector<1x128xf32> to vector<64x128xf32>
    %3 = arith.mulf %0, %2 : vector<64x128xf32>
    %c0_3 = arith.constant 0 : index
    %c0_4 = arith.constant 0 : index
    %4 = vector.load %arg3[%c0_3, %c0_4] : memref<1x128xf32, #tpu.memory_space<vmem>>, vector<1x128xf32>
    %5 = vector.broadcast %4 : vector<1x128xf32> to vector<64x128xf32>
    %6 = arith.addf %3, %5 : vector<64x128xf32>
    %cst = arith.constant 0.000000e+00 : f32
    %cst_5 = arith.constant 6.000000e+00 : f32
    %7 = vector.broadcast %cst : f32 to vector<64x128xf32>
    %8 = arith.maximumf %7, %6 : vector<64x128xf32>
    %9 = vector.broadcast %cst_5 : f32 to vector<64x128xf32>
    %10 = arith.minimumf %9, %8 : vector<64x128xf32>
    %c0_6 = arith.constant 0 : index
    %c0_7 = arith.constant 0 : index
    %11 = vector.load %arg4[%c0_6, %c0_7] : memref<64x128xf32, #tpu.memory_space<vmem>>, vector<64x128xf32>
    tpu.vector_store %arg4[%c0_6, %c0_7], %10 {strides = array<i32>} : memref<64x128xf32, #tpu.memory_space<vmem>>, vector<64x128xf32>,
    return
  }
  func.func @transform_0(%arg0: i32) -> (i32, i32) {
    %c0_i32 = arith.constant 0 : i32
    %c0_i32_0 = arith.constant 0 : i32
    return %arg0, %c0_i32 : i32, i32
  }
  func.func @transform_1(%arg0: i32) -> (i32, i32) {
    %c0_i32 = arith.constant 0 : i32
    %c0_i32_0 = arith.constant 0 : i32
    %c0_i32_1 = arith.constant 0 : i32
    return %c0_i32, %c0_i32_0 : i32, i32
  }
  func.func @transform_2(%arg0: i32) -> (i32, i32) {
    %c0_i32 = arith.constant 0 : i32
    %c0_i32_0 = arith.constant 0 : i32
    %c0_i32_1 = arith.constant 0 : i32
    return %c0_i32, %c0_i32_0 : i32, i32
  }
  func.func @transform_3(%arg0: i32) -> (i32, i32) {
    %c0_i32 = arith.constant 0 : i32
    %c0_i32_0 = arith.constant 0 : i32
    return %arg0, %c0_i32 : i32, i32
  }
}

module attributes {stable_mosaic.version = 11 : i64} {
  func.func @_affine_add_kernel(%arg0: i32, %arg1: memref<64x128xf32, #tpu.memory_space<vmem>>, %arg2: memref<1x128xf32, #tpu.memory_space<vmem>>, %arg3: memref<1x128xf32, #tpu.memory_space<vmem>>, %arg4: memref<64x128xf32, #tpu.memory_space<vmem>>, %arg5: memref<64x128xf32, #tpu.memory_space<vmem>>) attributes {dimension_semantics = [#tpu.dimension_semantics<parallel>], iteration_bounds = array<i64: 2>, scalar_prefetch = 0 : i64, scratch_operands = 0 : i64, tpu.core_type = #tpu.core_type<tc>, window_params = [{transform_indices = @transform_0, window_bounds = array<i64: 64, 128>}, {pipeline_mode = #tpu.pipeline_mode<synchronous>, transform_indices = @transform_1, window_bounds = array<i64: 1, 128>}, {pipeline_mode = #tpu.pipeline_mode<synchronous>, transform_indices = @transform_2, window_bounds = array<i64: 1, 128>}, {transform_indices = @transform_3, window_bounds = array<i64: 64, 128>}, {transform_indices = @transform_4, window_bounds = array<i64: 64, 128>}]} {
    %c0 = arith.constant 0 : index
    %c0_0 = arith.constant 0 : index
    %0 = vector.load %arg1[%c0, %c0_0] : memref<64x128xf32, #tpu.memory_space<vmem>>, vector<64x128xf32>
    %c0_1 = arith.constant 0 : index
    %c0_2 = arith.constant 0 : index
    %1 = vector.load %arg2[%c0_1, %c0_2] : memref<1x128xf32, #tpu.memory_space<vmem>>, vector<1x128xf32>
    %2 = vector.broadcast %1 : vector<1x128xf32> to vector<64x128xf32>
    %3 = arith.mulf %0, %2 : vector<64x128xf32>
    %c0_3 = arith.constant 0 : index
    %c0_4 = arith.constant 0 : index
    %4 = vector.load %arg3[%c0_3, %c0_4] : memref<1x128xf32, #tpu.memory_space<vmem>>, vector<1x128xf32>
    %5 = vector.broadcast %4 : vector<1x128xf32> to vector<64x128xf32>
    %6 = arith.addf %3, %5 : vector<64x128xf32>
    %c0_5 = arith.constant 0 : index
    %c0_6 = arith.constant 0 : index
    %7 = vector.load %arg4[%c0_5, %c0_6] : memref<64x128xf32, #tpu.memory_space<vmem>>, vector<64x128xf32>
    %8 = arith.addf %6, %7 : vector<64x128xf32>
    %c0_7 = arith.constant 0 : index
    %c0_8 = arith.constant 0 : index
    %9 = vector.load %arg5[%c0_7, %c0_8] : memref<64x128xf32, #tpu.memory_space<vmem>>, vector<64x128xf32>
    tpu.vector_store %arg5[%c0_7, %c0_8], %8 {strides = array<i32>} : memref<64x128xf32, #tpu.memory_space<vmem>>, vector<64x128xf32>,
    return
  }
  func.func @transform_0(%arg0: i32) -> (i32, i32) {
    %c0_i32 = arith.constant 0 : i32
    %c0_i32_0 = arith.constant 0 : i32
    return %arg0, %c0_i32 : i32, i32
  }
  func.func @transform_1(%arg0: i32) -> (i32, i32) {
    %c0_i32 = arith.constant 0 : i32
    %c0_i32_0 = arith.constant 0 : i32
    %c0_i32_1 = arith.constant 0 : i32
    return %c0_i32, %c0_i32_0 : i32, i32
  }
  func.func @transform_2(%arg0: i32) -> (i32, i32) {
    %c0_i32 = arith.constant 0 : i32
    %c0_i32_0 = arith.constant 0 : i32
    %c0_i32_1 = arith.constant 0 : i32
    return %c0_i32, %c0_i32_0 : i32, i32
  }
  func.func @transform_3(%arg0: i32) -> (i32, i32) {
    %c0_i32 = arith.constant 0 : i32
    %c0_i32_0 = arith.constant 0 : i32
    return %arg0, %c0_i32 : i32, i32
  }
  func.func @transform_4(%arg0: i32) -> (i32, i32) {
    %c0_i32 = arith.constant 0 : i32
    %c0_i32_0 = arith.constant 0 : i32
    return %arg0, %c0_i32 : i32, i32
  }
}

module attributes {stable_mosaic.version = 11 : i64} {
  func.func @_mm_bias_kernel(%arg0: i32, %arg1: i32, %arg2: i32, %arg3: i32, %arg4: memref<1x64x512xbf16, #tpu.memory_space<vmem>>, %arg5: memref<1x512x128xbf16, #tpu.memory_space<vmem>>, %arg6: memref<1x1x128xf32, #tpu.memory_space<vmem>>, %arg7: memref<1x64x128xf32, #tpu.memory_space<vmem>>, %arg8: memref<64x128xf32, #tpu.memory_space<vmem>>) attributes {dimension_semantics = [#tpu.dimension_semantics<parallel>, #tpu.dimension_semantics<parallel>, #tpu.dimension_semantics<parallel>, #tpu.dimension_semantics<arbitrary>], iteration_bounds = array<i64: 4, 2, 1, 1>, scalar_prefetch = 0 : i64, scratch_operands = 1 : i64, tpu.core_type = #tpu.core_type<tc>, window_params = [{transform_indices = @transform_0, window_bounds = array<i64: 1, 64, 512>}, {transform_indices = @transform_1, window_bounds = array<i64: 1, 512, 128>}, {transform_indices = @transform_2, window_bounds = array<i64: 1, 1, 128>}, {transform_indices = @transform_3, window_bounds = array<i64: 1, 64, 128>}]} {
    %c0_i32 = arith.constant 0 : i32
    %0 = arith.cmpi eq, %arg3, %c0_i32 : i32
    %1 = arith.extui %0 : i1 to i32
    %c0_i32_0 = arith.constant 0 : i32
    %2 = arith.cmpi ne, %1, %c0_i32_0 : i32
    scf.if %2 {
      %cst_12 = arith.constant 0.000000e+00 : f32
      %14 = vector.broadcast %cst_12 : f32 to vector<64x128xf32>
      %c0_13 = arith.constant 0 : index
      %c0_14 = arith.constant 0 : index
      %15 = vector.load %arg8[%c0_13, %c0_14] : memref<64x128xf32, #tpu.memory_space<vmem>>, vector<64x128xf32>
      tpu.vector_store %arg8[%c0_13, %c0_14], %14 {strides = array<i32>} : memref<64x128xf32, #tpu.memory_space<vmem>>, vector<64x128xf32>,
    } else {
    }
    %c0 = arith.constant 0 : index
    %c0_1 = arith.constant 0 : index
    %3 = vector.load %arg8[%c0, %c0_1] : memref<64x128xf32, #tpu.memory_space<vmem>>, vector<64x128xf32>
    %c0_2 = arith.constant 0 : index
    %c0_3 = arith.constant 0 : index
    %c0_4 = arith.constant 0 : index
    %4 = vector.load %arg4[%c0_2, %c0_3, %c0_4] : memref<1x64x512xbf16, #tpu.memory_space<vmem>>, vector<1x64x512xbf16>
    %5 = vector.shape_cast %4 : vector<1x64x512xbf16> to vector<64x512xbf16>
    %c0_5 = arith.constant 0 : index
    %c0_6 = arith.constant 0 : index
    %c0_7 = arith.constant 0 : index
    %6 = vector.load %arg5[%c0_5, %c0_6, %c0_7] : memref<1x512x128xbf16, #tpu.memory_space<vmem>>, vector<1x512x128xbf16>
    %7 = vector.shape_cast %6 : vector<1x512x128xbf16> to vector<512x128xbf16>
    %cst = arith.constant dense<0.000000e+00> : vector<64x128xf32>
    %8 = tpu.matmul %5, %7, %cst {dimension_numbers = #tpu.dot_dimension_numbers<[1], [0], [0], [1], [0, 0, 1, 1], [], []>} : vector<64x512xbf16>, vector<512x128xbf16>, vector<64x128xf32> -> vector<64x128xf32>
    %9 = arith.addf %3, %8 : vector<64x128xf32>
    %c0_8 = arith.constant 0 : index
    %c0_9 = arith.constant 0 : index
    %10 = vector.load %arg8[%c0_8, %c0_9] : memref<64x128xf32, #tpu.memory_space<vmem>>, vector<64x128xf32>
    tpu.vector_store %arg8[%c0_8, %c0_9], %9 {strides = array<i32>} : memref<64x128xf32, #tpu.memory_space<vmem>>, vector<64x128xf32>,
    %c0_i32_10 = arith.constant 0 : i32
    %11 = arith.cmpi eq, %arg3, %c0_i32_10 : i32
    %12 = arith.extui %11 : i1 to i32
    %c0_i32_11 = arith.constant 0 : i32
    %13 = arith.cmpi ne, %12, %c0_i32_11 : i32
    scf.if %13 {
      %c0_12 = arith.constant 0 : index
      %c0_13 = arith.constant 0 : index
      %14 = vector.load %arg8[%c0_12, %c0_13] : memref<64x128xf32, #tpu.memory_space<vmem>>, vector<64x128xf32>
      %c0_14 = arith.constant 0 : index
      %c0_15 = arith.constant 0 : index
      %c0_16 = arith.constant 0 : index
      %15 = vector.load %arg6[%c0_14, %c0_15, %c0_16] : memref<1x1x128xf32, #tpu.memory_space<vmem>>, vector<1x1x128xf32>
      %16 = vector.shape_cast %15 : vector<1x1x128xf32> to vector<1x128xf32>
      %17 = vector.broadcast %16 : vector<1x128xf32> to vector<64x128xf32>
      %18 = arith.addf %14, %17 : vector<64x128xf32>
      %c0_17 = arith.constant 0 : index
      %c0_18 = arith.constant 0 : index
      %c0_19 = arith.constant 0 : index
      %19 = vector.load %arg7[%c0_17, %c0_18, %c0_19] : memref<1x64x128xf32, #tpu.memory_space<vmem>>, vector<1x64x128xf32>
      %20 = vector.shape_cast %19 : vector<1x64x128xf32> to vector<64x128xf32>
      %21 = vector.shape_cast %18 : vector<64x128xf32> to vector<1x64x128xf32>
      tpu.vector_store %arg7[%c0_17, %c0_18, %c0_19], %21 {strides = array<i32>} : memref<1x64x128xf32, #tpu.memory_space<vmem>>, vector<1x64x128xf32>,
    } else {
    }
    return
  }
  func.func @transform_0(%arg0: i32, %arg1: i32, %arg2: i32, %arg3: i32) -> (i32, i32, i32) {
    %c0_i32 = arith.constant 0 : i32
    return %arg0, %arg1, %arg3 : i32, i32, i32
  }
  func.func @transform_1(%arg0: i32, %arg1: i32, %arg2: i32, %arg3: i32) -> (i32, i32, i32) {
    %c0_i32 = arith.constant 0 : i32
    return %arg0, %arg3, %arg2 : i32, i32, i32
  }
  func.func @transform_2(%arg0: i32, %arg1: i32, %arg2: i32, %arg3: i32) -> (i32, i32, i32) {
    %c0_i32 = arith.constant 0 : i32
    %c0_i32_0 = arith.constant 0 : i32
    return %arg0, %c0_i32, %arg2 : i32, i32, i32
  }
  func.func @transform_3(%arg0: i32, %arg1: i32, %arg2: i32, %arg3: i32) -> (i32, i32, i32) {
    %c0_i32 = arith.constant 0 : i32
    return %arg0, %arg1, %arg2 : i32, i32, i32
  }
}

module attributes {stable_mosaic.version = 11 : i64} {
  func.func @_mm_stats_kernel(%arg0: i32, %arg1: i32, %arg2: i32, %arg3: memref<256x1152xbf16, #tpu.memory_space<vmem>>, %arg4: memref<1152x128xbf16, #tpu.memory_space<vmem>>, %arg5: memref<256x128xf32, #tpu.memory_space<vmem>>, %arg6: memref<8x128xf32, #tpu.memory_space<vmem>>, %arg7: memref<8x128xf32, #tpu.memory_space<vmem>>, %arg8: memref<256x128xf32, #tpu.memory_space<vmem>>) attributes {dimension_semantics = [#tpu.dimension_semantics<parallel>, #tpu.dimension_semantics<parallel>, #tpu.dimension_semantics<arbitrary>], iteration_bounds = array<i64: 2, 1, 1>, scalar_prefetch = 0 : i64, scratch_operands = 1 : i64, tpu.core_type = #tpu.core_type<tc>, window_params = [{transform_indices = @transform_0, window_bounds = array<i64: 256, 1152>}, {transform_indices = @transform_1, window_bounds = array<i64: 1152, 128>}, {transform_indices = @transform_2, window_bounds = array<i64: 256, 128>}, {transform_indices = @transform_3, window_bounds = array<i64: 8, 128>}, {transform_indices = @transform_4, window_bounds = array<i64: 8, 128>}]} {
    %c0_i32 = arith.constant 0 : i32
    %0 = arith.cmpi eq, %arg2, %c0_i32 : i32
    %1 = arith.extui %0 : i1 to i32
    %c0_i32_0 = arith.constant 0 : i32
    %2 = arith.cmpi ne, %1, %c0_i32_0 : i32
    scf.if %2 {
      %cst_10 = arith.constant 0.000000e+00 : f32
      %12 = vector.broadcast %cst_10 : f32 to vector<256x128xf32>
      %c0_11 = arith.constant 0 : index
      %c0_12 = arith.constant 0 : index
      %13 = vector.load %arg8[%c0_11, %c0_12] : memref<256x128xf32, #tpu.memory_space<vmem>>, vector<256x128xf32>
      tpu.vector_store %arg8[%c0_11, %c0_12], %12 {strides = array<i32>} : memref<256x128xf32, #tpu.memory_space<vmem>>, vector<256x128xf32>,
    } else {
    }
    %c0 = arith.constant 0 : index
    %c0_1 = arith.constant 0 : index
    %3 = vector.load %arg8[%c0, %c0_1] : memref<256x128xf32, #tpu.memory_space<vmem>>, vector<256x128xf32>
    %c0_2 = arith.constant 0 : index
    %c0_3 = arith.constant 0 : index
    %4 = vector.load %arg3[%c0_2, %c0_3] : memref<256x1152xbf16, #tpu.memory_space<vmem>>, vector<256x1152xbf16>
    %c0_4 = arith.constant 0 : index
    %c0_5 = arith.constant 0 : index
    %5 = vector.load %arg4[%c0_4, %c0_5] : memref<1152x128xbf16, #tpu.memory_space<vmem>>, vector<1152x128xbf16>
    %cst = arith.constant dense<0.000000e+00> : vector<256x128xf32>
    %6 = tpu.matmul %4, %5, %cst {dimension_numbers = #tpu.dot_dimension_numbers<[1], [0], [0], [1], [0, 0, 1, 1], [], []>} : vector<256x1152xbf16>, vector<1152x128xbf16>, vector<256x128xf32> -> vector<256x128xf32>
    %7 = arith.addf %3, %6 : vector<256x128xf32>
    %c0_6 = arith.constant 0 : index
    %c0_7 = arith.constant 0 : index
    %8 = vector.load %arg8[%c0_6, %c0_7] : memref<256x128xf32, #tpu.memory_space<vmem>>, vector<256x128xf32>
    tpu.vector_store %arg8[%c0_6, %c0_7], %7 {strides = array<i32>} : memref<256x128xf32, #tpu.memory_space<vmem>>, vector<256x128xf32>,
    %c0_i32_8 = arith.constant 0 : i32
    %9 = arith.cmpi eq, %arg2, %c0_i32_8 : i32
    %10 = arith.extui %9 : i1 to i32
    %c0_i32_9 = arith.constant 0 : i32
    %11 = arith.cmpi ne, %10, %c0_i32_9 : i32
    scf.if %11 {
      %c0_10 = arith.constant 0 : index
      %c0_11 = arith.constant 0 : index
      %12 = vector.load %arg8[%c0_10, %c0_11] : memref<256x128xf32, #tpu.memory_space<vmem>>, vector<256x128xf32>
      %c0_12 = arith.constant 0 : index
      %c0_13 = arith.constant 0 : index
      %13 = vector.load %arg5[%c0_12, %c0_13] : memref<256x128xf32, #tpu.memory_space<vmem>>, vector<256x128xf32>
      tpu.vector_store %arg5[%c0_12, %c0_13], %12 {strides = array<i32>} : memref<256x128xf32, #tpu.memory_space<vmem>>, vector<256x128xf32>,
      %cst_14 = arith.constant dense<0.000000e+00> : vector<128xf32>
      %14 = vector.multi_reduction <add>, %12, %cst_14 [0] : vector<256x128xf32> to vector<128xf32>
      %15 = vector.shape_cast %14 : vector<128xf32> to vector<1x128xf32>
      %16 = arith.mulf %12, %12 : vector<256x128xf32>
      %cst_15 = arith.constant dense<0.000000e+00> : vector<128xf32>
      %17 = vector.multi_reduction <add>, %16, %cst_15 [0] : vector<256x128xf32> to vector<128xf32>
      %18 = vector.shape_cast %17 : vector<128xf32> to vector<1x128xf32>
      %19 = vector.shape_cast %15 : vector<1x128xf32> to vector<1x128xf32>
      %20 = vector.broadcast %19 : vector<1x128xf32> to vector<8x128xf32>
      %c0_16 = arith.constant 0 : index
      %c0_17 = arith.constant 0 : index
      %21 = vector.load %arg6[%c0_16, %c0_17] : memref<8x128xf32, #tpu.memory_space<vmem>>, vector<8x128xf32>
      tpu.vector_store %arg6[%c0_16, %c0_17], %20 {strides = array<i32>} : memref<8x128xf32, #tpu.memory_space<vmem>>, vector<8x128xf32>,
      %22 = vector.shape_cast %18 : vector<1x128xf32> to vector<1x128xf32>
      %23 = vector.broadcast %22 : vector<1x128xf32> to vector<8x128xf32>
      %c0_18 = arith.constant 0 : index
      %c0_19 = arith.constant 0 : index
      %24 = vector.load %arg7[%c0_18, %c0_19] : memref<8x128xf32, #tpu.memory_space<vmem>>, vector<8x128xf32>
      tpu.vector_store %arg7[%c0_18, %c0_19], %23 {strides = array<i32>} : memref<8x128xf32, #tpu.memory_space<vmem>>, vector<8x128xf32>,
    } else {
    }
    return
  }
  func.func @transform_0(%arg0: i32, %arg1: i32, %arg2: i32) -> (i32, i32) {
    %c0_i32 = arith.constant 0 : i32
    return %arg0, %arg2 : i32, i32
  }
  func.func @transform_1(%arg0: i32, %arg1: i32, %arg2: i32) -> (i32, i32) {
    %c0_i32 = arith.constant 0 : i32
    return %arg2, %arg1 : i32, i32
  }
  func.func @transform_2(%arg0: i32, %arg1: i32, %arg2: i32) -> (i32, i32) {
    %c0_i32 = arith.constant 0 : i32
    return %arg0, %arg1 : i32, i32
  }
  func.func @transform_3(%arg0: i32, %arg1: i32, %arg2: i32) -> (i32, i32) {
    %c0_i32 = arith.constant 0 : i32
    return %arg0, %arg1 : i32, i32
  }
  func.func @transform_4(%arg0: i32, %arg1: i32, %arg2: i32) -> (i32, i32) {
    %c0_i32 = arith.constant 0 : i32
    return %arg0, %arg1 : i32, i32
  }
}

module attributes {stable_mosaic.version = 11 : i64} {
  func.func @_affine_kernel(%arg0: i32, %arg1: memref<256x128xf32, #tpu.memory_space<vmem>>, %arg2: memref<1x128xf32, #tpu.memory_space<vmem>>, %arg3: memref<1x128xf32, #tpu.memory_space<vmem>>, %arg4: memref<256x128xf32, #tpu.memory_space<vmem>>) attributes {dimension_semantics = [#tpu.dimension_semantics<parallel>], iteration_bounds = array<i64: 2>, scalar_prefetch = 0 : i64, scratch_operands = 0 : i64, tpu.core_type = #tpu.core_type<tc>, window_params = [{transform_indices = @transform_0, window_bounds = array<i64: 256, 128>}, {pipeline_mode = #tpu.pipeline_mode<synchronous>, transform_indices = @transform_1, window_bounds = array<i64: 1, 128>}, {pipeline_mode = #tpu.pipeline_mode<synchronous>, transform_indices = @transform_2, window_bounds = array<i64: 1, 128>}, {transform_indices = @transform_3, window_bounds = array<i64: 256, 128>}]} {
    %c0 = arith.constant 0 : index
    %c0_0 = arith.constant 0 : index
    %0 = vector.load %arg1[%c0, %c0_0] : memref<256x128xf32, #tpu.memory_space<vmem>>, vector<256x128xf32>
    %c0_1 = arith.constant 0 : index
    %c0_2 = arith.constant 0 : index
    %1 = vector.load %arg2[%c0_1, %c0_2] : memref<1x128xf32, #tpu.memory_space<vmem>>, vector<1x128xf32>
    %2 = vector.broadcast %1 : vector<1x128xf32> to vector<256x128xf32>
    %3 = arith.mulf %0, %2 : vector<256x128xf32>
    %c0_3 = arith.constant 0 : index
    %c0_4 = arith.constant 0 : index
    %4 = vector.load %arg3[%c0_3, %c0_4] : memref<1x128xf32, #tpu.memory_space<vmem>>, vector<1x128xf32>
    %5 = vector.broadcast %4 : vector<1x128xf32> to vector<256x128xf32>
    %6 = arith.addf %3, %5 : vector<256x128xf32>
    %cst = arith.constant 0.000000e+00 : f32
    %cst_5 = arith.constant 6.000000e+00 : f32
    %7 = vector.broadcast %cst : f32 to vector<256x128xf32>
    %8 = arith.maximumf %7, %6 : vector<256x128xf32>
    %9 = vector.broadcast %cst_5 : f32 to vector<256x128xf32>
    %10 = arith.minimumf %9, %8 : vector<256x128xf32>
    %c0_6 = arith.constant 0 : index
    %c0_7 = arith.constant 0 : index
    %11 = vector.load %arg4[%c0_6, %c0_7] : memref<256x128xf32, #tpu.memory_space<vmem>>, vector<256x128xf32>
    tpu.vector_store %arg4[%c0_6, %c0_7], %10 {strides = array<i32>} : memref<256x128xf32, #tpu.memory_space<vmem>>, vector<256x128xf32>,
    return
  }
  func.func @transform_0(%arg0: i32) -> (i32, i32) {
    %c0_i32 = arith.constant 0 : i32
    %c0_i32_0 = arith.constant 0 : i32
    return %arg0, %c0_i32 : i32, i32
  }
  func.func @transform_1(%arg0: i32) -> (i32, i32) {
    %c0_i32 = arith.constant 0 : i32
    %c0_i32_0 = arith.constant 0 : i32
    %c0_i32_1 = arith.constant 0 : i32
    return %c0_i32, %c0_i32_0 : i32, i32
  }
  func.func @transform_2(%arg0: i32) -> (i32, i32) {
    %c0_i32 = arith.constant 0 : i32
    %c0_i32_0 = arith.constant 0 : i32
    %c0_i32_1 = arith.constant 0 : i32
    return %c0_i32, %c0_i32_0 : i32, i32
  }
  func.func @transform_3(%arg0: i32) -> (i32, i32) {
    %c0_i32 = arith.constant 0 : i32
    %c0_i32_0 = arith.constant 0 : i32
    return %arg0, %c0_i32 : i32, i32
  }
}

module attributes {stable_mosaic.version = 11 : i64} {
  func.func @_proj_kernel(%arg0: i32, %arg1: memref<256x128xf32, #tpu.memory_space<vmem>>, %arg2: memref<1x128xf32, #tpu.memory_space<vmem>>, %arg3: memref<1x1xf32, #tpu.memory_space<vmem>>, %arg4: memref<256x1xf32, #tpu.memory_space<vmem>>) attributes {dimension_semantics = [#tpu.dimension_semantics<parallel>], iteration_bounds = array<i64: 2>, scalar_prefetch = 0 : i64, scratch_operands = 0 : i64, tpu.core_type = #tpu.core_type<tc>, window_params = [{transform_indices = @transform_0, window_bounds = array<i64: 256, 128>}, {pipeline_mode = #tpu.pipeline_mode<synchronous>, transform_indices = @transform_1, window_bounds = array<i64: 1, 128>}, {pipeline_mode = #tpu.pipeline_mode<synchronous>, transform_indices = @transform_2, window_bounds = array<i64: 1, 1>}, {transform_indices = @transform_3, window_bounds = array<i64: 256, 1>}]} {
    %c0 = arith.constant 0 : index
    %c0_0 = arith.constant 0 : index
    %0 = vector.load %arg1[%c0, %c0_0] : memref<256x128xf32, #tpu.memory_space<vmem>>, vector<256x128xf32>
    %c0_1 = arith.constant 0 : index
    %c0_2 = arith.constant 0 : index
    %1 = vector.load %arg2[%c0_1, %c0_2] : memref<1x128xf32, #tpu.memory_space<vmem>>, vector<1x128xf32>
    %2 = vector.broadcast %1 : vector<1x128xf32> to vector<256x128xf32>
    %3 = arith.mulf %0, %2 : vector<256x128xf32>
    %cst = arith.constant dense<0.000000e+00> : vector<256xf32>
    %4 = vector.multi_reduction <add>, %3, %cst [1] : vector<256x128xf32> to vector<256xf32>
    %5 = vector.shape_cast %4 : vector<256xf32> to vector<256x1xf32>
    %c0_3 = arith.constant 0 : index
    %c0_4 = arith.constant 0 : index
    %6 = vector.load %arg3[%c0_3, %c0_4] : memref<1x1xf32, #tpu.memory_space<vmem>>, vector<1x1xf32>
    %7 = vector.broadcast %6 : vector<1x1xf32> to vector<256x1xf32>
    %8 = arith.addf %5, %7 : vector<256x1xf32>
    %c0_5 = arith.constant 0 : index
    %c0_6 = arith.constant 0 : index
    %9 = vector.load %arg4[%c0_5, %c0_6] : memref<256x1xf32, #tpu.memory_space<vmem>>, vector<256x1xf32>
    tpu.vector_store %arg4[%c0_5, %c0_6], %8 {strides = array<i32>} : memref<256x1xf32, #tpu.memory_space<vmem>>, vector<256x1xf32>,
    return
  }
  func.func @transform_0(%arg0: i32) -> (i32, i32) {
    %c0_i32 = arith.constant 0 : i32
    %c0_i32_0 = arith.constant 0 : i32
    return %arg0, %c0_i32 : i32, i32
  }
  func.func @transform_1(%arg0: i32) -> (i32, i32) {
    %c0_i32 = arith.constant 0 : i32
    %c0_i32_0 = arith.constant 0 : i32
    %c0_i32_1 = arith.constant 0 : i32
    return %c0_i32, %c0_i32_0 : i32, i32
  }
  func.func @transform_2(%arg0: i32) -> (i32, i32) {
    %c0_i32 = arith.constant 0 : i32
    %c0_i32_0 = arith.constant 0 : i32
    %c0_i32_1 = arith.constant 0 : i32
    return %c0_i32, %c0_i32_0 : i32, i32
  }
  func.func @transform_3(%arg0: i32) -> (i32, i32) {
    %c0_i32 = arith.constant 0 : i32
    %c0_i32_0 = arith.constant 0 : i32
    return %arg0, %c0_i32 : i32, i32
  }
}

</mosaic_0001>

<bundles_post_ra>
// kernel: fwd.10
= control target key start
LH: loop header
LB: loop body
LE: loop exit
PB: predicated region body
PF: predicated region fallthrough
CT: control target
= control target key end

     0   :  { %s1095_s12 = smov 0   ;;  %s1097_s13 = smov 0   ;;  %s1199_s0 = inlined_call_operand.vmem [shape: bf16[4,32,512], index: 0, kind: input, shape index: {}]   ;;  %s1200_s1 = inlined_call_operand.vmem [shape: bf16[4,512,128], index: 1, kind: input, shape index: {}]   ;;  %s1201_s2 = inlined_call_operand.vmem [shape: f32[4,1,128], index: 2, kind: input, shape index: {}]   ;;  %s1202_s3 = inlined_call_operand.vmem [shape: f32[4,32,128], index: 3, kind: output, shape index: {}]  }
   0x1   :  { %s1099_s14 = smov 0   ;;  %s1101_s15 = smov 0  }
   0x2   :  { %s1103_s16 = smov 0  }
   0x3 LB: > { %s35_s17 = sadd.s32 1, %s1065_s14  ;;  %s39_s18 = sadd.s32 1, %s1069_s15  ;;  %s1073_s16 = sphi %s1103_s16, %s13_s16   ;;  %s1069_s15 = sphi %s1101_s15, %s1206_s15   ;;  %s1065_s14 = sphi %s1099_s14, %s1205_s14   ;;  %s1061_s13 = sphi %s1097_s13, %s1204_s13   ;;  %s1057_s12 = sphi %s1095_s12, %s1203_s12  }
   0x4   : > { %p37_p0 = scmp.ge.s32.totalorder %s35_s17, 2  ;;  %p863_p1 = scmp.ge.s32.totalorder %s1073_s16, 1 }
   0x5   : > { %p217_p2 = scmp.lt.s32.totalorder %s1073_s16, 9 }
   0x6   : > { %s1208_s17 = smov (%p37_p0, %s35_s17), 0  ;;  %s1210_s18 = smov (!%p37_p0, %s39_s18), %s1069_s15 }
   0x7   : > { %p218_p3 = pnand %p863_p1, %p217_p2  ;;  %p41_p4 = scmp.ge.s32.totalorder %s1210_s18, 4 }
   0x8   : > { %p277_p5 = scmp.lt.s32.totalorder (!%p218_p3), %s1061_s13, 3  ;;  %s864_s23 = sshll.u32 (!%p218_p3), %s1057_s12, 1 }
   0x9   : > { %s1212_s18 = smov (%p41_p4, %s1210_s18), 0  ;;  %221 = sbr.rel (%p218_p3) target bundleno = 276 (0x114), region = 32 }
   0xa   : > { %p279_p6 = scmp.lt.s32.totalorder (!%p218_p3), %s864_s23, 3 }
  0x10   : > { %s1214_s13 = smov (!%p277_p5, %s1061_s13), 3  ;;  %s1216_s23 = smov (!%p279_p6, %s864_s23), 3 }
  0x11   : > { %s912_s19 = sshll.u32 %s1214_s13, 8  ;;  %s866_s24 = sshll.u32 %s1214_s13, 4 }
  0x12   : > { %s1133_s22 = scalar_lea.vmem %s1200_s1, %s912_s19  ;;  %s865_s25 = sshll.u32 %s1216_s23, 2 }
  0x13   : > { %v997_v0 = vld [vmem:[%s1133_s22 + $0x40] sm:$0xff]   ;;  %v1001_v4 = vld [vmem:[%s1133_s22 + $0x48] sm:$0xff]   ;;  %v1005_v8 = vld [vmem:[%s1133_s22 + $0x50] sm:$0xff]   ;;  %s286_s26 = sadd.s32 %s866_s24, %s865_s25  ;;  %s871_s4 = sshll.u32 %s1214_s13, 2 }
  0x14   : > { %v998_v1 = vld [vmem:[%s1133_s22 + $0xc0] sm:$0xff]   ;;  %913 = vmatprep.subr.bf16.mxu0 %v997_v0  ;;  %v1002_v5 = vld [vmem:[%s1133_s22 + $0xc8] sm:$0xff]   ;;  %v1006_v9 = vld [vmem:[%s1133_s22 + $0xd0] sm:$0xff]   ;;  %s867_s27 = sshll.u32 %s286_s26, 2  ;;  %s319_s5 = sadd.s32 %s871_s4, %s1216_s23 }
  0x15   : > { %v999_v2 = vld [vmem:[%s1133_s22] sm:$0xff]   ;;  %935 = vmatprep.subr.bf16.mxu1 %v998_v1  ;;  %v1003_v6 = vld [vmem:[%s1133_s22 + $0x8] sm:$0xff]   ;;  %v1007_v10 = vld [vmem:[%s1133_s22 + $0x10] sm:$0xff]   ;;  %s288_s30 = scalar_lea.vmem %s1199_s0, %s867_s27  ;;  %s309_s8 = scalar_lea.vmem %s1201_s2, %s1214_s13 }
  0x16   : > { %v1000_v3 = vld [vmem:[%s1133_s22 + $0x80] sm:$0xff]   ;;  %914 = vmatpush3.bf16.msra.mxu0 %v999_v2  ;;  %v1004_v7 = vld [vmem:[%s1133_s22 + $0x88] sm:$0xff]   ;;  %v1008_v11 = vld [vmem:[%s1133_s22 + $0x90] sm:$0xff]   ;;  %s872_s9 = sshll.u32 %s319_s5, 3 }
  0x17   : > { %936 = vmatpush3.bf16.msra.mxu1 %v1000_v3  ;;  %915 = vmatprep.subr.bf16.mxu0 %v1001_v4  ;;  %v1009_v12 = vld [vmem:[%s1133_s22 + $0x58] sm:$0xff]   ;;  %v1013_v16 = vld [vmem:[%s1133_s22 + $0x60] sm:$0xff]   ;;  %v1017_v20 = vld [vmem:[%s1133_s22 + $0x68] sm:$0xff]   ;;  %s321_s12 = scalar_lea.vmem %s1202_s3, %s872_s9 }
  0x18   : > { %937 = vmatprep.subr.bf16.mxu1 %v1002_v5  ;;  %v1010_v13 = vld [vmem:[%s1133_s22 + $0xd8] sm:$0xff]   ;;  %v1014_v17 = vld [vmem:[%s1133_s22 + $0xe0] sm:$0xff]   ;;  %v1018_v21 = vld [vmem:[%s1133_s22 + $0xe8] sm:$0xff]  }
  0x19   : > { %v1011_v14 = vld [vmem:[%s1133_s22 + $0x18] sm:$0xff]   ;;  %v1015_v18 = vld [vmem:[%s1133_s22 + $0x20] sm:$0xff]   ;;  %v1019_v22 = vld [vmem:[%s1133_s22 + $0x28] sm:$0xff]  }
  0x1a   : > { %916 = vmatpush3.bf16.msra.mxu0 %v1003_v6  ;;  %v1012_v15 = vld [vmem:[%s1133_s22 + $0x98] sm:$0xff]   ;;  %v1016_v19 = vld [vmem:[%s1133_s22 + $0xa0] sm:$0xff]   ;;  %v1020_v23 = vld [vmem:[%s1133_s22 + $0xa8] sm:$0xff]  }
  0x1b   : > { %938 = vmatpush3.bf16.msra.mxu1 %v1004_v7  ;;  %917 = vmatprep.subr.bf16.mxu0 %v1005_v8  ;;  %v1021_v24 = vld [vmem:[%s1133_s22 + $0x70] sm:$0xff]   ;;  %v1025_v28 = vld [vmem:[%s1133_s22 + $0x78] sm:$0xff]   ;;  %v909_v45 = vld [vmem:[%s309_s8] ss:$0 sm:$0xff] }
  0x1c   : > { %939 = vmatprep.subr.bf16.mxu1 %v1006_v9  ;;  %v1022_v25 = vld [vmem:[%s1133_s22 + $0xf0] sm:$0xff]   ;;  %v1026_v29 = vld [vmem:[%s1133_s22 + $0xf8] sm:$0xff]  }
  0x1d   : > { %v1023_v26 = vld [vmem:[%s1133_s22 + $0x30] sm:$0xff]   ;;  %v1027_v30 = vld [vmem:[%s1133_s22 + $0x38] sm:$0xff]  }
  0x1e   : > { %918 = vmatpush3.bf16.msra.mxu0 %v1007_v10  ;;  %v1024_v27 = vld [vmem:[%s1133_s22 + $0xb0] sm:$0xff]   ;;  %v1028_v31 = vld [vmem:[%s1133_s22 + $0xb8] sm:$0xff]  }
  0x1f   : > { %940 = vmatpush3.bf16.msra.mxu1 %v1008_v11  ;;  %919 = vmatprep.subr.bf16.mxu0 %v1009_v12  ;;  %v1029_v32 = vld [vmem:[%s288_s30] ss:$16 sps:$4 sm:$0xff]   ;;  %v1031_v33 = vld [vmem:[%s288_s30 + $0x4] ss:$16 sps:$4 sm:$0xff]   ;;  %v1032_v34 = vld [vmem:[%s288_s30 + $0x8] ss:$16 sps:$4 sm:$0xff]  }
  0x20   : > { %941 = vmatprep.subr.bf16.mxu1 %v1010_v13  ;;  %v1034_v35 = vld [vmem:[%s288_s30 + $0xc] ss:$16 sps:$4 sm:$0xff]   ;;  %644 = vmatprep.mubr.bf16.mxu0 %v1031_v33 }
  0x21   : > { %685 = vmatprep.mubr.bf16.mxu1 %v1034_v35 }
  0x22   : > { %920 = vmatpush3.bf16.msra.mxu0 %v1011_v14 }
  0x23   : > { %942 = vmatpush3.bf16.msra.mxu1 %v1012_v15  ;;  %921 = vmatprep.subr.bf16.mxu0 %v1013_v16 }
  0x24   : > { %943 = vmatprep.subr.bf16.mxu1 %v1014_v17 }
  0x26   : > { %922 = vmatpush3.bf16.msra.mxu0 %v1015_v18 }
  0x27   : > { %944 = vmatpush3.bf16.msra.mxu1 %v1016_v19  ;;  %923 = vmatprep.subr.bf16.mxu0 %v1017_v20 }
  0x28   : > { %945 = vmatprep.subr.bf16.mxu1 %v1018_v21 }
  0x2a   : > { %924 = vmatpush3.bf16.msra.mxu0 %v1019_v22 }
  0x2b   : > { %946 = vmatpush3.bf16.msra.mxu1 %v1020_v23  ;;  %925 = vmatprep.subr.bf16.mxu0 %v1021_v24 }
  0x2c   : > { %947 = vmatprep.subr.bf16.mxu1 %v1022_v25 }
  0x2e   : > { %926 = vmatpush3.bf16.msra.mxu0 %v1023_v26 }
  0x2f   : > { %948 = vmatpush3.bf16.msra.mxu1 %v1024_v27  ;;  %927 = vmatprep.subr.bf16.mxu0 %v1025_v28 }
  0x30   : > { %949 = vmatprep.subr.bf16.mxu1 %v1026_v29 }
  0x32   : > { %928 = vmatpush3.bf16.msra.mxu0 %v1027_v30 }
  0x33   : > { %950 = vmatpush3.bf16.msra.mxu1 %v1028_v31 }
  0x35   : > { %645 = vmatmul.mubr.bf16.vlgmr.msra.gmra.mrb[0].mxu0 %v1029_v32 }
  0x36   : > { %686 = vmatmul.mubr.bf16.vlgmr.msra.gmra.mrb[0].mxu1 %v1032_v34 }
 0x108   : > { %v929_v36 = vpop.f32.mrb[0].mxu0 }
 0x109   : > { %v951_v37 = vpop.f32.mrb[0].mxu1  ;;  %v930_v38 = vpop.f32.mrb[1].mxu0 }
 0x10a   : > { %v931_v39 = vadd.f32 %v930_v38, %v929_v36  ;;  %v952_v40 = vpop.f32.mrb[1].mxu1  ;;  %v932_v41 = vpop.f32.mrb[2].mxu0 }
 0x10b   : > { %v953_v42 = vadd.f32 %v952_v40, %v951_v37  ;;  %v954_v43 = vpop.f32.mrb[2].mxu1  ;;  %v933_v44 = vpop.f32.mrb[3].mxu0 }
 0x10c   : > { %v934_v46 = vadd.f32 %v933_v44, %v932_v41  ;;  %v955_v47 = vpop.f32.mrb[3].mxu1 }
 0x10d   : > { %v688_v48 = vadd.f32 %v953_v42, %v931_v39  ;;  %v956_v49 = vadd.f32 %v955_v47, %v954_v43 }
 0x10f   : > { %v710_v50 = vadd.f32 %v909_v45, %v688_v48  ;;  %v691_v51 = vadd.f32 %v956_v49, %v934_v46 }
 0x111   : > { %712 = vst [vmem:[%s321_s12] sm:$0xff] %v710_v50  ;;  %v711_v52 = vadd.f32 %v909_v45, %v691_v51 }
 0x113   : > { %713 = vst [vmem:[%s321_s12 + $0x8] sm:$0xff] %v711_v52 }
 0x114 PF: > { %s13_s16 = sadd.s32 1, %s1073_s16   ;;  %s1203_s12 = smov %s1065_s14 }
 0x115   : > { %p10_p7 = scmp.ge.s32.totalorder %s13_s16, 10   ;;  %s1204_s13 = smov %s1069_s15 }
 0x116   : > { %s1205_s14 = smov %s1208_s17  ;;  %s1206_s15 = smov %s1212_s18 }
 0x117   :  { %12 = sbr.rel (!%p10_p7) target bundleno = 3 (0x3), region = 76 }

// kernel: fwd.12
= control target key start
LH: loop header
LB: loop body
LE: loop exit
PB: predicated region body
PF: predicated region fallthrough
CT: control target
= control target key end

     0   :  { %s341_s12 = smov 0   ;;  %s371_s0 = inlined_call_operand.vmem [shape: f32[128,128], index: 0, kind: input, shape index: {}]   ;;  %s372_s1 = inlined_call_operand.vmem [shape: f32[1,128], index: 1, kind: input, shape index: {}]   ;;  %s373_s2 = inlined_call_operand.vmem [shape: f32[1,128], index: 2, kind: input, shape index: {}]   ;;  %s374_s3 = inlined_call_operand.vmem [shape: f32[128,128], index: 3, kind: output, shape index: {}]  }
   0x1 LB: > { %s292_s13 = sadd.s32 4294967295, %s319_s12   ;;  %p296_p0 = scmp.ge.s32.totalorder %s319_s12, 1  ;;  %s319_s12 = sphi %s341_s12, %s13_s12  }
   0x2   : > { %p138_p1 = scmp.lt.s32.totalorder %s319_s12, 3 }
   0x4   : > { %p139_p2 = pnand %p296_p0, %p138_p1 }
   0x5   : > { %s297_s14 = sshll.u32 (!%p139_p2), %s292_s13, 3  ;;  %v301_v0 = vld [vmem:[%s372_s1] ss:$0 sm:$0xff] (!%p139_p2) }
   0x6   : > { %142 = sbr.rel (%p139_p2) target bundleno = 29 (0x1d), region = 32  ;;  %p163_p3 = scmp.lt.s32.totalorder (!%p139_p2), %s297_s14, 15  ;;  %v302_v1 = vld [vmem:[%s373_s2] ss:$0 sm:$0xff] (!%p139_p2) }
   0xd   : > { %s376_s14 = smov (!%p163_p3, %s297_s14), 15 }
   0xe   : > { %s298_s15 = sshll.u32 %s376_s14, 3 }
   0xf   : > { %s166_s20 = scalar_lea.vmem %s371_s0, %s298_s15  ;;  %s172_s25 = scalar_lea.vmem %s374_s3, %s298_s15 }
  0x10   : > { %v174_v2 = vld [vmem:[%s166_s20] sm:$0xff]  ;;  %v175_v3 = vld [vmem:[%s166_s20 + $0x8] sm:$0xff]  ;;  %v176_v4 = vld [vmem:[%s166_s20 + $0x10] sm:$0xff] }
  0x11   : > { %v189_v5 = vmul.f32 %v301_v0, %v174_v2  ;;  %v190_v6 = vmul.f32 %v301_v0, %v175_v3  ;;  %v191_v7 = vmul.f32 %v301_v0, %v176_v4  ;;  %v177_v8 = vld [vmem:[%s166_s20 + $0x18] sm:$0xff]  ;;  %v178_v9 = vld [vmem:[%s166_s20 + $0x20] sm:$0xff]  ;;  %v179_v10 = vld [vmem:[%s166_s20 + $0x28] sm:$0xff] }
  0x12   : > { %v192_v11 = vmul.f32 %v301_v0, %v177_v8  ;;  %v193_v12 = vmul.f32 %v301_v0, %v178_v9  ;;  %v194_v13 = vmul.f32 %v301_v0, %v179_v10  ;;  %v180_v14 = vld [vmem:[%s166_s20 + $0x30] sm:$0xff]  ;;  %v181_v15 = vld [vmem:[%s166_s20 + $0x38] sm:$0xff] }
  0x13   : > { %v204_v16 = vadd.f32 %v302_v1, %v189_v5  ;;  %v205_v17 = vadd.f32 %v302_v1, %v190_v6  ;;  %v206_v18 = vadd.f32 %v302_v1, %v191_v7  ;;  %v195_v19 = vmul.f32 %v301_v0, %v180_v14 }
  0x14   : > { %v207_v20 = vadd.f32 %v302_v1, %v192_v11  ;;  %v208_v21 = vadd.f32 %v302_v1, %v193_v12  ;;  %v209_v22 = vadd.f32 %v302_v1, %v194_v13  ;;  %v196_v23 = vmul.f32 %v301_v0, %v181_v15 }
  0x15   : > { %v212_v24 = vmax.f32 %v204_v16, 0.0  ;;  %v213_v25 = vmax.f32 %v205_v17, 0.0  ;;  %v214_v26 = vmax.f32 %v206_v18, 0.0  ;;  %v210_v27 = vadd.f32 %v302_v1, %v195_v19 }
  0x16   : > { %v215_v28 = vmax.f32 %v207_v20, 0.0  ;;  %v216_v29 = vmax.f32 %v208_v21, 0.0  ;;  %v217_v30 = vmax.f32 %v209_v22, 0.0  ;;  %v211_v31 = vadd.f32 %v302_v1, %v196_v23 }
  0x17   : > { %v220_v32 = vmin.f32 %v212_v24, 6.0  ;;  %v221_v33 = vmin.f32 %v213_v25, 6.0  ;;  %v222_v34 = vmin.f32 %v214_v26, 6.0  ;;  %v218_v35 = vmax.f32 %v210_v27, 0.0 }
  0x18   : > { %v223_v36 = vmin.f32 %v215_v28, 6.0  ;;  %v224_v37 = vmin.f32 %v216_v29, 6.0  ;;  %v225_v38 = vmin.f32 %v217_v30, 6.0  ;;  %v219_v39 = vmax.f32 %v211_v31, 0.0 }
  0x19   : > { %228 = vst [vmem:[%s172_s25] sm:$0xff] %v220_v32  ;;  %229 = vst [vmem:[%s172_s25 + $0x8] sm:$0xff] %v221_v33  ;;  %v226_v40 = vmin.f32 %v218_v35, 6.0 }
  0x1a   : > { %230 = vst [vmem:[%s172_s25 + $0x10] sm:$0xff] %v222_v34  ;;  %231 = vst [vmem:[%s172_s25 + $0x18] sm:$0xff] %v223_v36  ;;  %v227_v41 = vmin.f32 %v219_v39, 6.0 }
  0x1b   : > { %232 = vst [vmem:[%s172_s25 + $0x20] sm:$0xff] %v224_v37  ;;  %233 = vst [vmem:[%s172_s25 + $0x28] sm:$0xff] %v225_v38 }
  0x1c   : > { %234 = vst [vmem:[%s172_s25 + $0x30] sm:$0xff] %v226_v40  ;;  %235 = vst [vmem:[%s172_s25 + $0x38] sm:$0xff] %v227_v41 }
  0x1d PF: > { %s13_s12 = sadd.s32 1, %s319_s12  }
  0x1e   : > { %p10_p4 = scmp.ge.s32.totalorder %s13_s12, 4  }
  0x20   :  { %12 = sbr.rel (!%p10_p4) target bundleno = 1 (0x1), region = 62 }

// kernel: fwd.14
= control target key start
LH: loop header
LB: loop body
LE: loop exit
PB: predicated region body
PF: predicated region fallthrough
CT: control target
= control target key end

     0   :  { %s409_s15 = smov 0   ;;  %s455_s0 = inlined_call_operand.vmem [shape: f32[128,128], index: 0, kind: input, shape index: {}]   ;;  %s456_s1 = inlined_call_operand.vmem [shape: f32[1,128], index: 1, kind: input, shape index: {}]   ;;  %s457_s2 = inlined_call_operand.vmem [shape: f32[1,128], index: 2, kind: input, shape index: {}]   ;;  %s458_s3 = inlined_call_operand.vmem [shape: f32[128,128], index: 3, kind: input, shape index: {}]   ;;  %s459_s4 = inlined_call_operand.vmem [shape: f32[128,128], index: 4, kind: output, shape index: {}]  }
   0x1 LB: > { %s353_s16 = sadd.s32 4294967295, %s382_s15   ;;  %p357_p0 = scmp.ge.s32.totalorder %s382_s15, 1  ;;  %s382_s15 = sphi %s409_s15, %s14_s15  }
   0x2   : > { %p174_p1 = scmp.lt.s32.totalorder %s382_s15, 3 }
   0x4   : > { %p175_p2 = pnand %p357_p0, %p174_p1 }
   0x5   : > { %s358_s17 = sshll.u32 (!%p175_p2), %s353_s16, 3  ;;  %v364_v0 = vld [vmem:[%s456_s1] ss:$0 sm:$0xff] (!%p175_p2) }
   0x6   : > { %178 = sbr.rel (%p175_p2) target bundleno = 29 (0x1d), region = 36  ;;  %p206_p3 = scmp.lt.s32.totalorder (!%p175_p2), %s358_s17, 15  ;;  %v365_v2 = vld [vmem:[%s457_s2] ss:$0 sm:$0xff] (!%p175_p2) }
   0xd   : > { %s461_s17 = smov (!%p206_p3, %s358_s17), 15 }
   0xe   : > { %s359_s18 = sshll.u32 %s461_s17, 3 }
   0xf   : > { %s209_s23 = scalar_lea.vmem %s455_s0, %s359_s18  ;;  %s426_s26 = scalar_lea.vmem %s458_s3, %s359_s18 }
  0x10   : > { %v223_v1 = vld [vmem:[%s209_s23] sm:$0xff]  ;;  %v224_v3 = vld [vmem:[%s209_s23 + $0x8] sm:$0xff]  ;;  %v225_v7 = vld [vmem:[%s209_s23 + $0x10] sm:$0xff]  ;;  %s438_s5 = scalar_lea.vmem %s459_s4, %s359_s18 }
  0x11   : > { %v238_v4 = vmul.f32 %v364_v0, %v223_v1  ;;  %v261_v5 = vld [vmem:[%s426_s26] sm:$0xff]  ;;  %v239_v6 = vmul.f32 %v364_v0, %v224_v3  ;;  %v262_v8 = vld [vmem:[%s426_s26 + $0x8] sm:$0xff]  ;;  %v240_v9 = vmul.f32 %v364_v0, %v225_v7  ;;  %v226_v10 = vld [vmem:[%s209_s23 + $0x18] sm:$0xff] }
  0x12   : > { %v227_v11 = vld [vmem:[%s209_s23 + $0x20] sm:$0xff]  ;;  %v263_v14 = vld [vmem:[%s426_s26 + $0x10] sm:$0xff]  ;;  %v241_v15 = vmul.f32 %v364_v0, %v226_v10  ;;  %v264_v16 = vld [vmem:[%s426_s26 + $0x18] sm:$0xff] }
  0x13   : > { %v253_v12 = vadd.f32 %v365_v2, %v238_v4  ;;  %v254_v13 = vadd.f32 %v365_v2, %v239_v6  ;;  %v242_v17 = vmul.f32 %v364_v0, %v227_v11  ;;  %v228_v18 = vld [vmem:[%s209_s23 + $0x28] sm:$0xff]  ;;  %v255_v19 = vadd.f32 %v365_v2, %v240_v9  ;;  %v265_v20 = vld [vmem:[%s426_s26 + $0x20] sm:$0xff]  ;;  %v229_v22 = vld [vmem:[%s209_s23 + $0x30] sm:$0xff] }
  0x14   : > { %v243_v21 = vmul.f32 %v364_v0, %v228_v18  ;;  %v230_v23 = vld [vmem:[%s209_s23 + $0x38] sm:$0xff]  ;;  %v256_v26 = vadd.f32 %v365_v2, %v241_v15  ;;  %v266_v28 = vld [vmem:[%s426_s26 + $0x28] sm:$0xff]  ;;  %v244_v31 = vmul.f32 %v364_v0, %v229_v22  ;;  %v267_v35 = vld [vmem:[%s426_s26 + $0x30] sm:$0xff] }
  0x15   : > { %v269_v24 = vadd.f32 %v261_v5, %v253_v12  ;;  %v270_v25 = vadd.f32 %v262_v8, %v254_v13  ;;  %v257_v27 = vadd.f32 %v365_v2, %v242_v17  ;;  %v271_v29 = vadd.f32 %v263_v14, %v255_v19  ;;  %v268_v36 = vld [vmem:[%s426_s26 + $0x38] sm:$0xff] }
  0x16   : > { %v258_v30 = vadd.f32 %v365_v2, %v243_v21  ;;  %v245_v32 = vmul.f32 %v364_v0, %v230_v23  ;;  %v272_v33 = vadd.f32 %v264_v16, %v256_v26  ;;  %v259_v38 = vadd.f32 %v365_v2, %v244_v31 }
  0x17   : > { %277 = vst [vmem:[%s438_s5] sm:$0xff] %v269_v24  ;;  %278 = vst [vmem:[%s438_s5 + $0x8] sm:$0xff] %v270_v25  ;;  %v273_v34 = vadd.f32 %v265_v20, %v257_v27 }
  0x18   : > { %279 = vst [vmem:[%s438_s5 + $0x10] sm:$0xff] %v271_v29  ;;  %v274_v37 = vadd.f32 %v266_v28, %v258_v30  ;;  %v260_v39 = vadd.f32 %v365_v2, %v245_v32  ;;  %280 = vst [vmem:[%s438_s5 + $0x18] sm:$0xff] %v272_v33  ;;  %v275_v40 = vadd.f32 %v267_v35, %v259_v38 }
  0x19   : > { %281 = vst [vmem:[%s438_s5 + $0x20] sm:$0xff] %v273_v34 }
  0x1a   : > { %282 = vst [vmem:[%s438_s5 + $0x28] sm:$0xff] %v274_v37  ;;  %v276_v41 = vadd.f32 %v268_v36, %v260_v39  ;;  %283 = vst [vmem:[%s438_s5 + $0x30] sm:$0xff] %v275_v40 }
  0x1c   : > { %284 = vst [vmem:[%s438_s5 + $0x38] sm:$0xff] %v276_v41 }
  0x1d PF: > { %s14_s15 = sadd.s32 1, %s382_s15  }
  0x1e   : > { %p11_p4 = scmp.ge.s32.totalorder %s14_s15, 4  }
  0x20   :  { %13 = sbr.rel (!%p11_p4) target bundleno = 1 (0x1), region = 69 }

// kernel: fwd.11
= control target key start
LH: loop header
LB: loop body
LE: loop exit
PB: predicated region body
PF: predicated region fallthrough
CT: control target
= control target key end

     0   :  { %s2250_s15 = smov 0   ;;  %s2252_s16 = smov 0   ;;  %s2555_s0 = inlined_call_operand.vmem [shape: bf16[128,1152], index: 0, kind: input, shape index: {}]   ;;  %s2556_s1 = inlined_call_operand.vmem [shape: bf16[1152,128], index: 1, kind: input, shape index: {}]   ;;  %s2557_s2 = inlined_call_operand.vmem [shape: f32[128,128], index: 2, kind: output, shape index: {0}]   ;;  %s2558_s3 = inlined_call_operand.vmem [shape: f32[16,128], index: 3, kind: output, shape index: {1}]   ;;  %s2559_s4 = inlined_call_operand.vmem [shape: f32[16,128], index: 4, kind: output, shape index: {2}]  }
   0x1   :  { %s2254_s17 = smov 0  }
   0x2 LB: > { %s34_s18 = sadd.s32 1, %s2219_s16  ;;  %p1723_p0 = scmp.ge.s32.totalorder %s2223_s17, 1  ;;  %s2223_s17 = sphi %s2254_s17, %s15_s17   ;;  %s2219_s16 = sphi %s2252_s16, %s2561_s16   ;;  %s2215_s15 = sphi %s2250_s15, %s2560_s15  }
   0x3   : > { %p36_p1 = scmp.ge.s32.totalorder %s34_s18, 2  ;;  %p217_p2 = scmp.lt.s32.totalorder %s2223_s17, 3 }
   0x5   : > { %s2563_s18 = smov (%p36_p1, %s34_s18), 0  ;;  %p218_p3 = pnand %p1723_p0, %p217_p2 }
   0x6   : > { %v2077_v0 = vld [vmem:[%s2556_s1 + $0x40] sm:$0xff] (!%p218_p3)   ;;  %v2081_v4 = vld [vmem:[%s2556_s1 + $0x48] sm:$0xff] (!%p218_p3)   ;;  %v2085_v8 = vld [vmem:[%s2556_s1 + $0x50] sm:$0xff] (!%p218_p3)   ;;  %s1724_s27 = sshll.u32 (!%p218_p3), %s2215_s15, 3  ;;  %p303_p5 = scmp.lt.s32.totalorder (!%p218_p3), %s2215_s15, 1 }
   0x7   : > { %221 = sbr.rel (%p218_p3) target bundleno = 351 (0x15f), region = 28  ;;  %v2078_v1 = vld [vmem:[%s2556_s1 + $0xc0] sm:$0xff] (!%p218_p3)   ;;  %1840 = vmatprep.subr.bf16.mxu0 (!%p218_p3), %v2077_v0  ;;  %v2082_v5 = vld [vmem:[%s2556_s1 + $0xc8] sm:$0xff] (!%p218_p3)   ;;  %v2086_v9 = vld [vmem:[%s2556_s1 + $0xd0] sm:$0xff] (!%p218_p3)   ;;  %p275_p4 = scmp.lt.s32.totalorder (!%p218_p3), %s1724_s27, 15 }
   0x8   : > { %v2079_v2 = vld [vmem:[%s2556_s1] sm:$0xff] (!%p218_p3)   ;;  %1880 = vmatprep.subr.bf16.mxu1 (!%p218_p3), %v2078_v1  ;;  %v2083_v6 = vld [vmem:[%s2556_s1 + $0x8] sm:$0xff] (!%p218_p3)   ;;  %v2087_v10 = vld [vmem:[%s2556_s1 + $0x10] sm:$0xff] (!%p218_p3)  }
   0x9   : > { %v2080_v3 = vld [vmem:[%s2556_s1 + $0x80] sm:$0xff] (!%p218_p3)   ;;  %1841 = vmatpush3.bf16.msra.mxu0 (!%p218_p3), %v2079_v2  ;;  %v2084_v7 = vld [vmem:[%s2556_s1 + $0x88] sm:$0xff] (!%p218_p3)   ;;  %v2088_v11 = vld [vmem:[%s2556_s1 + $0x90] sm:$0xff] (!%p218_p3)  }
   0xa   : > { %1881 = vmatpush3.bf16.msra.mxu1 (!%p218_p3), %v2080_v3  ;;  %1842 = vmatprep.subr.bf16.mxu0 (!%p218_p3), %v2081_v4  ;;  %v2089_v12 = vld [vmem:[%s2556_s1 + $0x58] sm:$0xff] (!%p218_p3)   ;;  %v2093_v16 = vld [vmem:[%s2556_s1 + $0x60] sm:$0xff] (!%p218_p3)   ;;  %v2097_v20 = vld [vmem:[%s2556_s1 + $0x68] sm:$0xff] (!%p218_p3)  }
   0xb   : > { %1882 = vmatprep.subr.bf16.mxu1 (!%p218_p3), %v2082_v5  ;;  %v2090_v13 = vld [vmem:[%s2556_s1 + $0xd8] sm:$0xff] (!%p218_p3)   ;;  %v2094_v17 = vld [vmem:[%s2556_s1 + $0xe0] sm:$0xff] (!%p218_p3)   ;;  %v2098_v21 = vld [vmem:[%s2556_s1 + $0xe8] sm:$0xff] (!%p218_p3)  }
   0xc   : > { %v2091_v14 = vld [vmem:[%s2556_s1 + $0x18] sm:$0xff] (!%p218_p3)   ;;  %v2095_v18 = vld [vmem:[%s2556_s1 + $0x20] sm:$0xff] (!%p218_p3)   ;;  %v2099_v22 = vld [vmem:[%s2556_s1 + $0x28] sm:$0xff] (!%p218_p3)  }
   0xd   : > { %1843 = vmatpush3.bf16.msra.mxu0 (!%p218_p3), %v2083_v6  ;;  %v2092_v15 = vld [vmem:[%s2556_s1 + $0x98] sm:$0xff] (!%p218_p3)   ;;  %v2096_v19 = vld [vmem:[%s2556_s1 + $0xa0] sm:$0xff] (!%p218_p3)   ;;  %v2100_v23 = vld [vmem:[%s2556_s1 + $0xa8] sm:$0xff] (!%p218_p3)  }
   0xe   : > { %1883 = vmatpush3.bf16.msra.mxu1 %v2084_v7  ;;  %1844 = vmatprep.subr.bf16.mxu0 %v2085_v8  ;;  %s2565_s27 = smov (!%p275_p4, %s1724_s27), 15  ;;  %v2101_v24 = vld [vmem:[%s2556_s1 + $0x70] sm:$0xff]   ;;  %v2105_v28 = vld [vmem:[%s2556_s1 + $0x78] sm:$0xff]   ;;  %v2115_v36 = vld [vmem:[%s2556_s1 + $0x140] sm:$0xff]   ;;  %s2567_s15 = smov (!%p303_p5, %s2215_s15), 1 }
   0xf   : > { %1884 = vmatprep.subr.bf16.mxu1 %v2086_v9  ;;  %v2102_v25 = vld [vmem:[%s2556_s1 + $0xf0] sm:$0xff]   ;;  %s2052_s29 = smul.u32 36, %s2565_s27  ;;  %v2106_v29 = vld [vmem:[%s2556_s1 + $0xf8] sm:$0xff]   ;;  %v2116_v37 = vld [vmem:[%s2556_s1 + $0x1c0] sm:$0xff]  }
  0x10   : > { %v2103_v26 = vld [vmem:[%s2556_s1 + $0x30] sm:$0xff]   ;;  %v2107_v30 = vld [vmem:[%s2556_s1 + $0x38] sm:$0xff]   ;;  %v2117_v38 = vld [vmem:[%s2556_s1 + $0x100] sm:$0xff]  }
  0x11   : > { %1845 = vmatpush3.bf16.msra.mxu0 %v2087_v10  ;;  %v2104_v27 = vld [vmem:[%s2556_s1 + $0xb0] sm:$0xff]   ;;  %s2367_s14 = scalar_lea.vmem %s2555_s0, %s2052_s29  ;;  %v2108_v31 = vld [vmem:[%s2556_s1 + $0xb8] sm:$0xff]   ;;  %v2118_v39 = vld [vmem:[%s2556_s1 + $0x180] sm:$0xff]  }
  0x12   : > { %1885 = vmatpush3.bf16.msra.mxu1 %v2088_v11  ;;  %1846 = vmatprep.subr.bf16.mxu0 %v2089_v12  ;;  %v2109_v32 = vld [vmem:[%s2367_s14] ss:$36 sps:$4 sm:$0xff]   ;;  %v2112_v34 = vld [vmem:[%s2367_s14 + $0x8] ss:$36 sps:$4 sm:$0xff]   ;;  %v2125_v45 = vld [vmem:[%s2367_s14 + $0x54] ss:$36 sps:$4 sm:$0xff]  }
  0x13   : > { %1886 = vmatprep.subr.bf16.mxu1 %v2090_v13  ;;  %v2111_v33 = vld [vmem:[%s2367_s14 + $0x4] ss:$36 sps:$4 sm:$0xff]   ;;  %v2114_v35 = vld [vmem:[%s2367_s14 + $0xc] ss:$36 sps:$4 sm:$0xff]   ;;  %v2133_v52 = vld [vmem:[%s2556_s1 + $0x158] sm:$0xff]  }
  0x14   : > { %1170 = vmatprep.mubr.bf16.mxu0 %v2111_v33  ;;  %1235 = vmatprep.mubr.bf16.mxu1 %v2114_v35  ;;  %v2119_v40 = vld [vmem:[%s2556_s1 + $0x148] sm:$0xff]   ;;  %v2128_v47 = vld [vmem:[%s2367_s14 + $0x50] ss:$36 sps:$4 sm:$0xff]   ;;  %v2134_v53 = vld [vmem:[%s2556_s1 + $0x1d8] sm:$0xff]  }
  0x15   : > { %1847 = vmatpush3.bf16.msra.mxu0 %v2091_v14  ;;  %v2120_v41 = vld [vmem:[%s2556_s1 + $0x1c8] sm:$0xff]   ;;  %v2129_v48 = vld [vmem:[%s2556_s1 + $0x150] sm:$0xff]   ;;  %v2135_v54 = vld [vmem:[%s2556_s1 + $0x118] sm:$0xff]  }
  0x16   : > { %1887 = vmatpush3.bf16.msra.mxu1 %v2092_v15  ;;  %1848 = vmatprep.subr.bf16.mxu0 %v2093_v16  ;;  %v2121_v42 = vld [vmem:[%s2556_s1 + $0x108] sm:$0xff]   ;;  %v2130_v49 = vld [vmem:[%s2556_s1 + $0x1d0] sm:$0xff]   ;;  %v2136_v55 = vld [vmem:[%s2556_s1 + $0x198] sm:$0xff]  }
  0x17   : > { %1888 = vmatprep.subr.bf16.mxu1 %v2094_v17  ;;  %v2122_v43 = vld [vmem:[%s2556_s1 + $0x188] sm:$0xff]   ;;  %v2131_v50 = vld [vmem:[%s2556_s1 + $0x110] sm:$0xff]   ;;  %v2139_v57 = vld [vmem:[%s2367_s14 + $0x9c] ss:$36 sps:$4 sm:$0xff]  }
  0x18   : > { %v2123_v44 = vld [vmem:[%s2367_s14 + $0x4c] ss:$36 sps:$4 sm:$0xff]   ;;  %v2137_v56 = vld [vmem:[%s2367_s14 + $0x94] ss:$36 sps:$4 sm:$0xff]   ;;  %v2143_v60 = vld [vmem:[%s2556_s1 + $0x160] sm:$0xff]  }
  0x19   : > { %1849 = vmatpush3.bf16.msra.mxu0 %v2095_v18  ;;  %v2127_v46 = vld [vmem:[%s2367_s14 + $0x48] ss:$36 sps:$4 sm:$0xff]   ;;  %v2132_v51 = vld [vmem:[%s2556_s1 + $0x190] sm:$0xff]   ;;  %v2142_v59 = vld [vmem:[%s2367_s14 + $0x98] ss:$36 sps:$4 sm:$0xff]  }
  0x1a   : > { %1889 = vmatpush3.bf16.msra.mxu1 %v2096_v19  ;;  %1850 = vmatprep.subr.bf16.mxu0 %v2097_v20  ;;  %v2141_v58 = vld [vmem:[%s2367_s14 + $0x90] ss:$36 sps:$4 sm:$0xff]   ;;  %v2144_v61 = vld [vmem:[%s2556_s1 + $0x1e0] sm:$0xff]   ;;  %v2147_v0 = vld [vmem:[%s2556_s1 + $0x168] sm:$0xff]  }
  0x1b   : > { %1890 = vmatprep.subr.bf16.mxu1 %v2098_v21  ;;  %v2145_v62 = vld [vmem:[%s2556_s1 + $0x120] sm:$0xff]   ;;  %v2148_v1 = vld [vmem:[%s2556_s1 + $0x1e8] sm:$0xff]   ;;  %v2155_v6 = vld [vmem:[%s2367_s14 + $0xd8] ss:$36 sps:$4 sm:$0xff]  }
  0x1c   : > { %v2146_v63 = vld [vmem:[%s2556_s1 + $0x1a0] sm:$0xff]   ;;  %v2149_v2 = vld [vmem:[%s2556_s1 + $0x128] sm:$0xff]   ;;  %v2157_v8 = vld [vmem:[%s2556_s1 + $0x170] sm:$0xff]  }
  0x1d   : > { %1851 = vmatpush3.bf16.msra.mxu0 %v2099_v22  ;;  %v2150_v3 = vld [vmem:[%s2556_s1 + $0x1a8] sm:$0xff]   ;;  %v2151_v4 = vld [vmem:[%s2367_s14 + $0xdc] ss:$36 sps:$4 sm:$0xff]   ;;  %v2158_v9 = vld [vmem:[%s2556_s1 + $0x1f0] sm:$0xff]  }
  0x1e   : > { %1891 = vmatpush3.bf16.msra.mxu1 %v2100_v23  ;;  %1852 = vmatprep.subr.bf16.mxu0 %v2101_v24  ;;  %v2153_v5 = vld [vmem:[%s2367_s14 + $0xe4] ss:$36 sps:$4 sm:$0xff]   ;;  %v2159_v10 = vld [vmem:[%s2556_s1 + $0x130] sm:$0xff]   ;;  %v2161_v12 = vld [vmem:[%s2556_s1 + $0x178] sm:$0xff]  }
  0x1f   : > { %1892 = vmatprep.subr.bf16.mxu1 %v2102_v25  ;;  %v2156_v7 = vld [vmem:[%s2367_s14 + $0xe0] ss:$36 sps:$4 sm:$0xff]   ;;  %v2160_v11 = vld [vmem:[%s2556_s1 + $0x1b0] sm:$0xff]   ;;  %v2162_v13 = vld [vmem:[%s2556_s1 + $0x1f8] sm:$0xff]  }
  0x20   : > { %v2163_v14 = vld [vmem:[%s2556_s1 + $0x138] sm:$0xff]   ;;  %v2165_v16 = vld [vmem:[%s2367_s14 + $0x10] ss:$36 sps:$4 sm:$0xff]   ;;  %v2171_v20 = vld [vmem:[%s2556_s1 + $0x200] sm:$0xff]  }
  0x21   : > { %1853 = vmatpush3.bf16.msra.mxu0 %v2103_v26  ;;  %v2164_v15 = vld [vmem:[%s2556_s1 + $0x1b8] sm:$0xff]   ;;  %v2172_v21 = vld [vmem:[%s2556_s1 + $0x208] sm:$0xff]   ;;  %v2178_v25 = vld [vmem:[%s2367_s14 + $0x60] ss:$36 sps:$4 sm:$0xff]  }
  0x22   : > { %1893 = vmatpush3.bf16.msra.mxu1 %v2104_v27  ;;  %1854 = vmatprep.subr.bf16.mxu0 %v2105_v28  ;;  %v2167_v17 = vld [vmem:[%s2367_s14 + $0x14] ss:$36 sps:$4 sm:$0xff]   ;;  %v2170_v19 = vld [vmem:[%s2367_s14 + $0x1c] ss:$36 sps:$4 sm:$0xff]   ;;  %v2175_v23 = vld [vmem:[%s2367_s14 + $0x64] ss:$36 sps:$4 sm:$0xff]  }
  0x23   : > { %1894 = vmatprep.subr.bf16.mxu1 %v2106_v29  ;;  %v2168_v18 = vld [vmem:[%s2367_s14 + $0x18] ss:$36 sps:$4 sm:$0xff]   ;;  %v2179_v26 = vld [vmem:[%s2556_s1 + $0x210] sm:$0xff]   ;;  %v2181_v27 = vld [vmem:[%s2367_s14 + $0xa4] ss:$36 sps:$4 sm:$0xff]  }
  0x24   : > { %v2173_v22 = vld [vmem:[%s2367_s14 + $0x5c] ss:$36 sps:$4 sm:$0xff]   ;;  %v2183_v28 = vld [vmem:[%s2367_s14 + $0xac] ss:$36 sps:$4 sm:$0xff]  }
  0x25   : > { %1855 = vmatpush3.bf16.msra.mxu0 %v2107_v30  ;;  %v2177_v24 = vld [vmem:[%s2367_s14 + $0x58] ss:$36 sps:$4 sm:$0xff]   ;;  %v2185_v30 = vld [vmem:[%s2367_s14 + $0xa0] ss:$36 sps:$4 sm:$0xff]   ;;  %v2189_v33 = vld [vmem:[%s2367_s14 + $0xec] ss:$36 sps:$4 sm:$0xff]  }
  0x26   : > { %1895 = vmatpush3.bf16.msra.mxu1 %v2108_v31  ;;  %1920 = vmatprep.subr.bf16.mxu0 %v2115_v36  ;;  %v2180_v29 = vld [vmem:[%s2556_s1 + $0x218] sm:$0xff]   ;;  %v2186_v31 = vld [vmem:[%s2367_s14 + $0xa8] ss:$36 sps:$4 sm:$0xff]  }
  0x27   : > { %1960 = vmatprep.subr.bf16.mxu1 %v2116_v37  ;;  %v2188_v35 = vld [vmem:[%s2556_s1 + $0x228] sm:$0xff]   ;;  %v2195_v37 = vld [vmem:[%s2556_s1 + $0x230] sm:$0xff]  }
  0x28   : > { %1171 = vmatmul.mubr.bf16.vlgmr.msra.gmra.mrb[0].mxu0 %v2109_v32  ;;  %v2187_v32 = vld [vmem:[%s2556_s1 + $0x220] sm:$0xff]   ;;  %v2193_v36 = vld [vmem:[%s2367_s14 + $0xe8] ss:$36 sps:$4 sm:$0xff]  }
  0x29   : > { %1236 = vmatmul.mubr.bf16.vlgmr.msra.gmra.mrb[0].mxu1 %v2112_v34  ;;  %1921 = vmatpush3.bf16.msra.mxu0 %v2117_v38  ;;  %v2191_v34 = vld [vmem:[%s2367_s14 + $0xf4] ss:$36 sps:$4 sm:$0xff]  }
  0x2a   : > { %1961 = vmatpush3.bf16.msra.mxu1 %v2118_v39  ;;  %1922 = vmatprep.subr.bf16.mxu0 %v2119_v40  ;;  %v2194_v38 = vld [vmem:[%s2367_s14 + $0xf0] ss:$36 sps:$4 sm:$0xff]   ;;  %v2197_v39 = vld [vmem:[%s2367_s14 + $0x20] ss:$36 sps:$4 sm:$0xff]  }
  0x2b   : > { %1962 = vmatprep.subr.bf16.mxu1 %v2120_v41  ;;  %1178 = vmatprep.mubr.bf16.mxu0 %v2123_v44  ;;  %v2198_v40 = vld [vmem:[%s2367_s14 + $0xb0] ss:$36 sps:$4 sm:$0xff]   ;;  %v2196_v41 = vld [vmem:[%s2556_s1 + $0x238] sm:$0xff]  }
  0x2c   : > { %1243 = vmatprep.mubr.bf16.mxu1 %v2125_v45 }
  0x2d   : > { %1923 = vmatpush3.bf16.msra.mxu0 %v2121_v42  ;;  %v2199_v42 = vld [vmem:[%s2367_s14 + $0x68] ss:$36 sps:$4 sm:$0xff]  }
  0x2e   : > { %1963 = vmatpush3.bf16.msra.mxu1 %v2122_v43  ;;  %1924 = vmatprep.subr.bf16.mxu0 %v2129_v48  ;;  %v2200_v43 = vld [vmem:[%s2367_s14 + $0xf8] ss:$36 sps:$4 sm:$0xff]   ;;  %s1727_s14 = sshll.u32 %s2565_s27, 3  ;;  %s1728_s27 = sshll.u32 %s2567_s15, 3 }
  0x2f   : > { %1964 = vmatprep.subr.bf16.mxu1 %v2130_v49  ;;  %s301_s25 = scalar_lea.vmem %s2557_s2, %s1727_s14  ;;  %s309_s29 = scalar_lea.vmem %s2558_s3, %s1728_s27 }
  0x30   : > { %1179 = vmatmul.mubr.bf16.gmra.mrb[4].mxu0 %v2127_v46  ;;  %s316_s6 = scalar_lea.vmem %s2559_s4, %s1728_s27 }
  0x31   : > { %1244 = vmatmul.mubr.bf16.gmra.mrb[4].mxu1 %v2128_v47  ;;  %1925 = vmatpush3.bf16.msra.mxu0 %v2131_v50 }
  0x32   : > { %1965 = vmatpush3.bf16.msra.mxu1 %v2132_v51  ;;  %1926 = vmatprep.subr.bf16.mxu0 %v2133_v52 }
  0x33   : > { %1966 = vmatprep.subr.bf16.mxu1 %v2134_v53  ;;  %1186 = vmatprep.mubr.bf16.mxu0 %v2137_v56 }
  0x34   : > { %1251 = vmatprep.mubr.bf16.mxu1 %v2139_v57 }
  0x35   : > { %1927 = vmatpush3.bf16.msra.mxu0 %v2135_v54 }
  0x36   : > { %1967 = vmatpush3.bf16.msra.mxu1 %v2136_v55  ;;  %1928 = vmatprep.subr.bf16.mxu0 %v2143_v60 }
  0x37   : > { %1968 = vmatprep.subr.bf16.mxu1 %v2144_v61 }
  0x38   : > { %1187 = vmatmul.mubr.bf16.gmra.mrb[8].mxu0 %v2141_v58 }
  0x39   : > { %1252 = vmatmul.mubr.bf16.gmra.mrb[8].mxu1 %v2142_v59  ;;  %1929 = vmatpush3.bf16.msra.mxu0 %v2145_v62 }
  0x3a   : > { %1969 = vmatpush3.bf16.msra.mxu1 %v2146_v63  ;;  %1930 = vmatprep.subr.bf16.mxu0 %v2147_v0 }
  0x3b   : > { %1970 = vmatprep.subr.bf16.mxu1 %v2148_v1  ;;  %1194 = vmatprep.mubr.bf16.mxu0 %v2151_v4 }
  0x3c   : > { %1259 = vmatprep.mubr.bf16.mxu1 %v2153_v5 }
  0x3d   : > { %1931 = vmatpush3.bf16.msra.mxu0 %v2149_v2 }
  0x3e   : > { %1971 = vmatpush3.bf16.msra.mxu1 %v2150_v3  ;;  %1932 = vmatprep.subr.bf16.mxu0 %v2157_v8 }
  0x3f   : > { %1972 = vmatprep.subr.bf16.mxu1 %v2158_v9 }
  0x40   : > { %1195 = vmatmul.mubr.bf16.gmra.mrb[12].mxu0 %v2155_v6 }
  0x41   : > { %1260 = vmatmul.mubr.bf16.gmra.mrb[12].mxu1 %v2156_v7  ;;  %1933 = vmatpush3.bf16.msra.mxu0 %v2159_v10 }
  0x42   : > { %1973 = vmatpush3.bf16.msra.mxu1 %v2160_v11  ;;  %1934 = vmatprep.subr.bf16.mxu0 %v2161_v12 }
  0x43   : > { %1974 = vmatprep.subr.bf16.mxu1 %v2162_v13  ;;  %1300 = vmatprep.mubr.bf16.mxu0 %v2167_v17 }
  0x44   : > { %1365 = vmatprep.mubr.bf16.mxu1 %v2170_v19 }
  0x45   : > { %1935 = vmatpush3.bf16.msra.mxu0 %v2163_v14 }
  0x46   : > { %1975 = vmatpush3.bf16.msra.mxu1 %v2164_v15  ;;  %2012 = vmatprep.subr.bf16.mxu0 %v2171_v20 }
  0x47   : > { %2036 = vmatprep.subr.bf16.mxu1 %v2171_v20 }
  0x48   : > { %1301 = vmatmul.mubr.bf16.vlgmr.msra.gmra.mrb[16].mxu0 %v2165_v16 }
  0x49   : > { %1366 = vmatmul.mubr.bf16.vlgmr.msra.gmra.mrb[16].mxu1 %v2168_v18  ;;  %2013 = vmatpush3.bf16.msra.mxu0 %v2171_v20 }
  0x4a   : > { %2044 = vmatpush3.bf16.msra.mxu1 %v2171_v20  ;;  %2014 = vmatprep.subr.bf16.mxu0 %v2172_v21 }
  0x4b   : > { %2037 = vmatprep.subr.bf16.mxu1 %v2172_v21  ;;  %1308 = vmatprep.mubr.bf16.mxu0 %v2173_v22 }
  0x4c   : > { %1373 = vmatprep.mubr.bf16.mxu1 %v2175_v23 }
  0x4d   : > { %2015 = vmatpush3.bf16.msra.mxu0 %v2172_v21 }
  0x4e   : > { %2045 = vmatpush3.bf16.msra.mxu1 %v2172_v21  ;;  %2016 = vmatprep.subr.bf16.mxu0 %v2179_v26 }
  0x4f   : > { %2038 = vmatprep.subr.bf16.mxu1 %v2179_v26 }
  0x50   : > { %1309 = vmatmul.mubr.bf16.gmra.mrb[20].mxu0 %v2177_v24 }
  0x51   : > { %1374 = vmatmul.mubr.bf16.gmra.mrb[20].mxu1 %v2178_v25  ;;  %1316 = vmatprep.mubr.bf16.mxu0 %v2181_v27 }
  0x52   : > { %2017 = vmatpush3.bf16.msra.mxu0 %v2179_v26  ;;  %1381 = vmatprep.mubr.bf16.mxu1 %v2183_v28 }
  0x53   : > { %2046 = vmatpush3.bf16.msra.mxu1 %v2179_v26  ;;  %2018 = vmatprep.subr.bf16.mxu0 %v2180_v29 }
  0x54   : > { %2039 = vmatprep.subr.bf16.mxu1 %v2180_v29 }
  0x56   : > { %2019 = vmatpush3.bf16.msra.mxu0 %v2180_v29 }
  0x57   : > { %2047 = vmatpush3.bf16.msra.mxu1 %v2180_v29  ;;  %2020 = vmatprep.subr.bf16.mxu0 %v2187_v32 }
  0x58   : > { %1317 = vmatmul.mubr.bf16.gmra.mrb[24].mxu0 %v2185_v30  ;;  %2040 = vmatprep.subr.bf16.mxu1 %v2187_v32 }
  0x59   : > { %1382 = vmatmul.mubr.bf16.gmra.mrb[24].mxu1 %v2186_v31  ;;  %1324 = vmatprep.mubr.bf16.mxu0 %v2189_v33 }
  0x5a   : > { %2021 = vmatpush3.bf16.msra.mxu0 %v2187_v32  ;;  %1389 = vmatprep.mubr.bf16.mxu1 %v2191_v34 }
  0x5b   : > { %2048 = vmatpush3.bf16.msra.mxu1 %v2187_v32  ;;  %2022 = vmatprep.subr.bf16.mxu0 %v2188_v35 }
  0x5c   : > { %2041 = vmatprep.subr.bf16.mxu1 %v2188_v35 }
  0x5e   : > { %2023 = vmatpush3.bf16.msra.mxu0 %v2188_v35 }
  0x5f   : > { %2049 = vmatpush3.bf16.msra.mxu1 %v2188_v35  ;;  %2024 = vmatprep.subr.bf16.mxu0 %v2195_v37 }
  0x60   : > { %1325 = vmatmul.mubr.bf16.gmra.mrb[28].mxu0 %v2193_v36  ;;  %2042 = vmatprep.subr.bf16.mxu1 %v2195_v37 }
  0x61   : > { %1390 = vmatmul.mubr.bf16.gmra.mrb[28].mxu1 %v2194_v38  ;;  %2028 = vmatprep.mubr.bf16.mxu0 %v2197_v39 }
  0x62   : > { %2025 = vmatpush3.bf16.msra.mxu0 %v2195_v37  ;;  %2032 = vmatprep.mubr.bf16.mxu1 %v2198_v40 }
  0x63   : > { %2050 = vmatpush3.bf16.msra.mxu1 %v2195_v37  ;;  %2026 = vmatprep.subr.bf16.mxu0 %v2196_v41 }
  0x64   : > { %2043 = vmatprep.subr.bf16.mxu1 %v2196_v41 }
  0x66   : > { %2027 = vmatpush3.bf16.msra.mxu0 %v2196_v41 }
  0x67   : > { %2051 = vmatpush3.bf16.msra.mxu1 %v2196_v41 }
  0x69   : > { %2029 = vmatmul.mubr.bf16.vlgmr.msra.gmra.mrb[32].mxu0 %v2199_v42 }
  0x6a   : > { %2033 = vmatmul.mubr.bf16.vlgmr.msra.gmra.mrb[32].mxu1 %v2200_v43 }
  0xfb   : > { %v1856_v44 = vpop.f32.mrb[0].mxu0 }
  0xfc   : > { %v1896_v45 = vpop.f32.mrb[0].mxu1  ;;  %v1857_v46 = vpop.f32.mrb[1].mxu0 }
  0xfd   : > { %v1858_v47 = vadd.f32 %v1857_v46, %v1856_v44  ;;  %v1897_v48 = vpop.f32.mrb[1].mxu1  ;;  %v1859_v49 = vpop.f32.mrb[2].mxu0 }
  0xfe   : > { %v1898_v50 = vadd.f32 %v1897_v48, %v1896_v45  ;;  %v1899_v51 = vpop.f32.mrb[2].mxu1  ;;  %v1860_v52 = vpop.f32.mrb[3].mxu0 }
  0xff   : > { %v1861_v53 = vadd.f32 %v1860_v52, %v1859_v49  ;;  %v1900_v54 = vpop.f32.mrb[3].mxu1 }
 0x100   : > { %v1238_v55 = vadd.f32 %v1898_v50, %v1858_v47  ;;  %v1901_v56 = vadd.f32 %v1900_v54, %v1899_v51 }
 0x102   : > { %v1241_v57 = vadd.f32 %v1901_v56, %v1861_v53 }
 0x103   : > { %v1862_v58 = vpop.f32.mrb[4].mxu0 }
 0x104   : > { %v1902_v59 = vpop.f32.mrb[4].mxu1  ;;  %v1863_v60 = vpop.f32.mrb[5].mxu0 }
 0x105   : > { %v1864_v61 = vadd.f32 %v1863_v60, %v1862_v58  ;;  %v1903_v62 = vpop.f32.mrb[5].mxu1  ;;  %v1865_v63 = vpop.f32.mrb[6].mxu0 }
 0x106   : > { %v1904_v0 = vadd.f32 %v1903_v62, %v1902_v59  ;;  %v1905_v1 = vpop.f32.mrb[6].mxu1  ;;  %v1866_v2 = vpop.f32.mrb[7].mxu0 }
 0x107   : > { %v1867_v3 = vadd.f32 %v1866_v2, %v1865_v63  ;;  %v1906_v4 = vpop.f32.mrb[7].mxu1 }
 0x108   : > { %v1246_v5 = vadd.f32 %v1904_v0, %v1864_v61  ;;  %v1907_v6 = vadd.f32 %v1906_v4, %v1905_v1 }
 0x10a   : > { %v1249_v7 = vadd.f32 %v1907_v6, %v1867_v3 }
 0x10b   : > { %v1868_v8 = vpop.f32.mrb[8].mxu0 }
 0x10c   : > { %v1908_v9 = vpop.f32.mrb[8].mxu1  ;;  %v1869_v10 = vpop.f32.mrb[9].mxu0 }
 0x10d   : > { %v1870_v11 = vadd.f32 %v1869_v10, %v1868_v8  ;;  %v1909_v12 = vpop.f32.mrb[9].mxu1  ;;  %v1871_v13 = vpop.f32.mrb[10].mxu0 }
 0x10e   : > { %v1910_v14 = vadd.f32 %v1909_v12, %v1908_v9  ;;  %v1911_v15 = vpop.f32.mrb[10].mxu1  ;;  %v1872_v16 = vpop.f32.mrb[11].mxu0 }
 0x10f   : > { %v1873_v17 = vadd.f32 %v1872_v16, %v1871_v13  ;;  %v1912_v18 = vpop.f32.mrb[11].mxu1 }
 0x110   : > { %v1254_v19 = vadd.f32 %v1910_v14, %v1870_v11  ;;  %v1913_v20 = vadd.f32 %v1912_v18, %v1911_v15 }
 0x112   : > { %v1257_v21 = vadd.f32 %v1913_v20, %v1873_v17 }
 0x113   : > { %v1874_v22 = vpop.f32.mrb[12].mxu0 }
 0x114   : > { %v1914_v23 = vpop.f32.mrb[12].mxu1  ;;  %v1875_v24 = vpop.f32.mrb[13].mxu0 }
 0x115   : > { %v1915_v25 = vpop.f32.mrb[13].mxu1  ;;  %v1876_v26 = vadd.f32 %v1875_v24, %v1874_v22  ;;  %v1877_v28 = vpop.f32.mrb[14].mxu0 }
 0x116   : > { %v1916_v27 = vadd.f32 %v1915_v25, %v1914_v23  ;;  %v1917_v29 = vpop.f32.mrb[14].mxu1  ;;  %v1878_v30 = vpop.f32.mrb[15].mxu0 }
 0x117   : > { %v1918_v31 = vpop.f32.mrb[15].mxu1  ;;  %v1879_v33 = vadd.f32 %v1878_v30, %v1877_v28 }
 0x118   : > { %v1262_v32 = vadd.f32 %v1916_v27, %v1876_v26  ;;  %v1919_v34 = vadd.f32 %v1918_v31, %v1917_v29 }
 0x11a   : > { %v1265_v35 = vadd.f32 %v1919_v34, %v1879_v33 }
 0x11b   : > { %v1936_v36 = vpop.f32.mrb[16].mxu0 }
 0x11c   : > { %v1937_v37 = vpop.f32.mrb[17].mxu0  ;;  %v1976_v40 = vpop.f32.mrb[16].mxu1 }
 0x11d   : > { %v1938_v38 = vadd.f32 %v1937_v37, %v1936_v36  ;;  %v1939_v39 = vpop.f32.mrb[18].mxu0  ;;  %v1977_v42 = vpop.f32.mrb[17].mxu1 }
 0x11e   : > { %v1940_v41 = vpop.f32.mrb[19].mxu0  ;;  %v1978_v45 = vadd.f32 %v1977_v42, %v1976_v40  ;;  %v1979_v46 = vpop.f32.mrb[18].mxu1 }
 0x11f   : > { %v1303_v43 = vadd.f32 %v1938_v38, %v1238_v55  ;;  %v1941_v44 = vadd.f32 %v1940_v41, %v1939_v39  ;;  %v1980_v47 = vpop.f32.mrb[19].mxu1 }
 0x120   : > { %v1981_v49 = vadd.f32 %v1980_v47, %v1979_v46 }
 0x121   : > { %v1306_v48 = vadd.f32 %v1941_v44, %v1241_v57  ;;  %v1368_v50 = vadd.f32 %v1978_v45, %v1303_v43 }
 0x123   : > { %v1942_v51 = vpop.f32.mrb[20].mxu0  ;;  %v2531_v52 = vadd.f32 %v1981_v49, %v1306_v48 }
 0x124   : > { %v1943_v53 = vpop.f32.mrb[21].mxu0  ;;  %v1982_v58 = vpop.f32.mrb[20].mxu1 }
 0x125   : > { %v1944_v54 = vadd.f32 %v1943_v53, %v1942_v51  ;;  %v1945_v56 = vpop.f32.mrb[22].mxu0  ;;  %v1983_v60 = vpop.f32.mrb[21].mxu1 }
 0x126   : > { %v1946_v59 = vpop.f32.mrb[23].mxu0  ;;  %v1984_v63 = vadd.f32 %v1983_v60, %v1982_v58  ;;  %v1985_v55 = vpop.f32.mrb[22].mxu1 }
 0x127   : > { %v1311_v61 = vadd.f32 %v1944_v54, %v1246_v5  ;;  %v1947_v62 = vadd.f32 %v1946_v59, %v1945_v56  ;;  %v1986_v0 = vpop.f32.mrb[23].mxu1 }
 0x128   : > { %v1987_v2 = vadd.f32 %v1986_v0, %v1985_v55 }
 0x129   : > { %v1314_v1 = vadd.f32 %v1947_v62, %v1249_v7  ;;  %v1376_v3 = vadd.f32 %v1984_v63, %v1311_v61 }
 0x12b   : > { %v1948_v57 = vpop.f32.mrb[24].mxu0  ;;  %v1379_v4 = vadd.f32 %v1987_v2, %v1314_v1 }
 0x12c   : > { %v1949_v6 = vpop.f32.mrb[25].mxu0  ;;  %v1988_v10 = vpop.f32.mrb[24].mxu1 }
 0x12d   : > { %v1950_v8 = vadd.f32 %v1949_v6, %v1948_v57  ;;  %v1951_v9 = vpop.f32.mrb[26].mxu0  ;;  %v1989_v12 = vpop.f32.mrb[25].mxu1 }
 0x12e   : > { %v1952_v11 = vpop.f32.mrb[27].mxu0  ;;  %v1990_v15 = vadd.f32 %v1989_v12, %v1988_v10  ;;  %v1991_v16 = vpop.f32.mrb[26].mxu1 }
 0x12f   : > { %v1319_v13 = vadd.f32 %v1950_v8, %v1254_v19  ;;  %v1953_v14 = vadd.f32 %v1952_v11, %v1951_v9  ;;  %v1992_v5 = vpop.f32.mrb[27].mxu1 }
 0x130   : > { %v1993_v18 = vadd.f32 %v1992_v5, %v1991_v16 }
 0x131   : > { %v1322_v17 = vadd.f32 %v1953_v14, %v1257_v21  ;;  %v1384_v20 = vadd.f32 %v1990_v15, %v1319_v13 }
 0x133   : > { %v1954_v22 = vpop.f32.mrb[28].mxu0  ;;  %v1387_v7 = vadd.f32 %v1993_v18, %v1322_v17 }
 0x134   : > { %v1955_v23 = vpop.f32.mrb[29].mxu0  ;;  %v1994_v26 = vpop.f32.mrb[28].mxu1 }
 0x135   : > { %v1956_v24 = vadd.f32 %v1955_v23, %v1954_v22  ;;  %v1957_v25 = vpop.f32.mrb[30].mxu0  ;;  %v1995_v28 = vpop.f32.mrb[29].mxu1 }
 0x136   : > { %v1958_v27 = vpop.f32.mrb[31].mxu0  ;;  %v1996_v31 = vadd.f32 %v1995_v28, %v1994_v26  ;;  %v1997_v19 = vpop.f32.mrb[30].mxu1 }
 0x137   : > { %v1327_v29 = vadd.f32 %v1956_v24, %v1262_v32  ;;  %v1959_v30 = vadd.f32 %v1958_v27, %v1957_v25  ;;  %v1998_v33 = vpop.f32.mrb[31].mxu1 }
 0x138   : > { %v1999_v36 = vadd.f32 %v1998_v33, %v1997_v19 }
 0x139   : > { %v1330_v34 = vadd.f32 %v1959_v30, %v1265_v35  ;;  %v1392_v37 = vadd.f32 %v1996_v31, %v1327_v29 }
 0x13b   : > { %v1395_v21 = vadd.f32 %v1999_v36, %v1330_v34 }
 0x13c   : > { %v2030_v38 = vpop.f32.mrb[32].mxu0 }
 0x13d   : > { %v1441_v39 = vadd.f32 %v2030_v38, %v1376_v3  ;;  %v2034_v40 = vpop.f32.mrb[32].mxu1  ;;  %v1432_v41 = vpop.f32.mrb[33].mxu0 }
 0x13e   : > { %v1457_v42 = vadd.f32 %v2034_v40, %v1392_v37  ;;  %v1433_v43 = vadd.f32 %v1432_v41, %v1368_v50  ;;  %v1448_v32 = vpop.f32.mrb[33].mxu1  ;;  %v2031_v44 = vpop.f32.mrb[34].mxu0 }
 0x13f   : > { %1492 = vst [vmem:[%s301_s25 + $0x10] sm:$0xff] %v1441_v39  ;;  %v1449_v45 = vadd.f32 %v1448_v32, %v1384_v20  ;;  %v1444_v46 = vadd.f32 %v2031_v44, %v1379_v4  ;;  %v2035_v35 = vpop.f32.mrb[34].mxu1  ;;  %v1435_v47 = vpop.f32.mrb[35].mxu0  ;;  %v1513_v58 = vmul.f32 %v1441_v39, %v1441_v39 }
 0x140   : > { %1496 = vst [vmem:[%s301_s25 + $0x30] sm:$0xff] %v1457_v42  ;;  %1490 = vst [vmem:[%s301_s25] sm:$0xff] %v1433_v43  ;;  %v1460_v48 = vadd.f32 %v2035_v35, %v1395_v21  ;;  %v1436_v49 = vadd.f32 %v1435_v47, %v2531_v52  ;;  %v1451_v51 = vpop.f32.mrb[35].mxu1  ;;  %v1511_v54 = vmul.f32 %v1433_v43, %v1433_v43 }
 0x141   : > { %1494 = vst [vmem:[%s301_s25 + $0x20] sm:$0xff] %v1449_v45  ;;  %1493 = vst [vmem:[%s301_s25 + $0x18] sm:$0xff] %v1444_v46  ;;  %v1452_v53 = vadd.f32 %v1451_v51, %v1387_v7  ;;  %v1514_v61 = vmul.f32 %v1444_v46, %v1444_v46  ;;  %v1515_v55 = vmul.f32 %v1449_v45, %v1449_v45 }
 0x142   : > { %1497 = vst [vmem:[%s301_s25 + $0x38] sm:$0xff] %v1460_v48  ;;  %1491 = vst [vmem:[%s301_s25 + $0x8] sm:$0xff] %v1436_v49  ;;  %v1498_v50 = vadd.f32 %v1436_v49, %v1433_v43  ;;  %v1512_v56 = vmul.f32 %v1436_v49, %v1436_v49  ;;  %v1517_v57 = vmul.f32 %v1457_v42, %v1457_v42 }
 0x143   : > { %1495 = vst [vmem:[%s301_s25 + $0x28] sm:$0xff] %v1452_v53  ;;  %v1516_v2 = vmul.f32 %v1452_v53, %v1452_v53  ;;  %v1518_v8 = vmul.f32 %v1460_v48, %v1460_v48 }
 0x144   : > { %v1499_v59 = vadd.f32 %v1498_v50, %v1441_v39  ;;  %v1519_v60 = vadd.f32 %v1512_v56, %v1511_v54 }
 0x146   : > { %v1520_v62 = vadd.f32 %v1519_v60, %v1513_v58  ;;  %v1500_v63 = vadd.f32 %v1499_v59, %v1444_v46 }
 0x148   : > { %v1501_v52 = vadd.f32 %v1500_v63, %v1449_v45  ;;  %v1521_v0 = vadd.f32 %v1520_v62, %v1514_v61 }
 0x14a   : > { %v1502_v1 = vadd.f32 %v1501_v52, %v1452_v53  ;;  %v1522_v3 = vadd.f32 %v1521_v0, %v1515_v55 }
 0x14c   : > { %v1503_v4 = vadd.f32 %v1502_v1, %v1457_v42  ;;  %v1523_v6 = vadd.f32 %v1522_v3, %v1516_v2 }
 0x14e   : > { %v1504_v9 = vadd.f32 %v1503_v4, %v1460_v48  ;;  %v1524_v10 = vadd.f32 %v1523_v6, %v1517_v57 }
 0x150   : > { %v1505_v11 = vrot.slane %v1504_v9, 4  ;;  %v1525_v12 = vadd.f32 %v1524_v10, %v1518_v8 }
 0x152   : > { %v1506_v13 = vadd.f32 %v1505_v11, %v1504_v9  ;;  %v1526_v14 = vrot.slane %v1525_v12, 4 }
 0x154   : > { %v1507_v15 = vrot.slane %v1506_v13, 2  ;;  %v1527_v16 = vadd.f32 %v1526_v14, %v1525_v12 }
 0x156   : > { %v1508_v5 = vadd.f32 %v1507_v15, %v1506_v13  ;;  %v1528_v17 = vrot.slane %v1527_v16, 2 }
 0x158   : > { %v1509_v18 = vrot.slane %v1508_v5, 1  ;;  %v1529_v20 = vadd.f32 %v1528_v17, %v1527_v16 }
 0x15a   : > { %v1510_v22 = vadd.f32 %v1509_v18, %v1508_v5  ;;  %v1530_v7 = vrot.slane %v1529_v20, 1 }
 0x15c   : > { %v1531_v23 = vadd.f32 %v1530_v7, %v1529_v20  ;;  %1532 = vst [vmem:[%s309_s29] sm:$0xff] %v1510_v22 }
 0x15e   : > { %1533 = vst [vmem:[%s316_s6] sm:$0xff] %v1531_v23 }
 0x15f PF: > { %s15_s17 = sadd.s32 1, %s2223_s17   ;;  %s2560_s15 = smov %s2219_s16 }
 0x160   : > { %p12_p6 = scmp.ge.s32.totalorder %s15_s17, 4   ;;  %s2561_s16 = smov %s2563_s18 }
 0x162   :  { %14 = sbr.rel (!%p12_p6) target bundleno = 2 (0x2), region = 93 }

// kernel: fwd.15
= control target key start
LH: loop header
LB: loop body
LE: loop exit
PB: predicated region body
PF: predicated region fallthrough
CT: control target
= control target key end

     0   :  { %s1323_s12 = smov 0   ;;  %s1325_s13 = smov 0   ;;  %s1465_s0 = inlined_call_operand.vmem [shape: bf16[4,128,512], index: 0, kind: input, shape index: {}]   ;;  %s1466_s1 = inlined_call_operand.vmem [shape: bf16[4,512,128], index: 1, kind: input, shape index: {}]   ;;  %s1467_s2 = inlined_call_operand.vmem [shape: f32[4,1,128], index: 2, kind: input, shape index: {}]   ;;  %s1468_s3 = inlined_call_operand.vmem [shape: f32[4,128,128], index: 3, kind: output, shape index: {}]  }
   0x1   :  { %s1327_s14 = smov 0   ;;  %s1329_s15 = smov 0  }
   0x2   :  { %s1331_s16 = smov 0  }
   0x3 LB: > { %s35_s17 = sadd.s32 1, %s1293_s14  ;;  %s39_s18 = sadd.s32 1, %s1297_s15  ;;  %s1301_s16 = sphi %s1331_s16, %s13_s16   ;;  %s1297_s15 = sphi %s1329_s15, %s1472_s15   ;;  %s1293_s14 = sphi %s1327_s14, %s1471_s14   ;;  %s1289_s13 = sphi %s1325_s13, %s1470_s13   ;;  %s1285_s12 = sphi %s1323_s12, %s1469_s12  }
   0x4   : > { %p37_p0 = scmp.ge.s32.totalorder %s35_s17, 2  ;;  %p1025_p1 = scmp.ge.s32.totalorder %s1301_s16, 1 }
   0x5   : > { %p217_p2 = scmp.lt.s32.totalorder %s1301_s16, 9 }
   0x6   : > { %s1474_s17 = smov (%p37_p0, %s35_s17), 0  ;;  %s1476_s18 = smov (!%p37_p0, %s39_s18), %s1297_s15 }
   0x7   : > { %p218_p3 = pnand %p1025_p1, %p217_p2  ;;  %p41_p4 = scmp.ge.s32.totalorder %s1476_s18, 4 }
   0x8   : > { %p277_p5 = scmp.lt.s32.totalorder (!%p218_p3), %s1289_s13, 3  ;;  %s1026_s23 = sshll.u32 (!%p218_p3), %s1285_s12, 3 }
   0x9   : > { %s1478_s18 = smov (%p41_p4, %s1476_s18), 0  ;;  %221 = sbr.rel (%p218_p3) target bundleno = 300 (0x12c), region = 32 }
   0xa   : > { %p279_p6 = scmp.lt.s32.totalorder (!%p218_p3), %s1026_s23, 15 }
  0x10   : > { %s1480_s13 = smov (!%p277_p5, %s1289_s13), 3  ;;  %s1482_s23 = smov (!%p279_p6, %s1026_s23), 15 }
  0x11   : > { %s1086_s19 = sshll.u32 %s1480_s13, 8  ;;  %s1028_s24 = sshll.u32 %s1480_s13, 6 }
  0x12   : > { %s1361_s22 = scalar_lea.vmem %s1466_s1, %s1086_s19  ;;  %s1027_s25 = sshll.u32 %s1482_s23, 2 }
  0x13   : > { %v1207_v0 = vld [vmem:[%s1361_s22 + $0x40] sm:$0xff]   ;;  %v1211_v4 = vld [vmem:[%s1361_s22 + $0x48] sm:$0xff]   ;;  %v1215_v8 = vld [vmem:[%s1361_s22 + $0x50] sm:$0xff]   ;;  %s286_s26 = sadd.s32 %s1028_s24, %s1027_s25  ;;  %s1033_s4 = sshll.u32 %s1480_s13, 4 }
  0x14   : > { %v1208_v1 = vld [vmem:[%s1361_s22 + $0xc0] sm:$0xff]   ;;  %1087 = vmatprep.subr.bf16.mxu0 %v1207_v0  ;;  %v1212_v5 = vld [vmem:[%s1361_s22 + $0xc8] sm:$0xff]   ;;  %v1216_v9 = vld [vmem:[%s1361_s22 + $0xd0] sm:$0xff]   ;;  %s1029_s27 = sshll.u32 %s286_s26, 2  ;;  %s319_s5 = sadd.s32 %s1033_s4, %s1482_s23 }
  0x15   : > { %v1209_v2 = vld [vmem:[%s1361_s22] sm:$0xff]   ;;  %1127 = vmatprep.subr.bf16.mxu1 %v1208_v1  ;;  %v1213_v6 = vld [vmem:[%s1361_s22 + $0x8] sm:$0xff]   ;;  %v1217_v10 = vld [vmem:[%s1361_s22 + $0x10] sm:$0xff]   ;;  %s1401_s30 = scalar_lea.vmem %s1465_s0, %s1029_s27  ;;  %s309_s8 = scalar_lea.vmem %s1467_s2, %s1480_s13 }
  0x16   : > { %v1210_v3 = vld [vmem:[%s1361_s22 + $0x80] sm:$0xff]   ;;  %1088 = vmatpush3.bf16.msra.mxu0 %v1209_v2  ;;  %v1214_v7 = vld [vmem:[%s1361_s22 + $0x88] sm:$0xff]   ;;  %v1218_v11 = vld [vmem:[%s1361_s22 + $0x90] sm:$0xff]   ;;  %s1034_s9 = sshll.u32 %s319_s5, 3 }
  0x17   : > { %1128 = vmatpush3.bf16.msra.mxu1 %v1210_v3  ;;  %1089 = vmatprep.subr.bf16.mxu0 %v1211_v4  ;;  %v1219_v12 = vld [vmem:[%s1361_s22 + $0x58] sm:$0xff]   ;;  %v1223_v16 = vld [vmem:[%s1361_s22 + $0x60] sm:$0xff]   ;;  %v1227_v20 = vld [vmem:[%s1361_s22 + $0x68] sm:$0xff]   ;;  %s1432_s12 = scalar_lea.vmem %s1468_s3, %s1034_s9 }
  0x18   : > { %1129 = vmatprep.subr.bf16.mxu1 %v1212_v5  ;;  %v1220_v13 = vld [vmem:[%s1361_s22 + $0xd8] sm:$0xff]   ;;  %v1224_v17 = vld [vmem:[%s1361_s22 + $0xe0] sm:$0xff]   ;;  %v1228_v21 = vld [vmem:[%s1361_s22 + $0xe8] sm:$0xff]  }
  0x19   : > { %v1221_v14 = vld [vmem:[%s1361_s22 + $0x18] sm:$0xff]   ;;  %v1225_v18 = vld [vmem:[%s1361_s22 + $0x20] sm:$0xff]   ;;  %v1229_v22 = vld [vmem:[%s1361_s22 + $0x28] sm:$0xff]  }
  0x1a   : > { %1090 = vmatpush3.bf16.msra.mxu0 %v1213_v6  ;;  %v1222_v15 = vld [vmem:[%s1361_s22 + $0x98] sm:$0xff]   ;;  %v1226_v19 = vld [vmem:[%s1361_s22 + $0xa0] sm:$0xff]   ;;  %v1230_v23 = vld [vmem:[%s1361_s22 + $0xa8] sm:$0xff]  }
  0x1b   : > { %1130 = vmatpush3.bf16.msra.mxu1 %v1214_v7  ;;  %1091 = vmatprep.subr.bf16.mxu0 %v1215_v8  ;;  %v1231_v24 = vld [vmem:[%s1361_s22 + $0x70] sm:$0xff]   ;;  %v1235_v28 = vld [vmem:[%s1361_s22 + $0x78] sm:$0xff]   ;;  %v1427_v57 = vld [vmem:[%s309_s8] ss:$0 sm:$0xff] }
  0x1c   : > { %1131 = vmatprep.subr.bf16.mxu1 %v1216_v9  ;;  %v1232_v25 = vld [vmem:[%s1361_s22 + $0xf0] sm:$0xff]   ;;  %v1236_v29 = vld [vmem:[%s1361_s22 + $0xf8] sm:$0xff]  }
  0x1d   : > { %v1233_v26 = vld [vmem:[%s1361_s22 + $0x30] sm:$0xff]   ;;  %v1237_v30 = vld [vmem:[%s1361_s22 + $0x38] sm:$0xff]  }
  0x1e   : > { %1092 = vmatpush3.bf16.msra.mxu0 %v1217_v10  ;;  %v1234_v27 = vld [vmem:[%s1361_s22 + $0xb0] sm:$0xff]   ;;  %v1238_v31 = vld [vmem:[%s1361_s22 + $0xb8] sm:$0xff]  }
  0x1f   : > { %1132 = vmatpush3.bf16.msra.mxu1 %v1218_v11  ;;  %1093 = vmatprep.subr.bf16.mxu0 %v1219_v12  ;;  %v1239_v32 = vld [vmem:[%s1401_s30] ss:$16 sps:$4 sm:$0xff]   ;;  %v1241_v33 = vld [vmem:[%s1401_s30 + $0x4] ss:$16 sps:$4 sm:$0xff]   ;;  %v1242_v34 = vld [vmem:[%s1401_s30 + $0x8] ss:$16 sps:$4 sm:$0xff]  }
  0x20   : > { %1133 = vmatprep.subr.bf16.mxu1 %v1220_v13  ;;  %v1244_v35 = vld [vmem:[%s1401_s30 + $0xc] ss:$16 sps:$4 sm:$0xff]   ;;  %728 = vmatprep.mubr.bf16.mxu0 %v1241_v33  ;;  %v1245_v36 = vld [vmem:[%s1401_s30 + $0x24] ss:$16 sps:$4 sm:$0xff]   ;;  %v1249_v38 = vld [vmem:[%s1401_s30 + $0x20] ss:$16 sps:$4 sm:$0xff]  }
  0x21   : > { %793 = vmatprep.mubr.bf16.mxu1 %v1244_v35  ;;  %v1247_v37 = vld [vmem:[%s1401_s30 + $0x2c] ss:$16 sps:$4 sm:$0xff]   ;;  %v1250_v39 = vld [vmem:[%s1401_s30 + $0x28] ss:$16 sps:$4 sm:$0xff]   ;;  %v1251_v40 = vld [vmem:[%s1401_s30 + $0x44] ss:$16 sps:$4 sm:$0xff]  }
  0x22   : > { %1094 = vmatpush3.bf16.msra.mxu0 %v1221_v14  ;;  %v1253_v41 = vld [vmem:[%s1401_s30 + $0x4c] ss:$16 sps:$4 sm:$0xff]   ;;  %v1255_v42 = vld [vmem:[%s1401_s30 + $0x40] ss:$16 sps:$4 sm:$0xff]   ;;  %v1256_v43 = vld [vmem:[%s1401_s30 + $0x48] ss:$16 sps:$4 sm:$0xff]  }
  0x23   : > { %1134 = vmatpush3.bf16.msra.mxu1 %v1222_v15  ;;  %1095 = vmatprep.subr.bf16.mxu0 %v1223_v16  ;;  %v1257_v44 = vld [vmem:[%s1401_s30 + $0x64] ss:$16 sps:$4 sm:$0xff]   ;;  %v1259_v45 = vld [vmem:[%s1401_s30 + $0x6c] ss:$16 sps:$4 sm:$0xff]   ;;  %v1261_v46 = vld [vmem:[%s1401_s30 + $0x60] ss:$16 sps:$4 sm:$0xff]  }
  0x24   : > { %1135 = vmatprep.subr.bf16.mxu1 %v1224_v17  ;;  %v1262_v47 = vld [vmem:[%s1401_s30 + $0x68] ss:$16 sps:$4 sm:$0xff]  }
  0x26   : > { %1096 = vmatpush3.bf16.msra.mxu0 %v1225_v18 }
  0x27   : > { %1136 = vmatpush3.bf16.msra.mxu1 %v1226_v19  ;;  %1097 = vmatprep.subr.bf16.mxu0 %v1227_v20 }
  0x28   : > { %1137 = vmatprep.subr.bf16.mxu1 %v1228_v21 }
  0x2a   : > { %1098 = vmatpush3.bf16.msra.mxu0 %v1229_v22 }
  0x2b   : > { %1138 = vmatpush3.bf16.msra.mxu1 %v1230_v23  ;;  %1099 = vmatprep.subr.bf16.mxu0 %v1231_v24 }
  0x2c   : > { %1139 = vmatprep.subr.bf16.mxu1 %v1232_v25 }
  0x2e   : > { %1100 = vmatpush3.bf16.msra.mxu0 %v1233_v26 }
  0x2f   : > { %1140 = vmatpush3.bf16.msra.mxu1 %v1234_v27  ;;  %1101 = vmatprep.subr.bf16.mxu0 %v1235_v28 }
  0x30   : > { %1141 = vmatprep.subr.bf16.mxu1 %v1236_v29 }
  0x32   : > { %1102 = vmatpush3.bf16.msra.mxu0 %v1237_v30 }
  0x33   : > { %1142 = vmatpush3.bf16.msra.mxu1 %v1238_v31 }
  0x35   : > { %729 = vmatmul.mubr.bf16.vlgmr.msra.gmra.mrb[0].mxu0 %v1239_v32 }
  0x36   : > { %794 = vmatmul.mubr.bf16.vlgmr.msra.gmra.mrb[0].mxu1 %v1242_v34  ;;  %736 = vmatprep.mubr.bf16.mxu0 %v1245_v36 }
  0x37   : > { %801 = vmatprep.mubr.bf16.mxu1 %v1247_v37 }
  0x3d   : > { %737 = vmatmul.mubr.bf16.gmra.mrb[4].mxu0 %v1249_v38 }
  0x3e   : > { %802 = vmatmul.mubr.bf16.gmra.mrb[4].mxu1 %v1250_v39  ;;  %744 = vmatprep.mubr.bf16.mxu0 %v1251_v40 }
  0x3f   : > { %809 = vmatprep.mubr.bf16.mxu1 %v1253_v41 }
  0x45   : > { %745 = vmatmul.mubr.bf16.gmra.mrb[8].mxu0 %v1255_v42 }
  0x46   : > { %810 = vmatmul.mubr.bf16.gmra.mrb[8].mxu1 %v1256_v43  ;;  %752 = vmatprep.mubr.bf16.mxu0 %v1257_v44 }
  0x47   : > { %817 = vmatprep.mubr.bf16.mxu1 %v1259_v45 }
  0x4d   : > { %753 = vmatmul.mubr.bf16.gmra.mrb[12].mxu0 %v1261_v46 }
  0x4e   : > { %818 = vmatmul.mubr.bf16.gmra.mrb[12].mxu1 %v1262_v47 }
 0x108   : > { %v1103_v48 = vpop.f32.mrb[0].mxu0 }
 0x109   : > { %v1143_v49 = vpop.f32.mrb[0].mxu1  ;;  %v1104_v50 = vpop.f32.mrb[1].mxu0 }
 0x10a   : > { %v1105_v51 = vadd.f32 %v1104_v50, %v1103_v48  ;;  %v1144_v52 = vpop.f32.mrb[1].mxu1  ;;  %v1106_v53 = vpop.f32.mrb[2].mxu0 }
 0x10b   : > { %v1145_v54 = vadd.f32 %v1144_v52, %v1143_v49  ;;  %v1146_v55 = vpop.f32.mrb[2].mxu1  ;;  %v1107_v56 = vpop.f32.mrb[3].mxu0 }
 0x10c   : > { %v1108_v58 = vadd.f32 %v1107_v56, %v1106_v53  ;;  %v1147_v59 = vpop.f32.mrb[3].mxu1 }
 0x10d   : > { %v796_v60 = vadd.f32 %v1145_v54, %v1105_v51  ;;  %v1148_v61 = vadd.f32 %v1147_v59, %v1146_v55 }
 0x10f   : > { %v860_v62 = vadd.f32 %v1427_v57, %v796_v60  ;;  %v799_v63 = vadd.f32 %v1148_v61, %v1108_v58 }
 0x110   : > { %v1109_v0 = vpop.f32.mrb[4].mxu0 }
 0x111   : > { %868 = vst [vmem:[%s1432_s12] sm:$0xff] %v860_v62  ;;  %v861_v1 = vadd.f32 %v1427_v57, %v799_v63  ;;  %v1149_v2 = vpop.f32.mrb[4].mxu1  ;;  %v1110_v3 = vpop.f32.mrb[5].mxu0 }
 0x112   : > { %v1111_v4 = vadd.f32 %v1110_v3, %v1109_v0  ;;  %v1150_v5 = vpop.f32.mrb[5].mxu1  ;;  %v1112_v6 = vpop.f32.mrb[6].mxu0 }
 0x113   : > { %869 = vst [vmem:[%s1432_s12 + $0x8] sm:$0xff] %v861_v1  ;;  %v1151_v7 = vadd.f32 %v1150_v5, %v1149_v2  ;;  %v1152_v8 = vpop.f32.mrb[6].mxu1  ;;  %v1113_v9 = vpop.f32.mrb[7].mxu0 }
 0x114   : > { %v1114_v10 = vadd.f32 %v1113_v9, %v1112_v6  ;;  %v1153_v11 = vpop.f32.mrb[7].mxu1 }
 0x115   : > { %v804_v12 = vadd.f32 %v1151_v7, %v1111_v4  ;;  %v1154_v13 = vadd.f32 %v1153_v11, %v1152_v8 }
 0x117   : > { %v862_v14 = vadd.f32 %v1427_v57, %v804_v12  ;;  %v807_v15 = vadd.f32 %v1154_v13, %v1114_v10 }
 0x118   : > { %v1115_v16 = vpop.f32.mrb[8].mxu0 }
 0x119   : > { %870 = vst [vmem:[%s1432_s12 + $0x10] sm:$0xff] %v862_v14  ;;  %v863_v17 = vadd.f32 %v1427_v57, %v807_v15  ;;  %v1155_v18 = vpop.f32.mrb[8].mxu1  ;;  %v1116_v19 = vpop.f32.mrb[9].mxu0 }
 0x11a   : > { %v1117_v20 = vadd.f32 %v1116_v19, %v1115_v16  ;;  %v1156_v21 = vpop.f32.mrb[9].mxu1  ;;  %v1118_v22 = vpop.f32.mrb[10].mxu0 }
 0x11b   : > { %871 = vst [vmem:[%s1432_s12 + $0x18] sm:$0xff] %v863_v17  ;;  %v1157_v23 = vadd.f32 %v1156_v21, %v1155_v18  ;;  %v1158_v24 = vpop.f32.mrb[10].mxu1  ;;  %v1119_v25 = vpop.f32.mrb[11].mxu0 }
 0x11c   : > { %v1120_v26 = vadd.f32 %v1119_v25, %v1118_v22  ;;  %v1159_v27 = vpop.f32.mrb[11].mxu1 }
 0x11d   : > { %v812_v28 = vadd.f32 %v1157_v23, %v1117_v20  ;;  %v1160_v29 = vadd.f32 %v1159_v27, %v1158_v24 }
 0x11f   : > { %v864_v30 = vadd.f32 %v1427_v57, %v812_v28  ;;  %v815_v31 = vadd.f32 %v1160_v29, %v1120_v26 }
 0x120   : > { %v1121_v32 = vpop.f32.mrb[12].mxu0 }
 0x121   : > { %872 = vst [vmem:[%s1432_s12 + $0x20] sm:$0xff] %v864_v30  ;;  %v865_v33 = vadd.f32 %v1427_v57, %v815_v31  ;;  %v1161_v34 = vpop.f32.mrb[12].mxu1  ;;  %v1122_v35 = vpop.f32.mrb[13].mxu0 }
 0x122   : > { %v1123_v36 = vadd.f32 %v1122_v35, %v1121_v32  ;;  %v1162_v37 = vpop.f32.mrb[13].mxu1  ;;  %v1124_v38 = vpop.f32.mrb[14].mxu0 }
 0x123   : > { %873 = vst [vmem:[%s1432_s12 + $0x28] sm:$0xff] %v865_v33  ;;  %v1163_v39 = vadd.f32 %v1162_v37, %v1161_v34  ;;  %v1164_v40 = vpop.f32.mrb[14].mxu1  ;;  %v1125_v41 = vpop.f32.mrb[15].mxu0 }
 0x124   : > { %v1126_v42 = vadd.f32 %v1125_v41, %v1124_v38  ;;  %v1165_v43 = vpop.f32.mrb[15].mxu1 }
 0x125   : > { %v820_v44 = vadd.f32 %v1163_v39, %v1123_v36  ;;  %v1166_v45 = vadd.f32 %v1165_v43, %v1164_v40 }
 0x127   : > { %v866_v46 = vadd.f32 %v1427_v57, %v820_v44  ;;  %v823_v47 = vadd.f32 %v1166_v45, %v1126_v42 }
 0x129   : > { %874 = vst [vmem:[%s1432_s12 + $0x30] sm:$0xff] %v866_v46  ;;  %v867_v48 = vadd.f32 %v1427_v57, %v823_v47 }
 0x12b   : > { %875 = vst [vmem:[%s1432_s12 + $0x38] sm:$0xff] %v867_v48 }
 0x12c PF: > { %s13_s16 = sadd.s32 1, %s1301_s16   ;;  %s1469_s12 = smov %s1293_s14 }
 0x12d   : > { %p10_p7 = scmp.ge.s32.totalorder %s13_s16, 10   ;;  %s1470_s13 = smov %s1297_s15 }
 0x12e   : > { %s1471_s14 = smov %s1474_s17  ;;  %s1472_s15 = smov %s1478_s18 }
 0x12f   :  { %12 = sbr.rel (!%p10_p7) target bundleno = 3 (0x3), region = 76 }

// kernel: fwd.17
= control target key start
LH: loop header
LB: loop body
LE: loop exit
PB: predicated region body
PF: predicated region fallthrough
CT: control target
= control target key end

     0   :  { %s485_s12 = smov 0   ;;  %s651_s0 = inlined_call_operand.vmem [shape: f32[512,128], index: 0, kind: input, shape index: {}]   ;;  %s652_s1 = inlined_call_operand.vmem [shape: f32[1,128], index: 1, kind: input, shape index: {}]   ;;  %s653_s2 = inlined_call_operand.vmem [shape: f32[1,128], index: 2, kind: input, shape index: {}]   ;;  %s654_s3 = inlined_call_operand.vmem [shape: f32[512,128], index: 3, kind: output, shape index: {}]  }
   0x1 LB: > { %s436_s13 = sadd.s32 4294967295, %s463_s12   ;;  %p440_p0 = scmp.ge.s32.totalorder %s463_s12, 1  ;;  %s463_s12 = sphi %s485_s12, %s13_s12  }
   0x2   : > { %p138_p1 = scmp.lt.s32.totalorder %s463_s12, 3 }
   0x4   : > { %p139_p2 = pnand %p440_p0, %p138_p1 }
   0x5   : > { %s441_s14 = sshll.u32 (!%p139_p2), %s436_s13, 5  ;;  %v499_v0 = vld [vmem:[%s652_s1] ss:$0 sm:$0xff] (!%p139_p2) }
   0x6   : > { %142 = sbr.rel (%p139_p2) target bundleno = 54 (0x36), region = 32  ;;  %p163_p3 = scmp.lt.s32.totalorder (!%p139_p2), %s441_s14, 63  ;;  %v511_v1 = vld [vmem:[%s653_s2] ss:$0 sm:$0xff] (!%p139_p2) }
   0xd   : > { %s656_s14 = smov (!%p163_p3, %s441_s14), 63 }
   0xe   : > { %s442_s15 = sshll.u32 %s656_s14, 3 }
   0xf   : > { %s506_s20 = scalar_lea.vmem %s651_s0, %s442_s15  ;;  %s542_s25 = scalar_lea.vmem %s654_s3, %s442_s15 }
  0x10   : > { %v174_v2 = vld [vmem:[%s506_s20] sm:$0xff]  ;;  %v175_v3 = vld [vmem:[%s506_s20 + $0x8] sm:$0xff]  ;;  %v176_v4 = vld [vmem:[%s506_s20 + $0x10] sm:$0xff] }
  0x11   : > { %v213_v5 = vmul.f32 %v499_v0, %v174_v2  ;;  %v214_v6 = vmul.f32 %v499_v0, %v175_v3  ;;  %v215_v7 = vmul.f32 %v499_v0, %v176_v4  ;;  %v177_v8 = vld [vmem:[%s506_s20 + $0x18] sm:$0xff]  ;;  %v178_v9 = vld [vmem:[%s506_s20 + $0x20] sm:$0xff]  ;;  %v179_v10 = vld [vmem:[%s506_s20 + $0x28] sm:$0xff] }
  0x12   : > { %v216_v11 = vmul.f32 %v499_v0, %v177_v8  ;;  %v217_v12 = vmul.f32 %v499_v0, %v178_v9  ;;  %v218_v13 = vmul.f32 %v499_v0, %v179_v10  ;;  %v180_v14 = vld [vmem:[%s506_s20 + $0x30] sm:$0xff]  ;;  %v181_v15 = vld [vmem:[%s506_s20 + $0x38] sm:$0xff]  ;;  %v182_v28 = vld [vmem:[%s506_s20 + $0x40] sm:$0xff] }
  0x13   : > { %v252_v16 = vadd.f32 %v511_v1, %v213_v5  ;;  %v253_v17 = vadd.f32 %v511_v1, %v214_v6  ;;  %v254_v18 = vadd.f32 %v511_v1, %v215_v7  ;;  %v219_v19 = vmul.f32 %v499_v0, %v180_v14  ;;  %v183_v33 = vld [vmem:[%s506_s20 + $0x48] sm:$0xff]  ;;  %v184_v34 = vld [vmem:[%s506_s20 + $0x50] sm:$0xff]  ;;  %v185_v35 = vld [vmem:[%s506_s20 + $0x58] sm:$0xff] }
  0x14   : > { %v255_v20 = vadd.f32 %v511_v1, %v216_v11  ;;  %v256_v21 = vadd.f32 %v511_v1, %v217_v12  ;;  %v257_v22 = vadd.f32 %v511_v1, %v218_v13  ;;  %v220_v23 = vmul.f32 %v499_v0, %v181_v15  ;;  %v186_v40 = vld [vmem:[%s506_s20 + $0x60] sm:$0xff]  ;;  %v187_v41 = vld [vmem:[%s506_s20 + $0x68] sm:$0xff]  ;;  %v188_v46 = vld [vmem:[%s506_s20 + $0x70] sm:$0xff] }
  0x15   : > { %v284_v24 = vmax.f32 %v252_v16, 0.0  ;;  %v285_v25 = vmax.f32 %v253_v17, 0.0  ;;  %v286_v26 = vmax.f32 %v254_v18, 0.0  ;;  %v258_v27 = vadd.f32 %v511_v1, %v219_v19  ;;  %v189_v51 = vld [vmem:[%s506_s20 + $0x78] sm:$0xff]  ;;  %v190_v6 = vld [vmem:[%s506_s20 + $0x80] sm:$0xff]  ;;  %v191_v11 = vld [vmem:[%s506_s20 + $0x88] sm:$0xff] }
  0x16   : > { %v287_v29 = vmax.f32 %v255_v20, 0.0  ;;  %v288_v30 = vmax.f32 %v256_v21, 0.0  ;;  %v289_v31 = vmax.f32 %v257_v22, 0.0  ;;  %v259_v32 = vadd.f32 %v511_v1, %v220_v23  ;;  %v192_v12 = vld [vmem:[%s506_s20 + $0x90] sm:$0xff]  ;;  %v193_v13 = vld [vmem:[%s506_s20 + $0x98] sm:$0xff]  ;;  %v194_v18 = vld [vmem:[%s506_s20 + $0xa0] sm:$0xff] }
  0x17   : > { %v316_v36 = vmin.f32 %v284_v24, 6.0  ;;  %v317_v37 = vmin.f32 %v285_v25, 6.0  ;;  %v318_v38 = vmin.f32 %v286_v26, 6.0  ;;  %v290_v39 = vmax.f32 %v258_v27, 0.0  ;;  %v195_v19 = vld [vmem:[%s506_s20 + $0xa8] sm:$0xff]  ;;  %v196_v24 = vld [vmem:[%s506_s20 + $0xb0] sm:$0xff] }
  0x18   : > { %v319_v42 = vmin.f32 %v287_v29, 6.0  ;;  %v320_v43 = vmin.f32 %v288_v30, 6.0  ;;  %v321_v44 = vmin.f32 %v289_v31, 6.0  ;;  %v291_v45 = vmax.f32 %v259_v32, 0.0  ;;  %v197_v29 = vld [vmem:[%s506_s20 + $0xb8] sm:$0xff] }
  0x19   : > { %348 = vst [vmem:[%s542_s25] sm:$0xff] %v316_v36  ;;  %349 = vst [vmem:[%s542_s25 + $0x8] sm:$0xff] %v317_v37  ;;  %v322_v47 = vmin.f32 %v290_v39, 6.0  ;;  %v221_v48 = vmul.f32 %v499_v0, %v182_v28  ;;  %v222_v49 = vmul.f32 %v499_v0, %v183_v33  ;;  %v223_v50 = vmul.f32 %v499_v0, %v184_v34 }
  0x1a   : > { %350 = vst [vmem:[%s542_s25 + $0x10] sm:$0xff] %v318_v38  ;;  %351 = vst [vmem:[%s542_s25 + $0x18] sm:$0xff] %v319_v42  ;;  %v323_v52 = vmin.f32 %v291_v45, 6.0  ;;  %v224_v53 = vmul.f32 %v499_v0, %v185_v35  ;;  %v225_v54 = vmul.f32 %v499_v0, %v186_v40  ;;  %v226_v55 = vmul.f32 %v499_v0, %v187_v41 }
  0x1b   : > { %352 = vst [vmem:[%s542_s25 + $0x20] sm:$0xff] %v320_v43  ;;  %353 = vst [vmem:[%s542_s25 + $0x28] sm:$0xff] %v321_v44  ;;  %v260_v56 = vadd.f32 %v511_v1, %v221_v48  ;;  %v261_v57 = vadd.f32 %v511_v1, %v222_v49  ;;  %v262_v58 = vadd.f32 %v511_v1, %v223_v50 }
  0x1c   : > { %354 = vst [vmem:[%s542_s25 + $0x30] sm:$0xff] %v322_v47  ;;  %v227_v59 = vmul.f32 %v499_v0, %v188_v46  ;;  %355 = vst [vmem:[%s542_s25 + $0x38] sm:$0xff] %v323_v52  ;;  %v263_v60 = vadd.f32 %v511_v1, %v224_v53  ;;  %v264_v61 = vadd.f32 %v511_v1, %v225_v54  ;;  %v198_v46 = vld [vmem:[%s506_s20 + $0xc0] sm:$0xff]  ;;  %v200_v52 = vld [vmem:[%s506_s20 + $0xd0] sm:$0xff] }
  0x1d   : > { %v265_v62 = vadd.f32 %v511_v1, %v226_v55  ;;  %v228_v63 = vmul.f32 %v499_v0, %v189_v51  ;;  %v292_v2 = vmax.f32 %v260_v56, 0.0  ;;  %v293_v3 = vmax.f32 %v261_v57, 0.0  ;;  %v199_v51 = vld [vmem:[%s506_s20 + $0xc8] sm:$0xff]  ;;  %v201_v53 = vld [vmem:[%s506_s20 + $0xd8] sm:$0xff] }
  0x1e   : > { %v294_v4 = vmax.f32 %v262_v58, 0.0  ;;  %v266_v5 = vadd.f32 %v511_v1, %v227_v59  ;;  %v295_v7 = vmax.f32 %v263_v60, 0.0  ;;  %v296_v8 = vmax.f32 %v264_v61, 0.0  ;;  %v202_v58 = vld [vmem:[%s506_s20 + $0xe0] sm:$0xff]  ;;  %v203_v59 = vld [vmem:[%s506_s20 + $0xe8] sm:$0xff] }
  0x1f   : > { %v297_v9 = vmax.f32 %v265_v62, 0.0  ;;  %v267_v10 = vadd.f32 %v511_v1, %v228_v63  ;;  %v324_v14 = vmin.f32 %v292_v2, 6.0  ;;  %v325_v15 = vmin.f32 %v293_v3, 6.0  ;;  %v204_v2 = vld [vmem:[%s506_s20 + $0xf0] sm:$0xff] }
  0x20   : > { %v326_v16 = vmin.f32 %v294_v4, 6.0  ;;  %v298_v17 = vmax.f32 %v266_v5, 0.0  ;;  %v327_v20 = vmin.f32 %v295_v7, 6.0  ;;  %v328_v21 = vmin.f32 %v296_v8, 6.0  ;;  %v205_v7 = vld [vmem:[%s506_s20 + $0xf8] sm:$0xff] }
  0x21   : > { %v329_v22 = vmin.f32 %v297_v9, 6.0  ;;  %v299_v23 = vmax.f32 %v267_v10, 0.0  ;;  %356 = vst [vmem:[%s542_s25 + $0x40] sm:$0xff] %v324_v14  ;;  %357 = vst [vmem:[%s542_s25 + $0x48] sm:$0xff] %v325_v15  ;;  %v229_v26 = vmul.f32 %v499_v0, %v190_v6  ;;  %v230_v27 = vmul.f32 %v499_v0, %v191_v11 }
  0x22   : > { %358 = vst [vmem:[%s542_s25 + $0x50] sm:$0xff] %v326_v16  ;;  %v330_v25 = vmin.f32 %v298_v17, 6.0  ;;  %v231_v28 = vmul.f32 %v499_v0, %v192_v12  ;;  %359 = vst [vmem:[%s542_s25 + $0x58] sm:$0xff] %v327_v20  ;;  %v232_v31 = vmul.f32 %v499_v0, %v193_v13  ;;  %v233_v32 = vmul.f32 %v499_v0, %v194_v18 }
  0x23   : > { %360 = vst [vmem:[%s542_s25 + $0x60] sm:$0xff] %v328_v21  ;;  %361 = vst [vmem:[%s542_s25 + $0x68] sm:$0xff] %v329_v22  ;;  %v331_v30 = vmin.f32 %v299_v23, 6.0  ;;  %v234_v33 = vmul.f32 %v499_v0, %v195_v19  ;;  %v268_v34 = vadd.f32 %v511_v1, %v229_v26  ;;  %v269_v35 = vadd.f32 %v511_v1, %v230_v27 }
  0x24   : > { %362 = vst [vmem:[%s542_s25 + $0x70] sm:$0xff] %v330_v25  ;;  %v270_v36 = vadd.f32 %v511_v1, %v231_v28  ;;  %v235_v37 = vmul.f32 %v499_v0, %v196_v24  ;;  %v271_v38 = vadd.f32 %v511_v1, %v232_v31  ;;  %v272_v39 = vadd.f32 %v511_v1, %v233_v32 }
  0x25   : > { %363 = vst [vmem:[%s542_s25 + $0x78] sm:$0xff] %v331_v30  ;;  %v273_v40 = vadd.f32 %v511_v1, %v234_v33  ;;  %v236_v41 = vmul.f32 %v499_v0, %v197_v29  ;;  %v300_v42 = vmax.f32 %v268_v34, 0.0  ;;  %v301_v43 = vmax.f32 %v269_v35, 0.0 }
  0x26   : > { %v302_v44 = vmax.f32 %v270_v36, 0.0  ;;  %v274_v45 = vadd.f32 %v511_v1, %v235_v37  ;;  %v303_v47 = vmax.f32 %v271_v38, 0.0  ;;  %v304_v48 = vmax.f32 %v272_v39, 0.0 }
  0x27   : > { %v305_v49 = vmax.f32 %v273_v40, 0.0  ;;  %v275_v50 = vadd.f32 %v511_v1, %v236_v41  ;;  %v332_v54 = vmin.f32 %v300_v42, 6.0  ;;  %v333_v55 = vmin.f32 %v301_v43, 6.0 }
  0x28   : > { %v334_v56 = vmin.f32 %v302_v44, 6.0  ;;  %v306_v57 = vmax.f32 %v274_v45, 0.0  ;;  %v335_v60 = vmin.f32 %v303_v47, 6.0  ;;  %v336_v61 = vmin.f32 %v304_v48, 6.0 }
  0x29   : > { %v337_v62 = vmin.f32 %v305_v49, 6.0  ;;  %v307_v63 = vmax.f32 %v275_v50, 0.0  ;;  %364 = vst [vmem:[%s542_s25 + $0x80] sm:$0xff] %v332_v54  ;;  %365 = vst [vmem:[%s542_s25 + $0x88] sm:$0xff] %v333_v55  ;;  %v237_v4 = vmul.f32 %v499_v0, %v198_v46  ;;  %v238_v5 = vmul.f32 %v499_v0, %v199_v51 }
  0x2a   : > { %366 = vst [vmem:[%s542_s25 + $0x90] sm:$0xff] %v334_v56  ;;  %v338_v3 = vmin.f32 %v306_v57, 6.0  ;;  %v239_v6 = vmul.f32 %v499_v0, %v200_v52  ;;  %367 = vst [vmem:[%s542_s25 + $0x98] sm:$0xff] %v335_v60  ;;  %v240_v9 = vmul.f32 %v499_v0, %v201_v53  ;;  %v241_v10 = vmul.f32 %v499_v0, %v202_v58 }
  0x2b   : > { %368 = vst [vmem:[%s542_s25 + $0xa0] sm:$0xff] %v336_v61  ;;  %369 = vst [vmem:[%s542_s25 + $0xa8] sm:$0xff] %v337_v62  ;;  %v339_v8 = vmin.f32 %v307_v63, 6.0  ;;  %v242_v11 = vmul.f32 %v499_v0, %v203_v59  ;;  %v276_v12 = vadd.f32 %v511_v1, %v237_v4  ;;  %v277_v13 = vadd.f32 %v511_v1, %v238_v5 }
  0x2c   : > { %370 = vst [vmem:[%s542_s25 + $0xb0] sm:$0xff] %v338_v3  ;;  %v278_v14 = vadd.f32 %v511_v1, %v239_v6  ;;  %v243_v15 = vmul.f32 %v499_v0, %v204_v2  ;;  %v279_v16 = vadd.f32 %v511_v1, %v240_v9  ;;  %v280_v17 = vadd.f32 %v511_v1, %v241_v10 }
  0x2d   : > { %371 = vst [vmem:[%s542_s25 + $0xb8] sm:$0xff] %v339_v8  ;;  %v281_v18 = vadd.f32 %v511_v1, %v242_v11  ;;  %v244_v19 = vmul.f32 %v499_v0, %v205_v7  ;;  %v308_v20 = vmax.f32 %v276_v12, 0.0  ;;  %v309_v21 = vmax.f32 %v277_v13, 0.0 }
  0x2e   : > { %v310_v22 = vmax.f32 %v278_v14, 0.0  ;;  %v282_v23 = vadd.f32 %v511_v1, %v243_v15  ;;  %v311_v24 = vmax.f32 %v279_v16, 0.0  ;;  %v312_v25 = vmax.f32 %v280_v17, 0.0 }
  0x2f   : > { %v313_v26 = vmax.f32 %v281_v18, 0.0  ;;  %v283_v27 = vadd.f32 %v511_v1, %v244_v19  ;;  %v340_v28 = vmin.f32 %v308_v20, 6.0  ;;  %v341_v29 = vmin.f32 %v309_v21, 6.0 }
  0x30   : > { %v342_v0 = vmin.f32 %v310_v22, 6.0  ;;  %v314_v30 = vmax.f32 %v282_v23, 0.0  ;;  %v343_v31 = vmin.f32 %v311_v24, 6.0  ;;  %v344_v32 = vmin.f32 %v312_v25, 6.0 }
  0x31   : > { %v345_v33 = vmin.f32 %v313_v26, 6.0  ;;  %v315_v34 = vmax.f32 %v283_v27, 0.0  ;;  %372 = vst [vmem:[%s542_s25 + $0xc0] sm:$0xff] %v340_v28  ;;  %373 = vst [vmem:[%s542_s25 + $0xc8] sm:$0xff] %v341_v29 }
  0x32   : > { %374 = vst [vmem:[%s542_s25 + $0xd0] sm:$0xff] %v342_v0  ;;  %v346_v35 = vmin.f32 %v314_v30, 6.0  ;;  %375 = vst [vmem:[%s542_s25 + $0xd8] sm:$0xff] %v343_v31 }
  0x33   : > { %376 = vst [vmem:[%s542_s25 + $0xe0] sm:$0xff] %v344_v32  ;;  %377 = vst [vmem:[%s542_s25 + $0xe8] sm:$0xff] %v345_v33  ;;  %v347_v36 = vmin.f32 %v315_v34, 6.0 }
  0x34   : > { %378 = vst [vmem:[%s542_s25 + $0xf0] sm:$0xff] %v346_v35 }
  0x35   : > { %379 = vst [vmem:[%s542_s25 + $0xf8] sm:$0xff] %v347_v36 }
  0x36 PF: > { %s13_s12 = sadd.s32 1, %s463_s12  }
  0x37   : > { %p10_p4 = scmp.ge.s32.totalorder %s13_s12, 4  }
  0x39   :  { %12 = sbr.rel (!%p10_p4) target bundleno = 1 (0x1), region = 62 }

// kernel: fwd.19
= control target key start
LH: loop header
LB: loop body
LE: loop exit
PB: predicated region body
PF: predicated region fallthrough
CT: control target
= control target key end

     0   :  { %s491_s14 = smov 0   ;;  %s686_s0 = inlined_call_operand.vmem [shape: f32[512,128], index: 0, kind: input, shape index: {}]   ;;  %s687_s1 = inlined_call_operand.vmem [shape: f32[1,128], index: 1, kind: input, shape index: {}]   ;;  %s688_s2 = inlined_call_operand.<no memory space> [shape: f32[1,1], index: 2, kind: input, shape index: {}]   ;;  %s689_s3 = inlined_call_operand.vmem [shape: f32[512,1], index: 3, kind: output, shape index: {}]  }
   0x1   :  { %v8_v0 = vstv %s688_s2 }
   0x2   :  { %9 = vst [vmem:[#allocation2] sm:$0x1] %v8_v0 }
   0x3 LB: > { %s439_s15 = sadd.s32 4294967295, %s466_s14   ;;  %p443_p0 = scmp.ge.s32.totalorder %s466_s14, 1  ;;  %s466_s14 = sphi %s491_s14, %s15_s14  }
   0x4   : > { %p140_p1 = scmp.lt.s32.totalorder %s466_s14, 3 }
   0x6   : > { %p141_p2 = pnand %p443_p0, %p140_p1 }
   0x7   : > { %s444_s16 = sshll.u32 (!%p141_p2), %s439_s15, 5  ;;  %v505_v1 = vld [vmem:[%s687_s1] ss:$0 sm:$0xff] (!%p141_p2)  ;;  %vm350_vm0 = vcmask (!%p141_p2), 7168  }
   0x8   : > { %144 = sbr.rel (%p141_p2) target bundleno = 226 (0xe2), region = 32  ;;  %p165_p3 = scmp.lt.s32.totalorder (!%p141_p2), %s444_s16, 63 }
   0xf   : > { %s691_s16 = smov (!%p165_p3, %s444_s16), 63 }
  0x10   : > { %s445_s2 = sshll.u32 %s691_s16, 3 }
  0x11   : > { %s512_s21 = scalar_lea.vmem %s686_s0, %s445_s2  ;;  %s585_s24 = scalar_lea.vmem %s689_s3, %s445_s2 }
  0x12   : > { %v178_v2 = vld [vmem:[%s512_s21 + $0x10] sm:$0xff]  ;;  %v176_v3 = vld [vmem:[%s512_s21] sm:$0xff]  ;;  %v179_v4 = vld [vmem:[%s512_s21 + $0x18] sm:$0xff] }
  0x13   : > { %v217_v5 = vmul.f32 %v505_v1, %v178_v2  ;;  %v215_v6 = vmul.f32 %v505_v1, %v176_v3  ;;  %v177_v7 = vld [vmem:[%s512_s21 + $0x8] sm:$0xff]  ;;  %v218_v8 = vmul.f32 %v505_v1, %v179_v4  ;;  %v180_v11 = vld [vmem:[%s512_s21 + $0x20] sm:$0xff]  ;;  %v183_v14 = vld [vmem:[%s512_s21 + $0x38] sm:$0xff] }
  0x14   : > { %v216_v9 = vmul.f32 %v505_v1, %v177_v7  ;;  %v181_v10 = vld [vmem:[%s512_s21 + $0x28] sm:$0xff]  ;;  %v219_v13 = vmul.f32 %v505_v1, %v180_v11  ;;  %v182_v15 = vld [vmem:[%s512_s21 + $0x30] sm:$0xff]  ;;  %v222_v16 = vmul.f32 %v505_v1, %v183_v14  ;;  %v184_v19 = vld [vmem:[%s512_s21 + $0x40] sm:$0xff] }
  0x15   : > { %251 = vadd.xlane.f32.xlu1 %v217_v5  ;;  %247 = vadd.xlane.f32.xlu0 %v215_v6  ;;  %v220_v12 = vmul.f32 %v505_v1, %v181_v10  ;;  %v221_v17 = vmul.f32 %v505_v1, %v182_v15  ;;  %v185_v18 = vld [vmem:[%s512_s21 + $0x48] sm:$0xff]  ;;  %v223_v21 = vmul.f32 %v505_v1, %v184_v19  ;;  %v187_v22 = vld [vmem:[%s512_s21 + $0x58] sm:$0xff]  ;;  %v186_v23 = vld [vmem:[%s512_s21 + $0x50] sm:$0xff] }
  0x16   : > { %v224_v20 = vmul.f32 %v505_v1, %v185_v18  ;;  %v226_v24 = vmul.f32 %v505_v1, %v187_v22  ;;  %v225_v25 = vmul.f32 %v505_v1, %v186_v23  ;;  %v189_v26 = vld [vmem:[%s512_s21 + $0x68] sm:$0xff]  ;;  %v188_v27 = vld [vmem:[%s512_s21 + $0x60] sm:$0xff]  ;;  %v191_v30 = vld [vmem:[%s512_s21 + $0x78] sm:$0xff] }
  0x17   : > { %v228_v28 = vmul.f32 %v505_v1, %v189_v26  ;;  %v227_v29 = vmul.f32 %v505_v1, %v188_v27  ;;  %v190_v31 = vld [vmem:[%s512_s21 + $0x70] sm:$0xff]  ;;  %v230_v32 = vmul.f32 %v505_v1, %v191_v30  ;;  %v193_v34 = vld [vmem:[%s512_s21 + $0x88] sm:$0xff]  ;;  %v192_v35 = vld [vmem:[%s512_s21 + $0x80] sm:$0xff] }
  0x18   : > { %v229_v33 = vmul.f32 %v505_v1, %v190_v31  ;;  %v232_v36 = vmul.f32 %v505_v1, %v193_v34  ;;  %v231_v37 = vmul.f32 %v505_v1, %v192_v35  ;;  %v195_v38 = vld [vmem:[%s512_s21 + $0x98] sm:$0xff]  ;;  %v194_v39 = vld [vmem:[%s512_s21 + $0x90] sm:$0xff]  ;;  %v197_v42 = vld [vmem:[%s512_s21 + $0xa8] sm:$0xff] }
  0x19   : > { %253 = vadd.xlane.f32.xlu1 %v218_v8  ;;  %249 = vadd.xlane.f32.xlu0 %v216_v9  ;;  %v234_v40 = vmul.f32 %v505_v1, %v195_v38  ;;  %v233_v41 = vmul.f32 %v505_v1, %v194_v39  ;;  %v196_v43 = vld [vmem:[%s512_s21 + $0xa0] sm:$0xff]  ;;  %v236_v44 = vmul.f32 %v505_v1, %v197_v42  ;;  %v199_v46 = vld [vmem:[%s512_s21 + $0xb8] sm:$0xff]  ;;  %v198_v47 = vld [vmem:[%s512_s21 + $0xb0] sm:$0xff] }
  0x1a   : > { %v235_v45 = vmul.f32 %v505_v1, %v196_v43  ;;  %v238_v48 = vmul.f32 %v505_v1, %v199_v46  ;;  %v237_v49 = vmul.f32 %v505_v1, %v198_v47  ;;  %v201_v50 = vld [vmem:[%s512_s21 + $0xc8] sm:$0xff]  ;;  %v200_v51 = vld [vmem:[%s512_s21 + $0xc0] sm:$0xff]  ;;  %v203_v54 = vld [vmem:[%s512_s21 + $0xd8] sm:$0xff] }
  0x1b   : > { %v240_v52 = vmul.f32 %v505_v1, %v201_v50  ;;  %v239_v53 = vmul.f32 %v505_v1, %v200_v51  ;;  %v202_v55 = vld [vmem:[%s512_s21 + $0xd0] sm:$0xff]  ;;  %v242_v56 = vmul.f32 %v505_v1, %v203_v54  ;;  %v205_v58 = vld [vmem:[%s512_s21 + $0xe8] sm:$0xff]  ;;  %v204_v59 = vld [vmem:[%s512_s21 + $0xe0] sm:$0xff] }
  0x1c   : > { %v241_v57 = vmul.f32 %v505_v1, %v202_v55  ;;  %v244_v60 = vmul.f32 %v505_v1, %v205_v58  ;;  %v243_v61 = vmul.f32 %v505_v1, %v204_v59  ;;  %v207_v62 = vld [vmem:[%s512_s21 + $0xf8] sm:$0xff]  ;;  %v206_v63 = vld [vmem:[%s512_s21 + $0xf0] sm:$0xff]  ;;  %v578_v3 = vld [vmem:[#allocation2] ss:$0 sm:$0xff] }
  0x1d   : > { %257 = vadd.xlane.f32.xlu1 %v220_v12  ;;  %255 = vadd.xlane.f32.xlu0 %v219_v13  ;;  %v246_v0 = vmul.f32 %v505_v1, %v207_v62  ;;  %v245_v2 = vmul.f32 %v505_v1, %v206_v63 }
  0x21   : > { %261 = vadd.xlane.f32.xlu1 %v222_v16  ;;  %259 = vadd.xlane.f32.xlu0 %v221_v17 }
  0x25   : > { %265 = vadd.xlane.f32.xlu1 %v224_v20  ;;  %263 = vadd.xlane.f32.xlu0 %v223_v21 }
  0x29   : > { %269 = vadd.xlane.f32.xlu1 %v226_v24  ;;  %267 = vadd.xlane.f32.xlu0 %v225_v25 }
  0x2d   : > { %273 = vadd.xlane.f32.xlu1 %v228_v28  ;;  %271 = vadd.xlane.f32.xlu0 %v227_v29 }
  0x31   : > { %277 = vadd.xlane.f32.xlu1 %v230_v32  ;;  %275 = vadd.xlane.f32.xlu0 %v229_v33 }
  0x35   : > { %281 = vadd.xlane.f32.xlu1 %v232_v36  ;;  %279 = vadd.xlane.f32.xlu0 %v231_v37 }
  0x39   : > { %285 = vadd.xlane.f32.xlu1 %v234_v40  ;;  %283 = vadd.xlane.f32.xlu0 %v233_v41 }
  0x3d   : > { %289 = vadd.xlane.f32.xlu1 %v236_v44  ;;  %287 = vadd.xlane.f32.xlu0 %v235_v45 }
  0x41   : > { %293 = vadd.xlane.f32.xlu1 %v238_v48  ;;  %291 = vadd.xlane.f32.xlu0 %v237_v49 }
  0x45   : > { %297 = vadd.xlane.f32.xlu1 %v240_v52  ;;  %295 = vadd.xlane.f32.xlu0 %v239_v53 }
  0x49   : > { %301 = vadd.xlane.f32.xlu1 %v242_v56  ;;  %299 = vadd.xlane.f32.xlu0 %v241_v57 }
  0x4d   : > { %305 = vadd.xlane.f32.xlu1 %v244_v60  ;;  %303 = vadd.xlane.f32.xlu0 %v243_v61 }
  0x51   : > { %309 = vadd.xlane.f32.xlu1 %v246_v0  ;;  %307 = vadd.xlane.f32.xlu0 %v245_v2 }
  0xa2   : > { %v252_v4 = vpop.xlane.xlu1 %251  ;;  %v248_v5 = vpop.xlane.xlu0 %247 }
  0xa3   : > { %v320_v1 = vadd.f32 %v578_v3, %v252_v4  ;;  %v318_v6 = vadd.f32 %v578_v3, %v248_v5 }
  0xa5   : > { %353 = vst.msk [vmem:[%s585_s24 + $0x10] sm:$0xff] %vm350_vm0, %v320_v1  ;;  %351 = vst.msk [vmem:[%s585_s24] sm:$0xff] %vm350_vm0, %v318_v6 }
  0xa6   : > { %v254_v7 = vpop.xlane.xlu1 %253  ;;  %v250_v8 = vpop.xlane.xlu0 %249 }
  0xa7   : > { %v321_v9 = vadd.f32 %v578_v3, %v254_v7  ;;  %v319_v10 = vadd.f32 %v578_v3, %v250_v8 }
  0xa9   : > { %354 = vst.msk [vmem:[%s585_s24 + $0x18] sm:$0xff] %vm350_vm0, %v321_v9  ;;  %352 = vst.msk [vmem:[%s585_s24 + $0x8] sm:$0xff] %vm350_vm0, %v319_v10 }
  0xaa   : > { %v258_v11 = vpop.xlane.xlu1 %257  ;;  %v256_v12 = vpop.xlane.xlu0 %255 }
  0xab   : > { %v323_v13 = vadd.f32 %v578_v3, %v258_v11  ;;  %v322_v14 = vadd.f32 %v578_v3, %v256_v12 }
  0xad   : > { %356 = vst.msk [vmem:[%s585_s24 + $0x28] sm:$0xff] %vm350_vm0, %v323_v13  ;;  %355 = vst.msk [vmem:[%s585_s24 + $0x20] sm:$0xff] %vm350_vm0, %v322_v14 }
  0xae   : > { %v262_v15 = vpop.xlane.xlu1 %261  ;;  %v260_v16 = vpop.xlane.xlu0 %259 }
  0xaf   : > { %v325_v17 = vadd.f32 %v578_v3, %v262_v15  ;;  %v324_v18 = vadd.f32 %v578_v3, %v260_v16 }
  0xb1   : > { %358 = vst.msk [vmem:[%s585_s24 + $0x38] sm:$0xff] %vm350_vm0, %v325_v17  ;;  %357 = vst.msk [vmem:[%s585_s24 + $0x30] sm:$0xff] %vm350_vm0, %v324_v18 }
  0xb2   : > { %v266_v19 = vpop.xlane.xlu1 %265  ;;  %v264_v20 = vpop.xlane.xlu0 %263 }
  0xb3   : > { %v327_v21 = vadd.f32 %v578_v3, %v266_v19  ;;  %v326_v22 = vadd.f32 %v578_v3, %v264_v20 }
  0xb5   : > { %360 = vst.msk [vmem:[%s585_s24 + $0x48] sm:$0xff] %vm350_vm0, %v327_v21  ;;  %359 = vst.msk [vmem:[%s585_s24 + $0x40] sm:$0xff] %vm350_vm0, %v326_v22 }
  0xb6   : > { %v270_v23 = vpop.xlane.xlu1 %269  ;;  %v268_v24 = vpop.xlane.xlu0 %267 }
  0xb7   : > { %v329_v25 = vadd.f32 %v578_v3, %v270_v23  ;;  %v328_v26 = vadd.f32 %v578_v3, %v268_v24 }
  0xb9   : > { %362 = vst.msk [vmem:[%s585_s24 + $0x58] sm:$0xff] %vm350_vm0, %v329_v25  ;;  %361 = vst.msk [vmem:[%s585_s24 + $0x50] sm:$0xff] %vm350_vm0, %v328_v26 }
  0xba   : > { %v274_v27 = vpop.xlane.xlu1 %273  ;;  %v272_v28 = vpop.xlane.xlu0 %271 }
  0xbb   : > { %v331_v29 = vadd.f32 %v578_v3, %v274_v27  ;;  %v330_v30 = vadd.f32 %v578_v3, %v272_v28 }
  0xbd   : > { %364 = vst.msk [vmem:[%s585_s24 + $0x68] sm:$0xff] %vm350_vm0, %v331_v29  ;;  %363 = vst.msk [vmem:[%s585_s24 + $0x60] sm:$0xff] %vm350_vm0, %v330_v30 }
  0xbe   : > { %v278_v31 = vpop.xlane.xlu1 %277  ;;  %v276_v32 = vpop.xlane.xlu0 %275 }
  0xbf   : > { %v333_v33 = vadd.f32 %v578_v3, %v278_v31  ;;  %v332_v34 = vadd.f32 %v578_v3, %v276_v32 }
  0xc1   : > { %366 = vst.msk [vmem:[%s585_s24 + $0x78] sm:$0xff] %vm350_vm0, %v333_v33  ;;  %365 = vst.msk [vmem:[%s585_s24 + $0x70] sm:$0xff] %vm350_vm0, %v332_v34 }
  0xc2   : > { %v282_v35 = vpop.xlane.xlu1 %281  ;;  %v280_v36 = vpop.xlane.xlu0 %279 }
  0xc3   : > { %v335_v37 = vadd.f32 %v578_v3, %v282_v35  ;;  %v334_v38 = vadd.f32 %v578_v3, %v280_v36 }
  0xc5   : > { %368 = vst.msk [vmem:[%s585_s24 + $0x88] sm:$0xff] %vm350_vm0, %v335_v37  ;;  %367 = vst.msk [vmem:[%s585_s24 + $0x80] sm:$0xff] %vm350_vm0, %v334_v38 }
  0xc6   : > { %v286_v39 = vpop.xlane.xlu1 %285  ;;  %v284_v40 = vpop.xlane.xlu0 %283 }
  0xc7   : > { %v337_v41 = vadd.f32 %v578_v3, %v286_v39  ;;  %v336_v42 = vadd.f32 %v578_v3, %v284_v40 }
  0xc9   : > { %370 = vst.msk [vmem:[%s585_s24 + $0x98] sm:$0xff] %vm350_vm0, %v337_v41  ;;  %369 = vst.msk [vmem:[%s585_s24 + $0x90] sm:$0xff] %vm350_vm0, %v336_v42 }
  0xca   : > { %v290_v43 = vpop.xlane.xlu1 %289  ;;  %v288_v44 = vpop.xlane.xlu0 %287 }
  0xcb   : > { %v339_v45 = vadd.f32 %v578_v3, %v290_v43  ;;  %v338_v46 = vadd.f32 %v578_v3, %v288_v44 }
  0xcd   : > { %372 = vst.msk [vmem:[%s585_s24 + $0xa8] sm:$0xff] %vm350_vm0, %v339_v45  ;;  %371 = vst.msk [vmem:[%s585_s24 + $0xa0] sm:$0xff] %vm350_vm0, %v338_v46 }
  0xce   : > { %v294_v47 = vpop.xlane.xlu1 %293  ;;  %v292_v48 = vpop.xlane.xlu0 %291 }
  0xcf   : > { %v341_v49 = vadd.f32 %v578_v3, %v294_v47  ;;  %v340_v50 = vadd.f32 %v578_v3, %v292_v48 }
  0xd1   : > { %374 = vst.msk [vmem:[%s585_s24 + $0xb8] sm:$0xff] %vm350_vm0, %v341_v49  ;;  %373 = vst.msk [vmem:[%s585_s24 + $0xb0] sm:$0xff] %vm350_vm0, %v340_v50 }
  0xd2   : > { %v298_v51 = vpop.xlane.xlu1 %297  ;;  %v296_v52 = vpop.xlane.xlu0 %295 }
  0xd3   : > { %v343_v53 = vadd.f32 %v578_v3, %v298_v51  ;;  %v342_v54 = vadd.f32 %v578_v3, %v296_v52 }
  0xd5   : > { %376 = vst.msk [vmem:[%s585_s24 + $0xc8] sm:$0xff] %vm350_vm0, %v343_v53  ;;  %375 = vst.msk [vmem:[%s585_s24 + $0xc0] sm:$0xff] %vm350_vm0, %v342_v54 }
  0xd6   : > { %v302_v55 = vpop.xlane.xlu1 %301  ;;  %v300_v56 = vpop.xlane.xlu0 %299 }
  0xd7   : > { %v345_v57 = vadd.f32 %v578_v3, %v302_v55  ;;  %v344_v58 = vadd.f32 %v578_v3, %v300_v56 }
  0xd9   : > { %378 = vst.msk [vmem:[%s585_s24 + $0xd8] sm:$0xff] %vm350_vm0, %v345_v57  ;;  %377 = vst.msk [vmem:[%s585_s24 + $0xd0] sm:$0xff] %vm350_vm0, %v344_v58 }
  0xda   : > { %v306_v59 = vpop.xlane.xlu1 %305  ;;  %v304_v60 = vpop.xlane.xlu0 %303 }
  0xdb   : > { %v347_v61 = vadd.f32 %v578_v3, %v306_v59  ;;  %v346_v62 = vadd.f32 %v578_v3, %v304_v60 }
  0xdd   : > { %380 = vst.msk [vmem:[%s585_s24 + $0xe8] sm:$0xff] %vm350_vm0, %v347_v61  ;;  %379 = vst.msk [vmem:[%s585_s24 + $0xe0] sm:$0xff] %vm350_vm0, %v346_v62 }
  0xde   : > { %v310_v63 = vpop.xlane.xlu1 %309  ;;  %v308_v0 = vpop.xlane.xlu0 %307 }
  0xdf   : > { %v349_v2 = vadd.f32 %v578_v3, %v310_v63  ;;  %v348_v4 = vadd.f32 %v578_v3, %v308_v0 }
  0xe1   : > { %382 = vst.msk [vmem:[%s585_s24 + $0xf8] sm:$0xff] %vm350_vm0, %v349_v2  ;;  %381 = vst.msk [vmem:[%s585_s24 + $0xf0] sm:$0xff] %vm350_vm0, %v348_v4 }
  0xe2 PF: > { %s15_s14 = sadd.s32 1, %s466_s14  }
  0xe3   : > { %p12_p4 = scmp.ge.s32.totalorder %s15_s14, 4  }
  0xe5   :  { %14 = sbr.rel (!%p12_p4) target bundleno = 3 (0x3), region = 62 }

// kernel: fwd.16
= control target key start
LH: loop header
LB: loop body
LE: loop exit
PB: predicated region body
PF: predicated region fallthrough
CT: control target
= control target key end

     0   :  { %s4206_s15 = smov 0   ;;  %s4208_s16 = smov 0   ;;  %s4998_s0 = inlined_call_operand.vmem [shape: bf16[512,1152], index: 0, kind: input, shape index: {}]   ;;  %s4999_s1 = inlined_call_operand.vmem [shape: bf16[1152,128], index: 1, kind: input, shape index: {}]   ;;  %s5000_s2 = inlined_call_operand.vmem [shape: f32[512,128], index: 2, kind: output, shape index: {0}]   ;;  %s5001_s3 = inlined_call_operand.vmem [shape: f32[16,128], index: 3, kind: output, shape index: {1}]   ;;  %s5002_s4 = inlined_call_operand.vmem [shape: f32[16,128], index: 4, kind: output, shape index: {2}]  }
   0x1   :  { %s4210_s17 = smov 0  }
   0x2 LB: > { %s34_s18 = sadd.s32 1, %s4175_s16  ;;  %p3091_p0 = scmp.ge.s32.totalorder %s4179_s17, 1  ;;  %s4179_s17 = sphi %s4210_s17, %s15_s17   ;;  %s4175_s16 = sphi %s4208_s16, %s5004_s16   ;;  %s4171_s15 = sphi %s4206_s15, %s5003_s15  }
   0x3   : > { %p36_p1 = scmp.ge.s32.totalorder %s34_s18, 2  ;;  %p217_p2 = scmp.lt.s32.totalorder %s4179_s17, 3 }
   0x5   : > { %s5006_s18 = smov (%p36_p1, %s34_s18), 0  ;;  %p218_p3 = pnand %p3091_p0, %p217_p2 }
   0x6   : > { %v3877_v0 = vld [vmem:[%s4999_s1 + $0x40] sm:$0xff] (!%p218_p3)   ;;  %s3092_s21 = sshll.u32 (!%p218_p3), %s4171_s15, 5  ;;  %v3879_v2 = vld [vmem:[%s4999_s1 + $0x48] sm:$0xff] (!%p218_p3)   ;;  %v3881_v4 = vld [vmem:[%s4999_s1 + $0x50] sm:$0xff] (!%p218_p3)   ;;  %p303_p5 = scmp.lt.s32.totalorder (!%p218_p3), %s4171_s15, 1 }
   0x7   : > { %221 = sbr.rel (%p218_p3) target bundleno = 558 (0x22e), region = 28  ;;  %v3878_v1 = vld [vmem:[%s4999_s1] sm:$0xff] (!%p218_p3)   ;;  %3316 = vmatprep.subr.bf16.mxu0 (!%p218_p3), %v3877_v0  ;;  %3836 = vmatprep.subr.bf16.mxu1 (!%p218_p3), %v3877_v0  ;;  %p275_p4 = scmp.lt.s32.totalorder (!%p218_p3), %s3092_s21, 63  ;;  %v3880_v3 = vld [vmem:[%s4999_s1 + $0x8] sm:$0xff] (!%p218_p3)   ;;  %v3882_v5 = vld [vmem:[%s4999_s1 + $0x10] sm:$0xff] (!%p218_p3)  }
   0x8   : > { %3317 = vmatpush3.bf16.msra.mxu0 (!%p218_p3), %v3878_v1  ;;  %3844 = vmatpush3.bf16.msra.mxu1 (!%p218_p3), %v3878_v1  ;;  %v3883_v6 = vld [vmem:[%s4999_s1 + $0x58] sm:$0xff] (!%p218_p3)   ;;  %v3885_v8 = vld [vmem:[%s4999_s1 + $0x60] sm:$0xff] (!%p218_p3)   ;;  %v3887_v10 = vld [vmem:[%s4999_s1 + $0x68] sm:$0xff] (!%p218_p3)  }
   0x9   : > { %3318 = vmatprep.subr.bf16.mxu0 (!%p218_p3), %v3879_v2  ;;  %3837 = vmatprep.subr.bf16.mxu1 (!%p218_p3), %v3879_v2  ;;  %v3884_v7 = vld [vmem:[%s4999_s1 + $0x18] sm:$0xff] (!%p218_p3)   ;;  %v3886_v9 = vld [vmem:[%s4999_s1 + $0x20] sm:$0xff] (!%p218_p3)   ;;  %v3888_v13 = vld [vmem:[%s4999_s1 + $0x28] sm:$0xff] (!%p218_p3)  }
   0xa   : > { %v3889_v14 = vld [vmem:[%s4999_s1 + $0x70] sm:$0xff] (!%p218_p3)   ;;  %v3891_v16 = vld [vmem:[%s4999_s1 + $0x78] sm:$0xff] (!%p218_p3)   ;;  %v3899_v18 = vld [vmem:[%s4999_s1 + $0xc0] sm:$0xff] (!%p218_p3)  }
   0xb   : > { %v3890_v15 = vld [vmem:[%s4999_s1 + $0x30] sm:$0xff] (!%p218_p3)   ;;  %v3892_v17 = vld [vmem:[%s4999_s1 + $0x38] sm:$0xff] (!%p218_p3)   ;;  %v3900_v21 = vld [vmem:[%s4999_s1 + $0x140] sm:$0xff] (!%p218_p3)  }
   0xc   : > { %3319 = vmatpush3.bf16.msra.mxu0 (!%p218_p3), %v3880_v3  ;;  %3845 = vmatpush3.bf16.msra.mxu1 (!%p218_p3), %v3880_v3  ;;  %v3901_v22 = vld [vmem:[%s4999_s1 + $0x80] sm:$0xff] (!%p218_p3)   ;;  %v3903_v24 = vld [vmem:[%s4999_s1 + $0xc8] sm:$0xff] (!%p218_p3)   ;;  %v3911_v32 = vld [vmem:[%s4999_s1 + $0xd0] sm:$0xff] (!%p218_p3)  }
   0xd   : > { %3320 = vmatprep.subr.bf16.mxu0 (!%p218_p3), %v3881_v4  ;;  %3838 = vmatprep.subr.bf16.mxu1 (!%p218_p3), %v3881_v4  ;;  %v3902_v23 = vld [vmem:[%s4999_s1 + $0x100] sm:$0xff] (!%p218_p3)   ;;  %v3914_v27 = vld [vmem:[%s4999_s1 + $0x148] sm:$0xff] (!%p218_p3)   ;;  %v3912_v33 = vld [vmem:[%s4999_s1 + $0x90] sm:$0xff] (!%p218_p3)  }
   0xe   : > { %s5008_s21 = smov (!%p275_p4, %s3092_s21), 63  ;;  %v3904_v28 = vld [vmem:[%s4999_s1 + $0x88] sm:$0xff]   ;;  %v3913_v34 = vld [vmem:[%s4999_s1 + $0xd8] sm:$0xff]   ;;  %v3923_v38 = vld [vmem:[%s4999_s1 + $0xe0] sm:$0xff]   ;;  %s5010_s15 = smov (!%p303_p5, %s4171_s15), 1 }
   0xf   : > { %s3852_s8 = smul.u32 36, %s5008_s21  ;;  %v3916_v29 = vld [vmem:[%s4999_s1 + $0x108] sm:$0xff]   ;;  %v3915_v37 = vld [vmem:[%s4999_s1 + $0x98] sm:$0xff]   ;;  %v3934_v41 = vld [vmem:[%s4999_s1 + $0x150] sm:$0xff]  }
  0x10   : > { %3321 = vmatpush3.bf16.msra.mxu0 %v3882_v5  ;;  %3846 = vmatpush3.bf16.msra.mxu1 %v3882_v5  ;;  %v3924_v42 = vld [vmem:[%s4999_s1 + $0xa0] sm:$0xff]   ;;  %v3925_v43 = vld [vmem:[%s4999_s1 + $0xe8] sm:$0xff]   ;;  %v3936_v44 = vld [vmem:[%s4999_s1 + $0x110] sm:$0xff]  }
  0x11   : > { %3322 = vmatprep.subr.bf16.mxu0 %v3883_v6  ;;  %3839 = vmatprep.subr.bf16.mxu1 %v3883_v6  ;;  %s4260_s19 = scalar_lea.vmem %s4998_s0, %s3852_s8  ;;  %v3926_v47 = vld [vmem:[%s4999_s1 + $0xa8] sm:$0xff]   ;;  %v3933_v50 = vld [vmem:[%s4999_s1 + $0xf0] sm:$0xff]   ;;  %v3937_v53 = vld [vmem:[%s4999_s1 + $0xf8] sm:$0xff]  }
  0x12   : > { %v3895_v11 = vld [vmem:[%s4260_s19 + $0x4] ss:$36 sps:$4 sm:$0xff]   ;;  %v3905_v25 = vld [vmem:[%s4260_s19 + $0x4c] ss:$36 sps:$4 sm:$0xff]   ;;  %v3917_v35 = vld [vmem:[%s4260_s19 + $0x94] ss:$36 sps:$4 sm:$0xff]  }
  0x13   : > { %v3898_v12 = vld [vmem:[%s4260_s19 + $0x364] ss:$36 sps:$4 sm:$0xff]   ;;  %1890 = vmatprep.mubr.bf16.mxu0 %v3895_v11  ;;  %v3907_v26 = vld [vmem:[%s4260_s19 + $0x3ac] ss:$36 sps:$4 sm:$0xff]   ;;  %v3919_v36 = vld [vmem:[%s4260_s19 + $0x3f4] ss:$36 sps:$4 sm:$0xff]  }
  0x14   : > { %3323 = vmatpush3.bf16.msra.mxu0 %v3884_v7  ;;  %3847 = vmatpush3.bf16.msra.mxu1 %v3884_v7  ;;  %v3893_v19 = vld [vmem:[%s4260_s19] ss:$36 sps:$4 sm:$0xff]   ;;  %v3909_v30 = vld [vmem:[%s4260_s19 + $0x48] ss:$36 sps:$4 sm:$0xff]   ;;  %v3921_v39 = vld [vmem:[%s4260_s19 + $0x90] ss:$36 sps:$4 sm:$0xff]  }
  0x15   : > { %3324 = vmatprep.subr.bf16.mxu0 %v3885_v8  ;;  %3840 = vmatprep.subr.bf16.mxu1 %v3885_v8  ;;  %v3896_v20 = vld [vmem:[%s4260_s19 + $0x360] ss:$36 sps:$4 sm:$0xff]   ;;  %v3910_v31 = vld [vmem:[%s4260_s19 + $0x3a8] ss:$36 sps:$4 sm:$0xff]   ;;  %v3922_v40 = vld [vmem:[%s4260_s19 + $0x3f0] ss:$36 sps:$4 sm:$0xff]  }
  0x16   : > { %1986 = vmatprep.mubr.bf16.mxu1 %v3898_v12  ;;  %v3927_v45 = vld [vmem:[%s4260_s19 + $0xdc] ss:$36 sps:$4 sm:$0xff]   ;;  %v3935_v51 = vld [vmem:[%s4999_s1 + $0xb0] sm:$0xff]   ;;  %v3939_v52 = vld [vmem:[%s4260_s19 + $0x124] ss:$36 sps:$4 sm:$0xff]  }
  0x17   : > { %v3929_v46 = vld [vmem:[%s4260_s19 + $0x43c] ss:$36 sps:$4 sm:$0xff]   ;;  %v3943_v56 = vld [vmem:[%s4260_s19 + $0xc] ss:$36 sps:$4 sm:$0xff]   ;;  %v3951_v0 = vld [vmem:[%s4260_s19 + $0x54] ss:$36 sps:$4 sm:$0xff]  }
  0x18   : > { %3325 = vmatpush3.bf16.msra.mxu0 %v3886_v9  ;;  %3848 = vmatpush3.bf16.msra.mxu1 %v3886_v9  ;;  %v3931_v48 = vld [vmem:[%s4260_s19 + $0xd8] ss:$36 sps:$4 sm:$0xff]   ;;  %v3941_v58 = vld [vmem:[%s4260_s19 + $0x8] ss:$36 sps:$4 sm:$0xff]   ;;  %v3944_v59 = vld [vmem:[%s4260_s19 + $0x120] ss:$36 sps:$4 sm:$0xff]  }
  0x19   : > { %3326 = vmatprep.subr.bf16.mxu0 %v3887_v10  ;;  %3841 = vmatprep.subr.bf16.mxu1 %v3887_v10  ;;  %v3932_v49 = vld [vmem:[%s4260_s19 + $0x438] ss:$36 sps:$4 sm:$0xff]   ;;  %v3945_v60 = vld [vmem:[%s4999_s1 + $0x1c0] sm:$0xff]   ;;  %v3949_v62 = vld [vmem:[%s4260_s19 + $0x16c] ss:$36 sps:$4 sm:$0xff]  }
  0x1a   : > { %v3947_v54 = vld [vmem:[%s4999_s1 + $0x158] sm:$0xff]   ;;  %v3946_v61 = vld [vmem:[%s4999_s1 + $0x180] sm:$0xff]   ;;  %v3962_v2 = vld [vmem:[%s4999_s1 + $0x1c8] sm:$0xff]  }
  0x1b   : > { %v3948_v55 = vld [vmem:[%s4999_s1 + $0x118] sm:$0xff]   ;;  %v3961_v63 = vld [vmem:[%s4999_s1 + $0x160] sm:$0xff]   ;;  %v3964_v3 = vld [vmem:[%s4999_s1 + $0x188] sm:$0xff]  }
  0x1c   : > { %3327 = vmatpush3.bf16.msra.mxu0 %v3888_v13  ;;  %3849 = vmatpush3.bf16.msra.mxu1 %v3888_v13  ;;  %v3938_v57 = vld [vmem:[%s4999_s1 + $0xb8] sm:$0xff]   ;;  %v3963_v1 = vld [vmem:[%s4999_s1 + $0x120] sm:$0xff]   ;;  %v3953_v4 = vld [vmem:[%s4260_s19 + $0x168] ss:$36 sps:$4 sm:$0xff]  }
  0x1d   : > { %3328 = vmatprep.subr.bf16.mxu0 %v3889_v14  ;;  %3842 = vmatprep.subr.bf16.mxu1 %v3889_v14  ;;  %v3971_v5 = vld [vmem:[%s4999_s1 + $0x168] sm:$0xff]   ;;  %v3954_v7 = vld [vmem:[%s4260_s19 + $0x50] ss:$36 sps:$4 sm:$0xff]   ;;  %v3957_v9 = vld [vmem:[%s4260_s19 + $0x9c] ss:$36 sps:$4 sm:$0xff]  }
  0x1e   : > { %v3972_v6 = vld [vmem:[%s4999_s1 + $0x128] sm:$0xff]   ;;  %v3955_v8 = vld [vmem:[%s4260_s19 + $0x1b4] ss:$36 sps:$4 sm:$0xff]   ;;  %v3965_v14 = vld [vmem:[%s4260_s19 + $0x1fc] ss:$36 sps:$4 sm:$0xff]  }
  0x1f   : > { %v3979_v10 = vld [vmem:[%s4999_s1 + $0x1d0] sm:$0xff]   ;;  %v3960_v13 = vld [vmem:[%s4260_s19 + $0x98] ss:$36 sps:$4 sm:$0xff]  }
  0x20   : > { %3329 = vmatpush3.bf16.msra.mxu0 %v3890_v15  ;;  %3850 = vmatpush3.bf16.msra.mxu1 %v3890_v15  ;;  %v3980_v11 = vld [vmem:[%s4999_s1 + $0x190] sm:$0xff]  }
  0x21   : > { %3330 = vmatprep.subr.bf16.mxu0 %v3891_v16  ;;  %3843 = vmatprep.subr.bf16.mxu1 %v3891_v16  ;;  %v3959_v12 = vld [vmem:[%s4260_s19 + $0x1b0] ss:$36 sps:$4 sm:$0xff]  }
  0x22   : > { %v3987_v15 = vld [vmem:[%s4999_s1 + $0x170] sm:$0xff]  }
  0x23   : > { %v3988_v16 = vld [vmem:[%s4999_s1 + $0x130] sm:$0xff]  }
  0x24   : > { %3331 = vmatpush3.bf16.msra.mxu0 %v3892_v17  ;;  %3851 = vmatpush3.bf16.msra.mxu1 %v3892_v17  ;;  %v3967_v17 = vld [vmem:[%s4260_s19 + $0xe4] ss:$36 sps:$4 sm:$0xff]  }
  0x25   : > { %3428 = vmatprep.subr.bf16.mxu1 %v3899_v18  ;;  %3540 = vmatprep.subr.bf16.mxu0 %v3900_v21  ;;  %v3995_v18 = vld [vmem:[%s4999_s1 + $0x1d8] sm:$0xff]  }
  0x26   : > { %v3997_v21 = vld [vmem:[%s4999_s1 + $0x178] sm:$0xff]  }
  0x27   : > { %1891 = vmatmul.mubr.bf16.vlgmr.msra.gmra.mrb[0].mxu0 %v3893_v19  ;;  %1987 = vmatmul.mubr.bf16.vlgmr.msra.gmra.mrb[0].mxu1 %v3896_v20  ;;  %v3996_v19 = vld [vmem:[%s4999_s1 + $0x198] sm:$0xff]  }
  0x28   : > { %3429 = vmatpush3.bf16.msra.mxu1 %v3901_v22  ;;  %3541 = vmatpush3.bf16.msra.mxu0 %v3902_v23  ;;  %v3969_v20 = vld [vmem:[%s4260_s19 + $0x1f8] ss:$36 sps:$4 sm:$0xff]   ;;  %v3970_v23 = vld [vmem:[%s4260_s19 + $0xe0] ss:$36 sps:$4 sm:$0xff]  }
  0x29   : > { %3430 = vmatprep.subr.bf16.mxu1 %v3903_v24  ;;  %1898 = vmatprep.mubr.bf16.mxu0 %v3905_v25  ;;  %v3998_v22 = vld [vmem:[%s4999_s1 + $0x138] sm:$0xff]   ;;  %v3973_v24 = vld [vmem:[%s4260_s19 + $0x244] ss:$36 sps:$4 sm:$0xff]   ;;  %v3975_v25 = vld [vmem:[%s4260_s19 + $0x12c] ss:$36 sps:$4 sm:$0xff]  }
  0x2a   : > { %1994 = vmatprep.mubr.bf16.mxu1 %v3907_v26  ;;  %3542 = vmatprep.subr.bf16.mxu0 %v3914_v27  ;;  %v4011_v26 = vld [vmem:[%s4999_s1 + $0x1e0] sm:$0xff]  }
  0x2b   : > { %v3977_v27 = vld [vmem:[%s4260_s19 + $0x240] ss:$36 sps:$4 sm:$0xff]  }
  0x2c   : > { %3431 = vmatpush3.bf16.msra.mxu1 %v3904_v28  ;;  %3543 = vmatpush3.bf16.msra.mxu0 %v3916_v29  ;;  %v4012_v28 = vld [vmem:[%s4999_s1 + $0x200] sm:$0xff]  }
  0x2d   : > { %3432 = vmatprep.subr.bf16.mxu1 %v3911_v32  ;;  %3544 = vmatprep.subr.bf16.mxu0 %v3934_v41  ;;  %v4013_v29 = vld [vmem:[%s4999_s1 + $0x1a0] sm:$0xff]   ;;  %v3983_v32 = vld [vmem:[%s4260_s19 + $0x174] ss:$36 sps:$4 sm:$0xff]  }
  0x2e   : > { %v4041_v41 = vld [vmem:[%s4999_s1 + $0x1f0] sm:$0xff]  }
  0x2f   : > { %1899 = vmatmul.mubr.bf16.gmra.mrb[4].mxu0 %v3909_v30  ;;  %1995 = vmatmul.mubr.bf16.gmra.mrb[4].mxu1 %v3910_v31  ;;  %v3978_v30 = vld [vmem:[%s4260_s19 + $0x128] ss:$36 sps:$4 sm:$0xff]  }
  0x30   : > { %3433 = vmatpush3.bf16.msra.mxu1 %v3912_v33  ;;  %1906 = vmatprep.mubr.bf16.mxu0 %v3917_v35  ;;  %v3981_v31 = vld [vmem:[%s4260_s19 + $0x28c] ss:$36 sps:$4 sm:$0xff]  }
  0x31   : > { %3434 = vmatprep.subr.bf16.mxu1 %v3913_v34  ;;  %2002 = vmatprep.mubr.bf16.mxu1 %v3919_v36  ;;  %v4026_v33 = vld [vmem:[%s4999_s1 + $0x1e8] sm:$0xff]   ;;  %v3986_v35 = vld [vmem:[%s4260_s19 + $0x170] ss:$36 sps:$4 sm:$0xff]  }
  0x32   : > { %3545 = vmatpush3.bf16.msra.mxu0 %v3936_v44  ;;  %v3985_v34 = vld [vmem:[%s4260_s19 + $0x288] ss:$36 sps:$4 sm:$0xff]  }
  0x33   : > { %3546 = vmatprep.subr.bf16.mxu0 %v3947_v54  ;;  %v4028_v36 = vld [vmem:[%s4999_s1 + $0x1a8] sm:$0xff]   ;;  %v4016_v54 = vld [vmem:[%s4260_s19 + $0x5c] ss:$36 sps:$4 sm:$0xff]  }
  0x34   : > { %3435 = vmatpush3.bf16.msra.mxu1 %v3915_v37  ;;  %v3989_v37 = vld [vmem:[%s4260_s19 + $0x2d4] ss:$36 sps:$4 sm:$0xff]   ;;  %v4001_v44 = vld [vmem:[%s4260_s19 + $0x204] ss:$36 sps:$4 sm:$0xff]  }
  0x35   : > { %3436 = vmatprep.subr.bf16.mxu1 %v3923_v38  ;;  %v3991_v38 = vld [vmem:[%s4260_s19 + $0x1bc] ss:$36 sps:$4 sm:$0xff]  }
  0x36   : > { %3547 = vmatpush3.bf16.msra.mxu0 %v3948_v55  ;;  %v4027_v55 = vld [vmem:[%s4999_s1 + $0x208] sm:$0xff]  }
  0x37   : > { %1907 = vmatmul.mubr.bf16.gmra.mrb[8].mxu0 %v3921_v39  ;;  %2003 = vmatmul.mubr.bf16.gmra.mrb[8].mxu1 %v3922_v40  ;;  %v3993_v39 = vld [vmem:[%s4260_s19 + $0x2d0] ss:$36 sps:$4 sm:$0xff]   ;;  %v3994_v40 = vld [vmem:[%s4260_s19 + $0x1b8] ss:$36 sps:$4 sm:$0xff]  }
  0x38   : > { %3437 = vmatpush3.bf16.msra.mxu1 %v3924_v42  ;;  %1914 = vmatprep.mubr.bf16.mxu0 %v3927_v45  ;;  %v3999_v42 = vld [vmem:[%s4260_s19 + $0x31c] ss:$36 sps:$4 sm:$0xff]  }
  0x39   : > { %3438 = vmatprep.subr.bf16.mxu1 %v3925_v43  ;;  %2010 = vmatprep.mubr.bf16.mxu1 %v3929_v46  ;;  %v4043_v43 = vld [vmem:[%s4999_s1 + $0x1b0] sm:$0xff]   ;;  %v4003_v45 = vld [vmem:[%s4260_s19 + $0x318] ss:$36 sps:$4 sm:$0xff]   ;;  %v4004_v46 = vld [vmem:[%s4260_s19 + $0x200] ss:$36 sps:$4 sm:$0xff]  }
  0x3a   : > { %3548 = vmatprep.subr.bf16.mxu0 %v3961_v63  ;;  %v4024_v63 = vld [vmem:[%s4260_s19 + $0x2d8] ss:$36 sps:$4 sm:$0xff]  }
  0x3b   : > { %3549 = vmatpush3.bf16.msra.mxu0 %v3963_v1  ;;  %v4029_v1 = vld [vmem:[%s4260_s19 + $0x324] ss:$36 sps:$4 sm:$0xff]  }
  0x3c   : > { %3439 = vmatpush3.bf16.msra.mxu1 %v3926_v47  ;;  %3550 = vmatprep.subr.bf16.mxu0 %v3971_v5  ;;  %v4056_v47 = vld [vmem:[%s4999_s1 + $0x1f8] sm:$0xff]   ;;  %v4034_v5 = vld [vmem:[%s4260_s19 + $0xe8] ss:$36 sps:$4 sm:$0xff]  }
  0x3d   : > { %3440 = vmatprep.subr.bf16.mxu1 %v3933_v50  ;;  %v4009_v50 = vld [vmem:[%s4260_s19 + $0x14] ss:$36 sps:$4 sm:$0xff]  }
  0x3f   : > { %1915 = vmatmul.mubr.bf16.gmra.mrb[12].mxu0 %v3931_v48  ;;  %2011 = vmatmul.mubr.bf16.gmra.mrb[12].mxu1 %v3932_v49  ;;  %v4005_v48 = vld [vmem:[%s4260_s19 + $0x24c] ss:$36 sps:$4 sm:$0xff]   ;;  %v4058_v49 = vld [vmem:[%s4999_s1 + $0x1b8] sm:$0xff]  }
  0x40   : > { %3441 = vmatpush3.bf16.msra.mxu1 %v3935_v51  ;;  %1922 = vmatprep.mubr.bf16.mxu0 %v3939_v52  ;;  %v4007_v51 = vld [vmem:[%s4260_s19 + $0x10] ss:$36 sps:$4 sm:$0xff]   ;;  %v4010_v52 = vld [vmem:[%s4260_s19 + $0x248] ss:$36 sps:$4 sm:$0xff]  }
  0x41   : > { %3442 = vmatprep.subr.bf16.mxu1 %v3937_v53  ;;  %2051 = vmatprep.mubr.bf16.mxu1 %v3943_v56  ;;  %v4014_v53 = vld [vmem:[%s4260_s19 + $0x294] ss:$36 sps:$4 sm:$0xff]  }
  0x42   : > { %3551 = vmatpush3.bf16.msra.mxu0 %v3972_v6  ;;  %v4042_v56 = vld [vmem:[%s4999_s1 + $0x210] sm:$0xff]  }
  0x43   : > { %3552 = vmatprep.subr.bf16.mxu0 %v3987_v15  ;;  %v4097_v6 = vld [vmem:[%s4999_s1 + $0x230] sm:$0xff]   ;;  %v4049_v15 = vld [vmem:[%s4260_s19 + $0x178] ss:$36 sps:$4 sm:$0xff]  }
  0x44   : > { %3443 = vmatpush3.bf16.msra.mxu1 %v3938_v57  ;;  %v4018_v57 = vld [vmem:[%s4260_s19 + $0x290] ss:$36 sps:$4 sm:$0xff]  }
  0x45   : > { %3652 = vmatprep.subr.bf16.mxu1 %v3945_v60  ;;  %v4022_v60 = vld [vmem:[%s4260_s19 + $0xa4] ss:$36 sps:$4 sm:$0xff]  }
  0x46   : > { %3553 = vmatpush3.bf16.msra.mxu0 %v3988_v16  ;;  %v4050_v16 = vld [vmem:[%s4260_s19 + $0x3fc] ss:$36 sps:$4 sm:$0xff]  }
  0x47   : > { %1923 = vmatmul.mubr.bf16.gmra.mrb[16].mxu0 %v3944_v59  ;;  %2052 = vmatmul.mubr.bf16.vlgmr.msra.gmra.mrb[16].mxu1 %v3941_v58  ;;  %v4019_v58 = vld [vmem:[%s4260_s19 + $0x58] ss:$36 sps:$4 sm:$0xff]  }
  0x48   : > { %3653 = vmatpush3.bf16.msra.mxu1 %v3946_v61  ;;  %1930 = vmatprep.mubr.bf16.mxu0 %v3949_v62  ;;  %v4020_v59 = vld [vmem:[%s4260_s19 + $0x2dc] ss:$36 sps:$4 sm:$0xff]  }
  0x49   : > { %2059 = vmatprep.mubr.bf16.mxu1 %v3951_v0  ;;  %3654 = vmatprep.subr.bf16.mxu1 %v3962_v2  ;;  %v4057_v61 = vld [vmem:[%s4999_s1 + $0x218] sm:$0xff]   ;;  %v4071_v62 = vld [vmem:[%s4999_s1 + $0x220] sm:$0xff]   ;;  %v4031_v2 = vld [vmem:[%s4260_s19 + $0xec] ss:$36 sps:$4 sm:$0xff]  }
  0x4a   : > { %3554 = vmatprep.subr.bf16.mxu0 %v3997_v21  ;;  %v4025_v0 = vld [vmem:[%s4260_s19 + $0xa0] ss:$36 sps:$4 sm:$0xff]   ;;  %v4061_v21 = vld [vmem:[%s4260_s19 + $0x20c] ss:$36 sps:$4 sm:$0xff]  }
  0x4b   : > { %3555 = vmatpush3.bf16.msra.mxu0 %v3998_v22  ;;  %v4063_v22 = vld [vmem:[%s4260_s19 + $0x440] ss:$36 sps:$4 sm:$0xff]  }
  0x4c   : > { %3655 = vmatpush3.bf16.msra.mxu1 %v3964_v3  ;;  %3788 = vmatprep.subr.bf16.mxu0 %v4012_v28  ;;  %v4084_v3 = vld [vmem:[%s4999_s1 + $0x228] sm:$0xff]  }
  0x4d   : > { %3656 = vmatprep.subr.bf16.mxu1 %v3979_v10  ;;  %v4039_v10 = vld [vmem:[%s4260_s19 + $0x368] ss:$36 sps:$4 sm:$0xff]  }
  0x4f   : > { %1931 = vmatmul.mubr.bf16.gmra.mrb[20].mxu0 %v3953_v4  ;;  %2060 = vmatmul.mubr.bf16.gmra.mrb[20].mxu1 %v3954_v7  ;;  %v4033_v4 = vld [vmem:[%s4260_s19 + $0x320] ss:$36 sps:$4 sm:$0xff]   ;;  %v4035_v7 = vld [vmem:[%s4260_s19 + $0x36c] ss:$36 sps:$4 sm:$0xff]  }
  0x50   : > { %1938 = vmatprep.mubr.bf16.mxu0 %v3955_v8  ;;  %2067 = vmatprep.mubr.bf16.mxu1 %v3957_v9  ;;  %v4037_v8 = vld [vmem:[%s4260_s19 + $0x134] ss:$36 sps:$4 sm:$0xff]  }
  0x51   : > { %3657 = vmatpush3.bf16.msra.mxu1 %v3980_v11  ;;  %v4110_v9 = vld [vmem:[%s4999_s1 + $0x238] sm:$0xff]   ;;  %v4040_v11 = vld [vmem:[%s4260_s19 + $0x130] ss:$36 sps:$4 sm:$0xff]  }
  0x52   : > { %3658 = vmatprep.subr.bf16.mxu1 %v3995_v18  ;;  %v4054_v18 = vld [vmem:[%s4260_s19 + $0x3f8] ss:$36 sps:$4 sm:$0xff]  }
  0x55   : > { %3659 = vmatpush3.bf16.msra.mxu1 %v3996_v19  ;;  %v4055_v19 = vld [vmem:[%s4260_s19 + $0x1c0] ss:$36 sps:$4 sm:$0xff]  }
  0x56   : > { %3660 = vmatprep.subr.bf16.mxu1 %v4011_v26  ;;  %v4067_v26 = vld [vmem:[%s4260_s19 + $0x18] ss:$36 sps:$4 sm:$0xff]  }
  0x57   : > { %1939 = vmatmul.mubr.bf16.gmra.mrb[24].mxu0 %v3959_v12  ;;  %2068 = vmatmul.mubr.bf16.gmra.mrb[24].mxu1 %v3960_v13  ;;  %v4044_v12 = vld [vmem:[%s4260_s19 + $0x3b4] ss:$36 sps:$4 sm:$0xff]   ;;  %v4046_v13 = vld [vmem:[%s4260_s19 + $0x17c] ss:$36 sps:$4 sm:$0xff]  }
  0x58   : > { %1946 = vmatprep.mubr.bf16.mxu0 %v3965_v14  ;;  %2075 = vmatprep.mubr.bf16.mxu1 %v3967_v17  ;;  %v4048_v14 = vld [vmem:[%s4260_s19 + $0x3b0] ss:$36 sps:$4 sm:$0xff]   ;;  %v4052_v17 = vld [vmem:[%s4260_s19 + $0x1c4] ss:$36 sps:$4 sm:$0xff]  }
  0x59   : > { %3661 = vmatpush3.bf16.msra.mxu1 %v4013_v29  ;;  %v4074_v29 = vld [vmem:[%s4260_s19 + $0x64] ss:$36 sps:$4 sm:$0xff]  }
  0x5a   : > { %3662 = vmatprep.subr.bf16.mxu1 %v4026_v33  ;;  %v4080_v33 = vld [vmem:[%s4260_s19 + $0xac] ss:$36 sps:$4 sm:$0xff]  }
  0x5d   : > { %3663 = vmatpush3.bf16.msra.mxu1 %v4028_v36  ;;  %v4085_v36 = vld [vmem:[%s4260_s19 + $0x32c] ss:$36 sps:$4 sm:$0xff]  }
  0x5e   : > { %3664 = vmatprep.subr.bf16.mxu1 %v4041_v41  ;;  %v4093_v41 = vld [vmem:[%s4260_s19 + $0x13c] ss:$36 sps:$4 sm:$0xff]  }
  0x5f   : > { %1947 = vmatmul.mubr.bf16.gmra.mrb[28].mxu0 %v3969_v20  ;;  %2076 = vmatmul.mubr.bf16.gmra.mrb[28].mxu1 %v3970_v23  ;;  %v4059_v20 = vld [vmem:[%s4260_s19 + $0x444] ss:$36 sps:$4 sm:$0xff]  }
  0x60   : > { %1954 = vmatprep.mubr.bf16.mxu0 %v3973_v24  ;;  %2083 = vmatprep.mubr.bf16.mxu1 %v3975_v25  ;;  %v4064_v23 = vld [vmem:[%s4260_s19 + $0x208] ss:$36 sps:$4 sm:$0xff]   ;;  %v4065_v24 = vld [vmem:[%s4260_s19 + $0x254] ss:$36 sps:$4 sm:$0xff]   ;;  %v4069_v25 = vld [vmem:[%s4260_s19 + $0x1c] ss:$36 sps:$4 sm:$0xff]  }
  0x61   : > { %3665 = vmatpush3.bf16.msra.mxu1 %v4043_v43  ;;  %v4096_v43 = vld [vmem:[%s4260_s19 + $0x138] ss:$36 sps:$4 sm:$0xff]  }
  0x62   : > { %3666 = vmatprep.subr.bf16.mxu1 %v4056_v47  ;;  %v4103_v47 = vld [vmem:[%s4260_s19 + $0x180] ss:$36 sps:$4 sm:$0xff]  }
  0x65   : > { %3667 = vmatpush3.bf16.msra.mxu1 %v4058_v49  ;;  %v4106_v49 = vld [vmem:[%s4260_s19 + $0x1cc] ss:$36 sps:$4 sm:$0xff]  }
  0x67   : > { %1955 = vmatmul.mubr.bf16.gmra.mrb[32].mxu0 %v3977_v27  ;;  %2084 = vmatmul.mubr.bf16.gmra.mrb[32].mxu1 %v3978_v30  ;;  %v4070_v27 = vld [vmem:[%s4260_s19 + $0x250] ss:$36 sps:$4 sm:$0xff]   ;;  %v4076_v30 = vld [vmem:[%s4260_s19 + $0x298] ss:$36 sps:$4 sm:$0xff]  }
  0x68   : > { %1962 = vmatprep.mubr.bf16.mxu0 %v3981_v31  ;;  %2091 = vmatprep.mubr.bf16.mxu1 %v3983_v32  ;;  %v4077_v31 = vld [vmem:[%s4260_s19 + $0x60] ss:$36 sps:$4 sm:$0xff]  }
  0x69   : > { %v4078_v32 = vld [vmem:[%s4260_s19 + $0x2e4] ss:$36 sps:$4 sm:$0xff]  }
  0x6f   : > { %1963 = vmatmul.mubr.bf16.gmra.mrb[36].mxu0 %v3985_v34  ;;  %2092 = vmatmul.mubr.bf16.gmra.mrb[36].mxu1 %v3986_v35  ;;  %v4082_v34 = vld [vmem:[%s4260_s19 + $0x2e0] ss:$36 sps:$4 sm:$0xff]   ;;  %v4083_v35 = vld [vmem:[%s4260_s19 + $0xa8] ss:$36 sps:$4 sm:$0xff]  }
  0x70   : > { %1970 = vmatprep.mubr.bf16.mxu0 %v3989_v37  ;;  %2099 = vmatprep.mubr.bf16.mxu1 %v3991_v38  ;;  %v4087_v37 = vld [vmem:[%s4260_s19 + $0xf4] ss:$36 sps:$4 sm:$0xff]   ;;  %v4089_v38 = vld [vmem:[%s4260_s19 + $0x328] ss:$36 sps:$4 sm:$0xff]  }
  0x77   : > { %1971 = vmatmul.mubr.bf16.gmra.mrb[40].mxu0 %v3993_v39  ;;  %2100 = vmatmul.mubr.bf16.gmra.mrb[40].mxu1 %v3994_v40  ;;  %v4090_v39 = vld [vmem:[%s4260_s19 + $0xf0] ss:$36 sps:$4 sm:$0xff]  }
  0x78   : > { %1978 = vmatprep.mubr.bf16.mxu0 %v3999_v42  ;;  %2107 = vmatprep.mubr.bf16.mxu1 %v4001_v44  ;;  %v4091_v40 = vld [vmem:[%s4260_s19 + $0x374] ss:$36 sps:$4 sm:$0xff]   ;;  %v4098_v44 = vld [vmem:[%s4260_s19 + $0x3bc] ss:$36 sps:$4 sm:$0xff]  }
  0x79   : > { %v4095_v42 = vld [vmem:[%s4260_s19 + $0x370] ss:$36 sps:$4 sm:$0xff]  }
  0x7f   : > { %1979 = vmatmul.mubr.bf16.gmra.mrb[44].mxu0 %v4003_v45  ;;  %2108 = vmatmul.mubr.bf16.gmra.mrb[44].mxu1 %v4004_v46  ;;  %v4100_v45 = vld [vmem:[%s4260_s19 + $0x184] ss:$36 sps:$4 sm:$0xff]   ;;  %v4102_v46 = vld [vmem:[%s4260_s19 + $0x3b8] ss:$36 sps:$4 sm:$0xff]  }
  0x80   : > { %2115 = vmatprep.mubr.bf16.mxu1 %v4005_v48  ;;  %2212 = vmatprep.mubr.bf16.mxu0 %v4009_v50  ;;  %v4104_v48 = vld [vmem:[%s4260_s19 + $0x404] ss:$36 sps:$4 sm:$0xff]  }
  0x81   : > { %v4108_v50 = vld [vmem:[%s4260_s19 + $0x400] ss:$36 sps:$4 sm:$0xff]  }
  0x87   : > { %2116 = vmatmul.mubr.bf16.gmra.mrb[48].mxu1 %v4010_v52  ;;  %2213 = vmatmul.mubr.bf16.vlgmr.msra.gmra.mrb[48].mxu0 %v4007_v51  ;;  %v4109_v51 = vld [vmem:[%s4260_s19 + $0x1c8] ss:$36 sps:$4 sm:$0xff]  }
  0x88   : > { %3789 = vmatpush3.bf16.msra.mxu0 %v4012_v28  ;;  %2123 = vmatprep.mubr.bf16.mxu1 %v4014_v53  ;;  %v4072_v28 = vld [vmem:[%s4260_s19 + $0x29c] ss:$36 sps:$4 sm:$0xff]   ;;  %v4111_v52 = vld [vmem:[%s4260_s19 + $0x44c] ss:$36 sps:$4 sm:$0xff]   ;;  %v4113_v53 = vld [vmem:[%s4260_s19 + $0x214] ss:$36 sps:$4 sm:$0xff]  }
  0x89   : > { %2220 = vmatprep.mubr.bf16.mxu0 %v4016_v54  ;;  %3790 = vmatprep.subr.bf16.mxu0 %v4027_v55 }
  0x8c   : > { %3791 = vmatpush3.bf16.msra.mxu0 %v4027_v55 }
  0x8d   : > { %3792 = vmatprep.subr.bf16.mxu0 %v4042_v56 }
  0x8f   : > { %2124 = vmatmul.mubr.bf16.gmra.mrb[52].mxu1 %v4018_v57  ;;  %2221 = vmatmul.mubr.bf16.gmra.mrb[52].mxu0 %v4019_v58  ;;  %v4115_v58 = vld [vmem:[%s4260_s19 + $0x448] ss:$36 sps:$4 sm:$0xff]  }
  0x90   : > { %2131 = vmatprep.mubr.bf16.mxu1 %v4020_v59  ;;  %2228 = vmatprep.mubr.bf16.mxu0 %v4022_v60  ;;  %v4116_v59 = vld [vmem:[%s4260_s19 + $0x210] ss:$36 sps:$4 sm:$0xff]  }
  0x91   : > { %3793 = vmatpush3.bf16.msra.mxu0 %v4042_v56 }
  0x92   : > { %3794 = vmatprep.subr.bf16.mxu0 %v4057_v61 }
  0x95   : > { %3795 = vmatpush3.bf16.msra.mxu0 %v4057_v61 }
  0x96   : > { %3796 = vmatprep.subr.bf16.mxu0 %v4071_v62 }
  0x97   : > { %2132 = vmatmul.mubr.bf16.gmra.mrb[56].mxu1 %v4024_v63  ;;  %2229 = vmatmul.mubr.bf16.gmra.mrb[56].mxu0 %v4025_v0  ;;  %v4117_v0 = vld [vmem:[%s4260_s19 + $0x25c] ss:$36 sps:$4 sm:$0xff]  }
  0x98   : > { %2139 = vmatprep.mubr.bf16.mxu1 %v4029_v1  ;;  %2236 = vmatprep.mubr.bf16.mxu0 %v4031_v2  ;;  %v4119_v1 = vld [vmem:[%s4260_s19 + $0x20] ss:$36 sps:$4 sm:$0xff]  }
  0x99   : > { %3797 = vmatpush3.bf16.msra.mxu0 %v4071_v62 }
  0x9a   : > { %3798 = vmatprep.subr.bf16.mxu0 %v4084_v3 }
  0x9d   : > { %3799 = vmatpush3.bf16.msra.mxu0 %v4084_v3 }
  0x9e   : > { %3800 = vmatprep.subr.bf16.mxu0 %v4097_v6 }
  0x9f   : > { %2140 = vmatmul.mubr.bf16.gmra.mrb[60].mxu1 %v4033_v4  ;;  %2237 = vmatmul.mubr.bf16.gmra.mrb[60].mxu0 %v4034_v5 }
  0xa0   : > { %2147 = vmatprep.mubr.bf16.mxu1 %v4035_v7  ;;  %2244 = vmatprep.mubr.bf16.mxu0 %v4037_v8 }
  0xa1   : > { %3801 = vmatpush3.bf16.msra.mxu0 %v4097_v6 }
  0xa2   : > { %3802 = vmatprep.subr.bf16.mxu0 %v4110_v9 }
  0xa5   : > { %3803 = vmatpush3.bf16.msra.mxu0 %v4110_v9 }
  0xa7   : > { %2148 = vmatmul.mubr.bf16.gmra.mrb[64].mxu1 %v4039_v10  ;;  %2245 = vmatmul.mubr.bf16.gmra.mrb[64].mxu0 %v4040_v11  ;;  %v4120_v10 = vld [vmem:[%s4260_s19 + $0x258] ss:$36 sps:$4 sm:$0xff]   ;;  %v4121_v11 = vld [vmem:[%s4260_s19 + $0x68] ss:$36 sps:$4 sm:$0xff]  }
  0xa8   : > { %2155 = vmatprep.mubr.bf16.mxu1 %v4044_v12  ;;  %2252 = vmatprep.mubr.bf16.mxu0 %v4046_v13 }
  0xaf   : > { %2156 = vmatmul.mubr.bf16.gmra.mrb[68].mxu1 %v4048_v14  ;;  %2253 = vmatmul.mubr.bf16.gmra.mrb[68].mxu0 %v4049_v15 }
  0xb0   : > { %2163 = vmatprep.mubr.bf16.mxu1 %v4050_v16  ;;  %2260 = vmatprep.mubr.bf16.mxu0 %v4052_v17  ;;  %v4122_v16 = vld [vmem:[%s4260_s19 + $0x2a4] ss:$36 sps:$4 sm:$0xff]   ;;  %v4124_v17 = vld [vmem:[%s4260_s19 + $0xb0] ss:$36 sps:$4 sm:$0xff]  }
  0xb7   : > { %2164 = vmatmul.mubr.bf16.gmra.mrb[72].mxu1 %v4054_v18  ;;  %2261 = vmatmul.mubr.bf16.gmra.mrb[72].mxu0 %v4055_v19 }
  0xb8   : > { %2171 = vmatprep.mubr.bf16.mxu1 %v4059_v20  ;;  %2268 = vmatprep.mubr.bf16.mxu0 %v4061_v21 }
  0xbf   : > { %2172 = vmatmul.mubr.bf16.gmra.mrb[76].mxu1 %v4063_v22  ;;  %2269 = vmatmul.mubr.bf16.gmra.mrb[76].mxu0 %v4064_v23 }
  0xc0   : > { %2276 = vmatprep.mubr.bf16.mxu0 %v4065_v24  ;;  %2373 = vmatprep.mubr.bf16.mxu1 %v4069_v25 }
  0xc7   : > { %2277 = vmatmul.mubr.bf16.gmra.mrb[80].mxu0 %v4070_v27  ;;  %2374 = vmatmul.mubr.bf16.vlgmr.msra.gmra.mrb[80].mxu1 %v4067_v26  ;;  %v4125_v26 = vld [vmem:[%s4260_s19 + $0x2a0] ss:$36 sps:$4 sm:$0xff]   ;;  %v4126_v27 = vld [vmem:[%s4260_s19 + $0xf8] ss:$36 sps:$4 sm:$0xff]  }
  0xc8   : > { %2284 = vmatprep.mubr.bf16.mxu0 %v4072_v28  ;;  %2381 = vmatprep.mubr.bf16.mxu1 %v4074_v29 }
  0xcf   : > { %2285 = vmatmul.mubr.bf16.gmra.mrb[84].mxu0 %v4076_v30  ;;  %2382 = vmatmul.mubr.bf16.gmra.mrb[84].mxu1 %v4077_v31 }
  0xd0   : > { %2292 = vmatprep.mubr.bf16.mxu0 %v4078_v32  ;;  %2389 = vmatprep.mubr.bf16.mxu1 %v4080_v33  ;;  %v4127_v32 = vld [vmem:[%s4260_s19 + $0x2ec] ss:$36 sps:$4 sm:$0xff]   ;;  %v4129_v33 = vld [vmem:[%s4260_s19 + $0x140] ss:$36 sps:$4 sm:$0xff]  }
  0xd7   : > { %2293 = vmatmul.mubr.bf16.gmra.mrb[88].mxu0 %v4082_v34  ;;  %2390 = vmatmul.mubr.bf16.gmra.mrb[88].mxu1 %v4083_v35 }
  0xd8   : > { %2300 = vmatprep.mubr.bf16.mxu0 %v4085_v36  ;;  %2397 = vmatprep.mubr.bf16.mxu1 %v4087_v37 }
  0xdf   : > { %2301 = vmatmul.mubr.bf16.gmra.mrb[92].mxu0 %v4089_v38  ;;  %2398 = vmatmul.mubr.bf16.gmra.mrb[92].mxu1 %v4090_v39 }
  0xe0   : > { %2308 = vmatprep.mubr.bf16.mxu0 %v4091_v40  ;;  %2405 = vmatprep.mubr.bf16.mxu1 %v4093_v41 }
  0xe7   : > { %2309 = vmatmul.mubr.bf16.gmra.mrb[96].mxu0 %v4095_v42  ;;  %2406 = vmatmul.mubr.bf16.gmra.mrb[96].mxu1 %v4096_v43  ;;  %v4130_v42 = vld [vmem:[%s4260_s19 + $0x2e8] ss:$36 sps:$4 sm:$0xff]  }
  0xe8   : > { %2316 = vmatprep.mubr.bf16.mxu0 %v4098_v44  ;;  %2413 = vmatprep.mubr.bf16.mxu1 %v4100_v45  ;;  %v4131_v43 = vld [vmem:[%s4260_s19 + $0x188] ss:$36 sps:$4 sm:$0xff]  }
  0xef   : > { %2317 = vmatmul.mubr.bf16.gmra.mrb[100].mxu0 %v4102_v46  ;;  %2414 = vmatmul.mubr.bf16.gmra.mrb[100].mxu1 %v4103_v47 }
  0xf0   : > { %2324 = vmatprep.mubr.bf16.mxu0 %v4104_v48  ;;  %2421 = vmatprep.mubr.bf16.mxu1 %v4106_v49  ;;  %v4132_v48 = vld [vmem:[%s4260_s19 + $0x334] ss:$36 sps:$4 sm:$0xff]  }
  0xf1   : > { %v4134_v49 = vld [vmem:[%s4260_s19 + $0x1d0] ss:$36 sps:$4 sm:$0xff]  }
  0xf7   : > { %2325 = vmatmul.mubr.bf16.gmra.mrb[104].mxu0 %v4108_v50  ;;  %2422 = vmatmul.mubr.bf16.gmra.mrb[104].mxu1 %v4109_v51 }
  0xf8   : > { %2332 = vmatprep.mubr.bf16.mxu0 %v4111_v52  ;;  %2429 = vmatprep.mubr.bf16.mxu1 %v4113_v53 }
  0xfa   : > { %v3332_v54 = vpop.f32.mrb[0].mxu0  ;;  %v3404_v55 = vpop.f32.mrb[0].mxu1 }
  0xfb   : > { %v3333_v56 = vpop.f32.mrb[1].mxu0  ;;  %v3405_v57 = vpop.f32.mrb[1].mxu1 }
  0xfc   : > { %v4563_v60 = vadd.f32 %v3333_v56, %v3332_v54  ;;  %v4565_v61 = vadd.f32 %v3405_v57, %v3404_v55  ;;  %v3335_v62 = vpop.f32.mrb[2].mxu0  ;;  %v3407_v63 = vpop.f32.mrb[2].mxu1 }
  0xfd   : > { %v3336_v2 = vpop.f32.mrb[3].mxu0  ;;  %v3408_v3 = vpop.f32.mrb[3].mxu1 }
  0xfe   : > { %v4569_v4 = vadd.f32 %v3336_v2, %v3335_v62  ;;  %v4571_v5 = vadd.f32 %v3408_v3, %v3407_v63  ;;  %v4137_v2 = vld [vmem:[%s4260_s19 + $0x37c] ss:$36 sps:$4 sm:$0xff]  }
  0xff   : > { %2333 = vmatmul.mubr.bf16.gmra.mrb[108].mxu0 %v4115_v58  ;;  %2430 = vmatmul.mubr.bf16.gmra.mrb[108].mxu1 %v4116_v59  ;;  %v4135_v58 = vld [vmem:[%s4260_s19 + $0x330] ss:$36 sps:$4 sm:$0xff]   ;;  %v4136_v59 = vld [vmem:[%s4260_s19 + $0x218] ss:$36 sps:$4 sm:$0xff]   ;;  %v4139_v3 = vld [vmem:[%s4260_s19 + $0x260] ss:$36 sps:$4 sm:$0xff]  }
 0x100   : > { %2437 = vmatprep.mubr.bf16.mxu1 %v4117_v0  ;;  %3804 = vmatprep.mubr.bf16.mxu0 %v4119_v1 }
 0x102   : > { %v3338_v6 = vpop.f32.mrb[4].mxu0  ;;  %v3410_v7 = vpop.f32.mrb[4].mxu1 }
 0x103   : > { %v3339_v8 = vpop.f32.mrb[5].mxu0  ;;  %v3411_v9 = vpop.f32.mrb[5].mxu1 }
 0x104   : > { %v4575_v12 = vadd.f32 %v3339_v8, %v3338_v6  ;;  %v4577_v13 = vadd.f32 %v3411_v9, %v3410_v7  ;;  %v3341_v14 = vpop.f32.mrb[6].mxu0  ;;  %v3413_v15 = vpop.f32.mrb[6].mxu1 }
 0x105   : > { %v3342_v18 = vpop.f32.mrb[7].mxu0  ;;  %v3414_v19 = vpop.f32.mrb[7].mxu1 }
 0x106   : > { %v4581_v20 = vadd.f32 %v3342_v18, %v3341_v14  ;;  %v4583_v21 = vadd.f32 %v3414_v19, %v3413_v15  ;;  %v4140_v18 = vld [vmem:[%s4260_s19 + $0x378] ss:$36 sps:$4 sm:$0xff]   ;;  %v4141_v19 = vld [vmem:[%s4260_s19 + $0x2a8] ss:$36 sps:$4 sm:$0xff]  }
 0x107   : > { %2438 = vmatmul.mubr.bf16.gmra.mrb[112].mxu1 %v4120_v10  ;;  %3805 = vmatmul.mubr.bf16.vlgmr.msra.gmra.mrb[112].mxu0 %v4121_v11 }
 0x108   : > { %2445 = vmatprep.mubr.bf16.mxu1 %v4122_v16  ;;  %3808 = vmatprep.mubr.bf16.mxu0 %v4124_v17 }
 0x10a   : > { %v3344_v22 = vpop.f32.mrb[8].mxu0  ;;  %v3416_v23 = vpop.f32.mrb[8].mxu1 }
 0x10b   : > { %v3345_v24 = vpop.f32.mrb[9].mxu0  ;;  %v3417_v25 = vpop.f32.mrb[9].mxu1 }
 0x10c   : > { %v4587_v28 = vadd.f32 %v3345_v24, %v3344_v22  ;;  %v4589_v29 = vadd.f32 %v3417_v25, %v3416_v23  ;;  %v3347_v30 = vpop.f32.mrb[10].mxu0  ;;  %v3419_v31 = vpop.f32.mrb[10].mxu1  ;;  %v4142_v25 = vld [vmem:[%s4260_s19 + $0x3c4] ss:$36 sps:$4 sm:$0xff]  }
 0x10d   : > { %v3348_v34 = vpop.f32.mrb[11].mxu0  ;;  %v3420_v35 = vpop.f32.mrb[11].mxu1 }
 0x10e   : > { %v4593_v36 = vadd.f32 %v3348_v34, %v3347_v30  ;;  %v4595_v37 = vadd.f32 %v3420_v35, %v3419_v31 }
 0x10f   : > { %2446 = vmatmul.mubr.bf16.gmra.mrb[116].mxu1 %v4125_v26  ;;  %3809 = vmatmul.mubr.bf16.gmra.mrb[116].mxu0 %v4126_v27  ;;  %v4144_v26 = vld [vmem:[%s4260_s19 + $0x2f0] ss:$36 sps:$4 sm:$0xff]  }
 0x110   : > { %2453 = vmatprep.mubr.bf16.mxu1 %v4127_v32  ;;  %3812 = vmatprep.mubr.bf16.mxu0 %v4129_v33 }
 0x112   : > { %v3350_v38 = vpop.f32.mrb[12].mxu0  ;;  %v3422_v39 = vpop.f32.mrb[12].mxu1 }
 0x113   : > { %v3351_v40 = vpop.f32.mrb[13].mxu0  ;;  %v3423_v41 = vpop.f32.mrb[13].mxu1 }
 0x114   : > { %v4599_v44 = vadd.f32 %v3351_v40, %v3350_v38  ;;  %v4601_v45 = vadd.f32 %v3423_v41, %v3422_v39  ;;  %v3353_v46 = vpop.f32.mrb[14].mxu0  ;;  %v3425_v47 = vpop.f32.mrb[14].mxu1  ;;  %v4145_v40 = vld [vmem:[%s4260_s19 + $0x3c0] ss:$36 sps:$4 sm:$0xff]   ;;  %v4146_v41 = vld [vmem:[%s4260_s19 + $0x338] ss:$36 sps:$4 sm:$0xff]  }
 0x115   : > { %v3354_v50 = vpop.f32.mrb[15].mxu0  ;;  %v3426_v51 = vpop.f32.mrb[15].mxu1 }
 0x116   : > { %v4605_v52 = vadd.f32 %v3354_v50, %v3353_v46  ;;  %v4607_v53 = vadd.f32 %v3426_v51, %v3425_v47  ;;  %v4147_v47 = vld [vmem:[%s4260_s19 + $0x40c] ss:$36 sps:$4 sm:$0xff]  }
 0x117   : > { %2454 = vmatmul.mubr.bf16.gmra.mrb[120].mxu1 %v4130_v42  ;;  %3813 = vmatmul.mubr.bf16.gmra.mrb[120].mxu0 %v4131_v43 }
 0x118   : > { %2461 = vmatprep.mubr.bf16.mxu1 %v4132_v48  ;;  %3816 = vmatprep.mubr.bf16.mxu0 %v4134_v49  ;;  %v4149_v48 = vld [vmem:[%s4260_s19 + $0x380] ss:$36 sps:$4 sm:$0xff]  }
 0x11a   : > { %v3356_v54 = vpop.f32.mrb[16].mxu0  ;;  %v3444_v55 = vpop.f32.mrb[16].mxu1 }
 0x11b   : > { %v3357_v56 = vpop.f32.mrb[17].mxu0  ;;  %v3445_v57 = vpop.f32.mrb[17].mxu1 }
 0x11c   : > { %v4611_v62 = vadd.f32 %v3357_v56, %v3356_v54  ;;  %v3446_v63 = vadd.f32 %v3445_v57, %v3444_v55  ;;  %v3359_v0 = vpop.f32.mrb[18].mxu0  ;;  %v3447_v1 = vpop.f32.mrb[18].mxu1 }
 0x11d   : > { %v3360_v6 = vpop.f32.mrb[19].mxu0  ;;  %v3448_v7 = vpop.f32.mrb[19].mxu1 }
 0x11e   : > { %v4616_v8 = vadd.f32 %v3446_v63, %v4563_v60  ;;  %v4618_v9 = vadd.f32 %v3360_v6, %v3359_v0  ;;  %v3449_v10 = vadd.f32 %v3448_v7, %v3447_v1  ;;  %v4150_v63 = vld [vmem:[%s4260_s19 + $0x408] ss:$36 sps:$4 sm:$0xff]   ;;  %v4152_v6 = vld [vmem:[%s4260_s19 + $0x454] ss:$36 sps:$4 sm:$0xff]  }
 0x11f   : > { %2462 = vmatmul.mubr.bf16.gmra.mrb[124].mxu1 %v4135_v58  ;;  %3817 = vmatmul.mubr.bf16.gmra.mrb[124].mxu0 %v4136_v59  ;;  %v4151_v0 = vld [vmem:[%s4260_s19 + $0x3c8] ss:$36 sps:$4 sm:$0xff]   ;;  %v4154_v7 = vld [vmem:[%s4260_s19 + $0x410] ss:$36 sps:$4 sm:$0xff]  }
 0x120   : > { %v4621_v11 = vadd.f32 %v3449_v10, %v4569_v4  ;;  %2469 = vmatprep.mubr.bf16.mxu1 %v4137_v2  ;;  %3820 = vmatprep.mubr.bf16.mxu0 %v4139_v3 }
 0x122   : > { %v3362_v14 = vpop.f32.mrb[20].mxu0  ;;  %v3450_v15 = vpop.f32.mrb[20].mxu1 }
 0x123   : > { %v3363_v16 = vpop.f32.mrb[21].mxu0  ;;  %v3451_v17 = vpop.f32.mrb[21].mxu1 }
 0x124   : > { %v4625_v60 = vadd.f32 %v3363_v16, %v3362_v14  ;;  %v3452_v22 = vadd.f32 %v3451_v17, %v3450_v15  ;;  %v3365_v23 = vpop.f32.mrb[22].mxu0  ;;  %v3453_v24 = vpop.f32.mrb[22].mxu1 }
 0x125   : > { %v3366_v27 = vpop.f32.mrb[23].mxu0  ;;  %v3454_v4 = vpop.f32.mrb[23].mxu1 }
 0x126   : > { %v4630_v30 = vadd.f32 %v3452_v22, %v4575_v12  ;;  %v4632_v31 = vadd.f32 %v3366_v27, %v3365_v23  ;;  %v3455_v32 = vadd.f32 %v3454_v4, %v3453_v24  ;;  %v4155_v24 = vld [vmem:[%s4260_s19 + $0x450] ss:$36 sps:$4 sm:$0xff]  }
 0x127   : > { %2470 = vmatmul.mubr.bf16.gmra.mrb[128].mxu1 %v4140_v18  ;;  %3821 = vmatmul.mubr.bf16.gmra.mrb[128].mxu0 %v4141_v19 }
 0x128   : > { %v4635_v33 = vadd.f32 %v3455_v32, %v4581_v20  ;;  %2477 = vmatprep.mubr.bf16.mxu1 %v4142_v25  ;;  %3824 = vmatprep.mubr.bf16.mxu0 %v4144_v26  ;;  %v4156_v25 = vld [vmem:[%s4260_s19 + $0x458] ss:$36 sps:$4 sm:$0xff]   ;;  %s3095_s19 = sshll.u32 %s5008_s21, 3  ;;  %s3096_s21 = sshll.u32 %s5010_s15, 3 }
 0x129   : > { %s4897_s29 = scalar_lea.vmem %s5000_s2, %s3095_s19  ;;  %s309_s6 = scalar_lea.vmem %s5001_s3, %s3096_s21 }
 0x12a   : > { %v3368_v34 = vpop.f32.mrb[24].mxu0  ;;  %v3456_v35 = vpop.f32.mrb[24].mxu1  ;;  %s316_s9 = scalar_lea.vmem %s5002_s4, %s3096_s21 }
 0x12b   : > { %v3369_v38 = vpop.f32.mrb[25].mxu0  ;;  %v3457_v39 = vpop.f32.mrb[25].mxu1 }
 0x12c   : > { %v4639_v12 = vadd.f32 %v3369_v38, %v3368_v34  ;;  %v3458_v42 = vadd.f32 %v3457_v39, %v3456_v35  ;;  %v3371_v43 = vpop.f32.mrb[26].mxu0  ;;  %v3459_v46 = vpop.f32.mrb[26].mxu1 }
 0x12d   : > { %v3372_v49 = vpop.f32.mrb[27].mxu0  ;;  %v3460_v20 = vpop.f32.mrb[27].mxu1 }
 0x12e   : > { %v4644_v50 = vadd.f32 %v3458_v42, %v4587_v28  ;;  %v4646_v51 = vadd.f32 %v3372_v49, %v3371_v43  ;;  %v3461_v54 = vadd.f32 %v3460_v20, %v3459_v46 }
 0x12f   : > { %2478 = vmatmul.mubr.bf16.gmra.mrb[132].mxu1 %v4145_v40  ;;  %3825 = vmatmul.mubr.bf16.gmra.mrb[132].mxu0 %v4146_v41 }
 0x130   : > { %v4649_v55 = vadd.f32 %v3461_v54, %v4593_v36  ;;  %2485 = vmatprep.mubr.bf16.mxu1 %v4147_v47  ;;  %3828 = vmatprep.mubr.bf16.mxu0 %v4149_v48 }
 0x132   : > { %v3374_v56 = vpop.f32.mrb[28].mxu0  ;;  %v3462_v57 = vpop.f32.mrb[28].mxu1 }
 0x133   : > { %v3375_v58 = vpop.f32.mrb[29].mxu0  ;;  %v3463_v59 = vpop.f32.mrb[29].mxu1 }
 0x134   : > { %v4653_v28 = vadd.f32 %v3375_v58, %v3374_v56  ;;  %v3464_v1 = vadd.f32 %v3463_v59, %v3462_v57  ;;  %v3377_v2 = vpop.f32.mrb[30].mxu0  ;;  %v3465_v3 = vpop.f32.mrb[30].mxu1 }
 0x135   : > { %v3378_v10 = vpop.f32.mrb[31].mxu0  ;;  %v3466_v36 = vpop.f32.mrb[31].mxu1 }
 0x136   : > { %v4658_v14 = vadd.f32 %v3464_v1, %v4599_v44  ;;  %v4660_v15 = vadd.f32 %v3378_v10, %v3377_v2  ;;  %v3467_v16 = vadd.f32 %v3466_v36, %v3465_v3 }
 0x137   : > { %2486 = vmatmul.mubr.bf16.gmra.mrb[136].mxu1 %v4150_v63  ;;  %3829 = vmatmul.mubr.bf16.gmra.mrb[136].mxu0 %v4151_v0 }
 0x138   : > { %v4663_v17 = vadd.f32 %v3467_v16, %v4605_v52  ;;  %2493 = vmatprep.mubr.bf16.mxu1 %v4152_v6  ;;  %3832 = vmatprep.mubr.bf16.mxu0 %v4154_v7 }
 0x13a   : > { %v3380_v18 = vpop.f32.mrb[32].mxu0  ;;  %v3468_v19 = vpop.f32.mrb[32].mxu1 }
 0x13b   : > { %v3381_v22 = vpop.f32.mrb[33].mxu0  ;;  %v3469_v23 = vpop.f32.mrb[33].mxu1 }
 0x13c   : > { %v4667_v26 = vadd.f32 %v3381_v22, %v3380_v18  ;;  %v3470_v44 = vadd.f32 %v3469_v23, %v3468_v19  ;;  %v3383_v27 = vpop.f32.mrb[34].mxu0  ;;  %v3471_v4 = vpop.f32.mrb[34].mxu1 }
 0x13d   : > { %v3384_v32 = vpop.f32.mrb[35].mxu0  ;;  %v3472_v34 = vpop.f32.mrb[35].mxu1 }
 0x13e   : > { %v4670_v35 = vadd.f32 %v3470_v44, %v4611_v62  ;;  %v3385_v52 = vadd.f32 %v3384_v32, %v3383_v27  ;;  %v3473_v38 = vadd.f32 %v3472_v34, %v3471_v4 }
 0x13f   : > { %2494 = vmatmul.mubr.bf16.gmra.mrb[140].mxu1 %v4155_v24  ;;  %3833 = vmatmul.mubr.bf16.gmra.mrb[140].mxu0 %v4156_v25 }
 0x140   : > { %v4673_v39 = vadd.f32 %v3473_v38, %v4618_v9 }
 0x142   : > { %v3386_v40 = vpop.f32.mrb[36].mxu0  ;;  %v3474_v41 = vpop.f32.mrb[36].mxu1 }
 0x143   : > { %v3387_v42 = vpop.f32.mrb[37].mxu0  ;;  %v3475_v43 = vpop.f32.mrb[37].mxu1 }
 0x144   : > { %v4675_v46 = vadd.f32 %v3387_v42, %v3386_v40  ;;  %v3476_v47 = vadd.f32 %v3475_v43, %v3474_v41  ;;  %v3389_v48 = vpop.f32.mrb[38].mxu0  ;;  %v3477_v49 = vpop.f32.mrb[38].mxu1 }
 0x145   : > { %v3390_v20 = vpop.f32.mrb[39].mxu0  ;;  %v3478_v54 = vpop.f32.mrb[39].mxu1 }
 0x146   : > { %v4678_v62 = vadd.f32 %v3476_v47, %v4625_v60  ;;  %v3391_v56 = vadd.f32 %v3390_v20, %v3389_v48  ;;  %v3479_v57 = vadd.f32 %v3478_v54, %v3477_v49 }
 0x148   : > { %v4681_v58 = vadd.f32 %v3479_v57, %v4632_v31 }
 0x14a   : > { %v3392_v9 = vpop.f32.mrb[40].mxu0  ;;  %v3480_v59 = vpop.f32.mrb[40].mxu1 }
 0x14b   : > { %v3393_v63 = vpop.f32.mrb[41].mxu0  ;;  %v3481_v0 = vpop.f32.mrb[41].mxu1 }
 0x14c   : > { %v4683_v1 = vadd.f32 %v3393_v63, %v3392_v9  ;;  %v3482_v2 = vadd.f32 %v3481_v0, %v3480_v59  ;;  %v3395_v3 = vpop.f32.mrb[42].mxu0  ;;  %v3483_v6 = vpop.f32.mrb[42].mxu1 }
 0x14d   : > { %v3396_v7 = vpop.f32.mrb[43].mxu0  ;;  %v3484_v10 = vpop.f32.mrb[43].mxu1 }
 0x14e   : > { %v4686_v36 = vadd.f32 %v3482_v2, %v4639_v12  ;;  %v4688_v60 = vadd.f32 %v3396_v7, %v3395_v3  ;;  %v3485_v16 = vadd.f32 %v3484_v10, %v3483_v6 }
 0x150   : > { %v4691_v31 = vadd.f32 %v3485_v16, %v4646_v51 }
 0x152   : > { %v3398_v18 = vpop.f32.mrb[44].mxu0  ;;  %v3486_v19 = vpop.f32.mrb[44].mxu1 }
 0x153   : > { %v3399_v22 = vpop.f32.mrb[45].mxu0  ;;  %v3487_v23 = vpop.f32.mrb[45].mxu1 }
 0x154   : > { %v4693_v24 = vadd.f32 %v3399_v22, %v3398_v18  ;;  %v3488_v25 = vadd.f32 %v3487_v23, %v3486_v19  ;;  %v3401_v44 = vpop.f32.mrb[46].mxu0  ;;  %v3489_v27 = vpop.f32.mrb[46].mxu1 }
 0x155   : > { %v3402_v4 = vpop.f32.mrb[47].mxu0  ;;  %v3490_v32 = vpop.f32.mrb[47].mxu1 }
 0x156   : > { %v4696_v12 = vadd.f32 %v3488_v25, %v4653_v28  ;;  %v4698_v34 = vadd.f32 %v3402_v4, %v3401_v44  ;;  %v3491_v38 = vadd.f32 %v3490_v32, %v3489_v27 }
 0x158   : > { %v4701_v51 = vadd.f32 %v3491_v38, %v4660_v15 }
 0x15a   : > { %v3492_v40 = vpop.f32.mrb[48].mxu1  ;;  %v3556_v41 = vpop.f32.mrb[48].mxu0 }
 0x15b   : > { %v3493_v42 = vpop.f32.mrb[49].mxu1  ;;  %v3557_v43 = vpop.f32.mrb[49].mxu0 }
 0x15c   : > { %v3494_v47 = vadd.f32 %v3493_v42, %v3492_v40  ;;  %v3558_v48 = vadd.f32 %v3557_v43, %v3556_v41  ;;  %v3495_v49 = vpop.f32.mrb[50].mxu1  ;;  %v3559_v20 = vpop.f32.mrb[50].mxu0 }
 0x15d   : > { %v3496_v54 = vpop.f32.mrb[51].mxu1  ;;  %v3560_v57 = vpop.f32.mrb[51].mxu0 }
 0x15e   : > { %v4704_v9 = vadd.f32 %v3494_v47, %v4667_v26  ;;  %v4707_v28 = vadd.f32 %v3558_v48, %v4616_v8  ;;  %v3497_v59 = vadd.f32 %v3496_v54, %v3495_v49  ;;  %v3561_v63 = vadd.f32 %v3560_v57, %v3559_v20 }
 0x160   : > { %v4709_v15 = vadd.f32 %v3497_v59, %v3385_v52  ;;  %v4712_v0 = vadd.f32 %v3561_v63, %v4621_v11 }
 0x162   : > { %v3498_v2 = vpop.f32.mrb[52].mxu1  ;;  %v3562_v3 = vpop.f32.mrb[52].mxu0 }
 0x163   : > { %v3499_v6 = vpop.f32.mrb[53].mxu1  ;;  %v3563_v7 = vpop.f32.mrb[53].mxu0 }
 0x164   : > { %v3500_v10 = vadd.f32 %v3499_v6, %v3498_v2  ;;  %v3564_v16 = vadd.f32 %v3563_v7, %v3562_v3  ;;  %v3501_v18 = vpop.f32.mrb[54].mxu1  ;;  %v3565_v19 = vpop.f32.mrb[54].mxu0 }
 0x165   : > { %v3502_v26 = vpop.f32.mrb[55].mxu1  ;;  %v3566_v22 = vpop.f32.mrb[55].mxu0 }
 0x166   : > { %v4715_v8 = vadd.f32 %v3500_v10, %v4675_v46  ;;  %v4718_v23 = vadd.f32 %v3564_v16, %v4630_v30  ;;  %v3503_v52 = vadd.f32 %v3502_v26, %v3501_v18  ;;  %v3567_v25 = vadd.f32 %v3566_v22, %v3565_v19 }
 0x168   : > { %v4720_v11 = vadd.f32 %v3503_v52, %v3391_v56  ;;  %v4723_v44 = vadd.f32 %v3567_v25, %v4635_v33 }
 0x16a   : > { %v3504_v27 = vpop.f32.mrb[56].mxu1  ;;  %v3568_v4 = vpop.f32.mrb[56].mxu0 }
 0x16b   : > { %v3505_v32 = vpop.f32.mrb[57].mxu1  ;;  %v3569_v38 = vpop.f32.mrb[57].mxu0 }
 0x16c   : > { %v3506_v40 = vadd.f32 %v3505_v32, %v3504_v27  ;;  %v3570_v41 = vadd.f32 %v3569_v38, %v3568_v4  ;;  %v3507_v42 = vpop.f32.mrb[58].mxu1  ;;  %v3571_v43 = vpop.f32.mrb[58].mxu0 }
 0x16d   : > { %v3508_v46 = vpop.f32.mrb[59].mxu1  ;;  %v3572_v47 = vpop.f32.mrb[59].mxu0 }
 0x16e   : > { %v4726_v30 = vadd.f32 %v3506_v40, %v4683_v1  ;;  %v4729_v48 = vadd.f32 %v3570_v41, %v4644_v50  ;;  %v3509_v56 = vadd.f32 %v3508_v46, %v3507_v42  ;;  %v3573_v49 = vadd.f32 %v3572_v47, %v3571_v43 }
 0x170   : > { %v4732_v33 = vadd.f32 %v3509_v56, %v4688_v60  ;;  %v4735_v20 = vadd.f32 %v3573_v49, %v4649_v55 }
 0x172   : > { %v3510_v54 = vpop.f32.mrb[60].mxu1  ;;  %v3574_v57 = vpop.f32.mrb[60].mxu0 }
 0x173   : > { %v3511_v59 = vpop.f32.mrb[61].mxu1  ;;  %v3575_v63 = vpop.f32.mrb[61].mxu0 }
 0x174   : > { %v3512_v2 = vadd.f32 %v3511_v59, %v3510_v54  ;;  %v3576_v3 = vadd.f32 %v3575_v63, %v3574_v57  ;;  %v3513_v6 = vpop.f32.mrb[62].mxu1  ;;  %v3577_v1 = vpop.f32.mrb[62].mxu0 }
 0x175   : > { %v3514_v7 = vpop.f32.mrb[63].mxu1  ;;  %v3578_v10 = vpop.f32.mrb[63].mxu0 }
 0x176   : > { %v4738_v50 = vadd.f32 %v3512_v2, %v4693_v24  ;;  %v4741_v16 = vadd.f32 %v3576_v3, %v4658_v14  ;;  %v3515_v60 = vadd.f32 %v3514_v7, %v3513_v6  ;;  %v3579_v18 = vadd.f32 %v3578_v10, %v3577_v1 }
 0x178   : > { %v4744_v55 = vadd.f32 %v3515_v60, %v4698_v34  ;;  %v4747_v19 = vadd.f32 %v3579_v18, %v4663_v17 }
 0x17a   : > { %v3516_v26 = vpop.f32.mrb[64].mxu1  ;;  %v3580_v22 = vpop.f32.mrb[64].mxu0 }
 0x17b   : > { %v3517_v52 = vpop.f32.mrb[65].mxu1  ;;  %v3581_v25 = vpop.f32.mrb[65].mxu0 }
 0x17c   : > { %v3518_v27 = vadd.f32 %v3517_v52, %v3516_v26  ;;  %v3582_v4 = vadd.f32 %v3581_v25, %v3580_v22  ;;  %v3519_v32 = vpop.f32.mrb[66].mxu1  ;;  %v3583_v24 = vpop.f32.mrb[66].mxu0 }
 0x17d   : > { %v3520_v38 = vpop.f32.mrb[67].mxu1  ;;  %v3584_v40 = vpop.f32.mrb[67].mxu0 }
 0x17e   : > { %v4750_v14 = vadd.f32 %v3518_v27, %v4565_v61  ;;  %v4753_v41 = vadd.f32 %v3582_v4, %v4670_v35  ;;  %v3521_v34 = vadd.f32 %v3520_v38, %v3519_v32  ;;  %v3585_v42 = vadd.f32 %v3584_v40, %v3583_v24 }
 0x180   : > { %v4756_v17 = vadd.f32 %v3521_v34, %v4571_v5  ;;  %v4759_v43 = vadd.f32 %v3585_v42, %v4673_v39 }
 0x182   : > { %v3522_v46 = vpop.f32.mrb[68].mxu1  ;;  %v3586_v47 = vpop.f32.mrb[68].mxu0 }
 0x183   : > { %v3523_v56 = vpop.f32.mrb[69].mxu1  ;;  %v3587_v49 = vpop.f32.mrb[69].mxu0 }
 0x184   : > { %v3524_v54 = vadd.f32 %v3523_v56, %v3522_v46  ;;  %v3588_v57 = vadd.f32 %v3587_v49, %v3586_v47  ;;  %v3525_v59 = vpop.f32.mrb[70].mxu1  ;;  %v3589_v61 = vpop.f32.mrb[70].mxu0 }
 0x185   : > { %v3526_v63 = vpop.f32.mrb[71].mxu1  ;;  %v3590_v2 = vpop.f32.mrb[71].mxu0 }
 0x186   : > { %v4762_v35 = vadd.f32 %v3524_v54, %v4577_v13  ;;  %v4765_v3 = vadd.f32 %v3588_v57, %v4678_v62  ;;  %v3527_v5 = vadd.f32 %v3526_v63, %v3525_v59  ;;  %v3591_v6 = vadd.f32 %v3590_v2, %v3589_v61 }
 0x188   : > { %v4768_v39 = vadd.f32 %v3527_v5, %v4583_v21  ;;  %v4771_v1 = vadd.f32 %v3591_v6, %v4681_v58 }
 0x18a   : > { %v3528_v7 = vpop.f32.mrb[72].mxu1  ;;  %v3592_v10 = vpop.f32.mrb[72].mxu0 }
 0x18b   : > { %v3529_v60 = vpop.f32.mrb[73].mxu1  ;;  %v3593_v18 = vpop.f32.mrb[73].mxu0 }
 0x18c   : > { %v3530_v26 = vadd.f32 %v3529_v60, %v3528_v7  ;;  %v3594_v22 = vadd.f32 %v3593_v18, %v3592_v10  ;;  %v3531_v52 = vpop.f32.mrb[74].mxu1  ;;  %v3595_v13 = vpop.f32.mrb[74].mxu0 }
 0x18d   : > { %v3532_v25 = vpop.f32.mrb[75].mxu1  ;;  %v3596_v27 = vpop.f32.mrb[75].mxu0 }
 0x18e   : > { %v4774_v62 = vadd.f32 %v3530_v26, %v4589_v29  ;;  %v4777_v4 = vadd.f32 %v3594_v22, %v4686_v36  ;;  %v3533_v21 = vadd.f32 %v3532_v25, %v3531_v52  ;;  %v3597_v32 = vadd.f32 %v3596_v27, %v3595_v13 }
 0x190   : > { %v4780_v58 = vadd.f32 %v3533_v21, %v4595_v37  ;;  %v4783_v24 = vadd.f32 %v3597_v32, %v4691_v31 }
 0x192   : > { %v3534_v38 = vpop.f32.mrb[76].mxu1  ;;  %v3598_v40 = vpop.f32.mrb[76].mxu0 }
 0x193   : > { %v3535_v34 = vpop.f32.mrb[77].mxu1  ;;  %v3599_v42 = vpop.f32.mrb[77].mxu0 }
 0x194   : > { %v3536_v46 = vadd.f32 %v3535_v34, %v3534_v38  ;;  %v3600_v47 = vadd.f32 %v3599_v42, %v3598_v40  ;;  %v3537_v56 = vpop.f32.mrb[78].mxu1  ;;  %v3601_v29 = vpop.f32.mrb[78].mxu0 }
 0x195   : > { %v3538_v49 = vpop.f32.mrb[79].mxu1  ;;  %v3602_v54 = vpop.f32.mrb[79].mxu0 }
 0x196   : > { %v4786_v36 = vadd.f32 %v3536_v46, %v4601_v45  ;;  %v4789_v57 = vadd.f32 %v3600_v47, %v4696_v12  ;;  %v3539_v37 = vadd.f32 %v3538_v49, %v3537_v56  ;;  %v3603_v59 = vadd.f32 %v3602_v54, %v3601_v29 }
 0x198   : > { %v4792_v31 = vadd.f32 %v3539_v37, %v4607_v53  ;;  %v4795_v61 = vadd.f32 %v3603_v59, %v4701_v51 }
 0x19a   : > { %v3604_v63 = vpop.f32.mrb[80].mxu0  ;;  %v3668_v2 = vpop.f32.mrb[80].mxu1 }
 0x19b   : > { %v3605_v5 = vpop.f32.mrb[81].mxu0  ;;  %v3669_v6 = vpop.f32.mrb[81].mxu1 }
 0x19c   : > { %v3606_v7 = vadd.f32 %v3605_v5, %v3604_v63  ;;  %v3670_v10 = vadd.f32 %v3669_v6, %v3668_v2  ;;  %v3607_v60 = vpop.f32.mrb[82].mxu0  ;;  %v3671_v45 = vpop.f32.mrb[82].mxu1 }
 0x19d   : > { %v3608_v18 = vpop.f32.mrb[83].mxu0  ;;  %v3672_v26 = vpop.f32.mrb[83].mxu1 }
 0x19e   : > { %v4798_v12 = vadd.f32 %v3606_v7, %v4704_v9  ;;  %v3609_v22 = vadd.f32 %v3608_v18, %v3607_v60  ;;  %v3673_v52 = vadd.f32 %v3672_v26, %v3671_v45  ;;  %v4801_v53 = vadd.f32 %v3670_v10, %v4707_v28 }
 0x1a0   : > { %v4804_v51 = vadd.f32 %v3609_v22, %v4709_v15  ;;  %v4807_v13 = vadd.f32 %v3673_v52, %v4712_v0 }
 0x1a2   : > { %v3610_v25 = vpop.f32.mrb[84].mxu0  ;;  %v3674_v27 = vpop.f32.mrb[84].mxu1 }
 0x1a3   : > { %v3611_v21 = vpop.f32.mrb[85].mxu0  ;;  %v3675_v32 = vpop.f32.mrb[85].mxu1 }
 0x1a4   : > { %v3612_v38 = vadd.f32 %v3611_v21, %v3610_v25  ;;  %v3676_v40 = vadd.f32 %v3675_v32, %v3674_v27  ;;  %v3613_v34 = vpop.f32.mrb[86].mxu0  ;;  %v3677_v9 = vpop.f32.mrb[86].mxu1 }
 0x1a5   : > { %v3614_v42 = vpop.f32.mrb[87].mxu0  ;;  %v3678_v46 = vpop.f32.mrb[87].mxu1 }
 0x1a6   : > { %v4810_v47 = vadd.f32 %v3612_v38, %v4715_v8  ;;  %v3615_v28 = vadd.f32 %v3614_v42, %v3613_v34  ;;  %v3679_v56 = vadd.f32 %v3678_v46, %v3677_v9  ;;  %v4813_v15 = vadd.f32 %v3676_v40, %v4718_v23 }
 0x1a8   : > { %v4816_v0 = vadd.f32 %v3615_v28, %v4720_v11  ;;  %v4819_v29 = vadd.f32 %v3679_v56, %v4723_v44 }
 0x1aa   : > { %v3616_v49 = vpop.f32.mrb[88].mxu0  ;;  %v3680_v54 = vpop.f32.mrb[88].mxu1 }
 0x1ab   : > { %v3617_v37 = vpop.f32.mrb[89].mxu0  ;;  %v3681_v59 = vpop.f32.mrb[89].mxu1 }
 0x1ac   : > { %v3618_v63 = vadd.f32 %v3617_v37, %v3616_v49  ;;  %v3682_v2 = vadd.f32 %v3681_v59, %v3680_v54  ;;  %v3619_v5 = vpop.f32.mrb[90].mxu0  ;;  %v3683_v8 = vpop.f32.mrb[90].mxu1 }
 0x1ad   : > { %v3620_v6 = vpop.f32.mrb[91].mxu0  ;;  %v3684_v7 = vpop.f32.mrb[91].mxu1 }
 0x1ae   : > { %v4822_v10 = vadd.f32 %v3618_v63, %v4726_v30  ;;  %v3621_v23 = vadd.f32 %v3620_v6, %v3619_v5  ;;  %v3685_v60 = vadd.f32 %v3684_v7, %v3683_v8  ;;  %v4825_v11 = vadd.f32 %v3682_v2, %v4729_v48 }
 0x1b0   : > { %v4828_v44 = vadd.f32 %v3621_v23, %v4732_v33  ;;  %v4831_v45 = vadd.f32 %v3685_v60, %v4735_v20 }
 0x1b2   : > { %v3622_v18 = vpop.f32.mrb[92].mxu0  ;;  %v3686_v26 = vpop.f32.mrb[92].mxu1 }
 0x1b3   : > { %v3623_v22 = vpop.f32.mrb[93].mxu0  ;;  %v3687_v52 = vpop.f32.mrb[93].mxu1 }
 0x1b4   : > { %v3624_v25 = vadd.f32 %v3623_v22, %v3622_v18  ;;  %v3688_v27 = vadd.f32 %v3687_v52, %v3686_v26  ;;  %v3625_v21 = vpop.f32.mrb[94].mxu0  ;;  %v3689_v30 = vpop.f32.mrb[94].mxu1 }
 0x1b5   : > { %v3626_v32 = vpop.f32.mrb[95].mxu0  ;;  %v3690_v38 = vpop.f32.mrb[95].mxu1 }
 0x1b6   : > { %v4834_v40 = vadd.f32 %v3624_v25, %v4738_v50  ;;  %v3627_v48 = vadd.f32 %v3626_v32, %v3625_v21  ;;  %v3691_v34 = vadd.f32 %v3690_v38, %v3689_v30  ;;  %v4837_v33 = vadd.f32 %v3688_v27, %v4741_v16 }
 0x1b8   : > { %v4840_v20 = vadd.f32 %v3627_v48, %v4744_v55  ;;  %v4843_v9 = vadd.f32 %v3691_v34, %v4747_v19 }
 0x1ba   : > { %v3628_v42 = vpop.f32.mrb[96].mxu0  ;;  %v3692_v46 = vpop.f32.mrb[96].mxu1 }
 0x1bb   : > { %v3629_v28 = vpop.f32.mrb[97].mxu0  ;;  %v3693_v56 = vpop.f32.mrb[97].mxu1 }
 0x1bc   : > { %v3630_v49 = vadd.f32 %v3629_v28, %v3628_v42  ;;  %v3694_v54 = vadd.f32 %v3693_v56, %v3692_v46  ;;  %v3631_v37 = vpop.f32.mrb[98].mxu0  ;;  %v3695_v50 = vpop.f32.mrb[98].mxu1 }
 0x1bd   : > { %v3632_v59 = vpop.f32.mrb[99].mxu0  ;;  %v3696_v63 = vpop.f32.mrb[99].mxu1 }
 0x1be   : > { %v4846_v2 = vadd.f32 %v3630_v49, %v4750_v14  ;;  %v3633_v16 = vadd.f32 %v3632_v59, %v3631_v37  ;;  %v3697_v5 = vadd.f32 %v3696_v63, %v3695_v50  ;;  %v4849_v55 = vadd.f32 %v3694_v54, %v4753_v41 }
 0x1c0   : > { %v4852_v19 = vadd.f32 %v3633_v16, %v4756_v17  ;;  %v4855_v8 = vadd.f32 %v3697_v5, %v4759_v43 }
 0x1c2   : > { %v3634_v6 = vpop.f32.mrb[100].mxu0  ;;  %v3698_v7 = vpop.f32.mrb[100].mxu1 }
 0x1c3   : > { %v3635_v23 = vpop.f32.mrb[101].mxu0  ;;  %v3699_v60 = vpop.f32.mrb[101].mxu1 }
 0x1c4   : > { %v3636_v18 = vadd.f32 %v3635_v23, %v3634_v6  ;;  %v3700_v26 = vadd.f32 %v3699_v60, %v3698_v7  ;;  %v3637_v22 = vpop.f32.mrb[102].mxu0  ;;  %v3701_v14 = vpop.f32.mrb[102].mxu1 }
 0x1c5   : > { %v3638_v52 = vpop.f32.mrb[103].mxu0  ;;  %v3702_v25 = vpop.f32.mrb[103].mxu1 }
 0x1c6   : > { %v4858_v27 = vadd.f32 %v3636_v18, %v4762_v35  ;;  %v3639_v41 = vadd.f32 %v3638_v52, %v3637_v22  ;;  %v3703_v21 = vadd.f32 %v3702_v25, %v3701_v14  ;;  %v4861_v17 = vadd.f32 %v3700_v26, %v4765_v3 }
 0x1c8   : > { %v4864_v43 = vadd.f32 %v3639_v41, %v4768_v39  ;;  %v4867_v30 = vadd.f32 %v3703_v21, %v4771_v1 }
 0x1ca   : > { %v3640_v32 = vpop.f32.mrb[104].mxu0  ;;  %v3704_v38 = vpop.f32.mrb[104].mxu1 }
 0x1cb   : > { %v3641_v48 = vpop.f32.mrb[105].mxu0  ;;  %v3705_v34 = vpop.f32.mrb[105].mxu1 }
 0x1cc   : > { %v3642_v42 = vadd.f32 %v3641_v48, %v3640_v32  ;;  %v3706_v46 = vadd.f32 %v3705_v34, %v3704_v38  ;;  %v3643_v28 = vpop.f32.mrb[106].mxu0  ;;  %v3707_v35 = vpop.f32.mrb[106].mxu1 }
 0x1cd   : > { %v3644_v56 = vpop.f32.mrb[107].mxu0  ;;  %v3708_v49 = vpop.f32.mrb[107].mxu1 }
 0x1ce   : > { %v4870_v54 = vadd.f32 %v3642_v42, %v4774_v62  ;;  %v3645_v3 = vadd.f32 %v3644_v56, %v3643_v28  ;;  %v3709_v37 = vadd.f32 %v3708_v49, %v3707_v35  ;;  %v4873_v39 = vadd.f32 %v3706_v46, %v4777_v4 }
 0x1d0   : > { %v4876_v1 = vadd.f32 %v3645_v3, %v4780_v58  ;;  %v4879_v50 = vadd.f32 %v3709_v37, %v4783_v24 }
 0x1d2   : > { %v3646_v59 = vpop.f32.mrb[108].mxu0  ;;  %v3710_v63 = vpop.f32.mrb[108].mxu1 }
 0x1d3   : > { %v3647_v16 = vpop.f32.mrb[109].mxu0  ;;  %v3711_v5 = vpop.f32.mrb[109].mxu1 }
 0x1d4   : > { %v3648_v6 = vadd.f32 %v3647_v16, %v3646_v59  ;;  %v3712_v7 = vadd.f32 %v3711_v5, %v3710_v63  ;;  %v3649_v62 = vpop.f32.mrb[110].mxu0  ;;  %v3713_v23 = vpop.f32.mrb[110].mxu1 }
 0x1d5   : > { %v3650_v60 = vpop.f32.mrb[111].mxu0  ;;  %v3714_v18 = vpop.f32.mrb[111].mxu1 }
 0x1d6   : > { %v4882_v4 = vadd.f32 %v3648_v6, %v4786_v36  ;;  %v3651_v26 = vadd.f32 %v3650_v60, %v3649_v62  ;;  %v3715_v58 = vadd.f32 %v3714_v18, %v3713_v23  ;;  %v4885_v22 = vadd.f32 %v3712_v7, %v4789_v57 }
 0x1d8   : > { %v4889_v24 = vadd.f32 %v3651_v26, %v4792_v31  ;;  %v4892_v14 = vadd.f32 %v3715_v58, %v4795_v61 }
 0x1da   : > { %v3716_v52 = vpop.f32.mrb[112].mxu1  ;;  %v3806_v36 = vpop.f32.mrb[112].mxu0 }
 0x1db   : > { %v2545_v57 = vadd.f32 %v3806_v36, %v4813_v15  ;;  %v3717_v25 = vpop.f32.mrb[113].mxu1  ;;  %v2536_v41 = vpop.f32.mrb[113].mxu0 }
 0x1dc   : > { %v3718_v31 = vadd.f32 %v3717_v25, %v3716_v52  ;;  %v2537_v21 = vadd.f32 %v2536_v41, %v4801_v53  ;;  %v3719_v61 = vpop.f32.mrb[114].mxu1  ;;  %v3807_v32 = vpop.f32.mrb[114].mxu0 }
 0x1dd   : > { %2764 = vst [vmem:[%s4897_s29 + $0x10] sm:$0xff] %v2545_v57  ;;  %v2548_v38 = vadd.f32 %v3807_v32, %v4819_v29  ;;  %v3720_v48 = vpop.f32.mrb[115].mxu1  ;;  %v2539_v34 = vpop.f32.mrb[115].mxu0  ;;  %v2833_v49 = vmul.f32 %v2545_v57, %v2545_v57 }
 0x1de   : > { %2762 = vst [vmem:[%s4897_s29] sm:$0xff] %v2537_v21  ;;  %v3721_v42 = vadd.f32 %v3720_v48, %v3719_v61  ;;  %v2540_v46 = vadd.f32 %v2539_v34, %v4807_v13  ;;  %v4906_v28 = vadd.f32 %v3718_v31, %v4798_v12  ;;  %v2831_v15 = vmul.f32 %v2537_v21, %v2537_v21 }
 0x1df   : > { %2765 = vst [vmem:[%s4897_s29 + $0x18] sm:$0xff] %v2548_v38  ;;  %v2834_v63 = vmul.f32 %v2548_v38, %v2548_v38 }
 0x1e0   : > { %2763 = vst [vmem:[%s4897_s29 + $0x8] sm:$0xff] %v2540_v46  ;;  %v2794_v35 = vadd.f32 %v2540_v46, %v2537_v21  ;;  %v2832_v56 = vmul.f32 %v2540_v46, %v2540_v46  ;;  %v4911_v53 = vadd.f32 %v3721_v42, %v4804_v51 }
 0x1e2   : > { %v2795_v29 = vadd.f32 %v2794_v35, %v2545_v57  ;;  %v2863_v3 = vadd.f32 %v2832_v56, %v2831_v15  ;;  %v3722_v37 = vpop.f32.mrb[116].mxu1  ;;  %v3810_v59 = vpop.f32.mrb[116].mxu0 }
 0x1e3   : > { %v2561_v13 = vadd.f32 %v3810_v59, %v4837_v33  ;;  %v3723_v12 = vpop.f32.mrb[117].mxu1  ;;  %v2552_v16 = vpop.f32.mrb[117].mxu0 }
 0x1e4   : > { %v2864_v5 = vadd.f32 %v2863_v3, %v2833_v49  ;;  %v3724_v6 = vadd.f32 %v3723_v12, %v3722_v37  ;;  %v2553_v7 = vadd.f32 %v2552_v16, %v4825_v11  ;;  %v2796_v62 = vadd.f32 %v2795_v29, %v2548_v38  ;;  %v3725_v51 = vpop.f32.mrb[118].mxu1  ;;  %v3811_v23 = vpop.f32.mrb[118].mxu0 }
 0x1e5   : > { %2768 = vst [vmem:[%s4897_s29 + $0x30] sm:$0xff] %v2561_v13  ;;  %v2564_v60 = vadd.f32 %v3811_v23, %v4843_v9  ;;  %v3726_v18 = vpop.f32.mrb[119].mxu1  ;;  %v2555_v26 = vpop.f32.mrb[119].mxu0  ;;  %v2837_v32 = vmul.f32 %v2561_v13, %v2561_v13 }
 0x1e6   : > { %2766 = vst [vmem:[%s4897_s29 + $0x20] sm:$0xff] %v2553_v7  ;;  %v2797_v58 = vadd.f32 %v2796_v62, %v2553_v7  ;;  %v2835_v52 = vmul.f32 %v2553_v7, %v2553_v7  ;;  %v2865_v33 = vadd.f32 %v2864_v5, %v2834_v63  ;;  %v3727_v36 = vadd.f32 %v3726_v18, %v3725_v51 }
 0x1e7   : > { %2769 = vst [vmem:[%s4897_s29 + $0x38] sm:$0xff] %v2564_v60  ;;  %v2556_v57 = vadd.f32 %v2555_v26, %v4831_v45  ;;  %v4921_v25 = vadd.f32 %v3724_v6, %v4810_v47  ;;  %v2838_v35 = vmul.f32 %v2564_v60, %v2564_v60 }
 0x1e8   : > { %v2866_v11 = vadd.f32 %v2865_v33, %v2835_v52  ;;  %v4924_v41 = vadd.f32 %v3727_v36, %v4816_v0 }
 0x1e9   : > { %2767 = vst [vmem:[%s4897_s29 + $0x28] sm:$0xff] %v2556_v57  ;;  %v2798_v31 = vadd.f32 %v2797_v58, %v2556_v57  ;;  %v2836_v9 = vmul.f32 %v2556_v57, %v2556_v57 }
 0x1ea   : > { %v3728_v21 = vpop.f32.mrb[120].mxu1  ;;  %v3814_v61 = vpop.f32.mrb[120].mxu0 }
 0x1eb   : > { %v2799_v38 = vadd.f32 %v2798_v31, %v2561_v13  ;;  %v2867_v48 = vadd.f32 %v2866_v11, %v2836_v9  ;;  %v2577_v34 = vadd.f32 %v3814_v61, %v4861_v17  ;;  %v3729_v45 = vpop.f32.mrb[121].mxu1  ;;  %v2568_v42 = vpop.f32.mrb[121].mxu0 }
 0x1ec   : > { %v3730_v47 = vadd.f32 %v3729_v45, %v3728_v21  ;;  %v2569_v46 = vadd.f32 %v2568_v42, %v4849_v55  ;;  %v3731_v15 = vpop.f32.mrb[122].mxu1  ;;  %v3815_v0 = vpop.f32.mrb[122].mxu0 }
 0x1ed   : > { %v2868_v56 = vadd.f32 %v2867_v48, %v2837_v32  ;;  %2772 = vst [vmem:[%s4897_s29 + $0x50] sm:$0xff] %v2577_v34  ;;  %v2800_v49 = vadd.f32 %v2799_v38, %v2564_v60  ;;  %v2580_v29 = vadd.f32 %v3815_v0, %v4867_v30  ;;  %v3732_v3 = vpop.f32.mrb[123].mxu1  ;;  %v2571_v37 = vpop.f32.mrb[123].mxu0  ;;  %v2841_v51 = vmul.f32 %v2577_v34, %v2577_v34 }
 0x1ee   : > { %2770 = vst [vmem:[%s4897_s29 + $0x40] sm:$0xff] %v2569_v46  ;;  %v2839_v59 = vmul.f32 %v2569_v46, %v2569_v46  ;;  %v3733_v17 = vadd.f32 %v3732_v3, %v3731_v15  ;;  %v2572_v63 = vadd.f32 %v2571_v37, %v4855_v8  ;;  %v4934_v13 = vadd.f32 %v3730_v47, %v4822_v10 }
 0x1ef   : > { %v2801_v55 = vadd.f32 %v2800_v49, %v2569_v46  ;;  %v2869_v12 = vadd.f32 %v2868_v56, %v2838_v35  ;;  %2773 = vst [vmem:[%s4897_s29 + $0x58] sm:$0xff] %v2580_v29  ;;  %v2842_v33 = vmul.f32 %v2580_v29, %v2580_v29 }
 0x1f0   : > { %2771 = vst [vmem:[%s4897_s29 + $0x48] sm:$0xff] %v2572_v63  ;;  %v2840_v16 = vmul.f32 %v2572_v63, %v2572_v63  ;;  %v4939_v5 = vadd.f32 %v3733_v17, %v4828_v44 }
 0x1f1   : > { %v2870_v6 = vadd.f32 %v2869_v12, %v2839_v59  ;;  %v2802_v30 = vadd.f32 %v2801_v55, %v2572_v63 }
 0x1f2   : > { %v3734_v7 = vpop.f32.mrb[124].mxu1  ;;  %v3818_v62 = vpop.f32.mrb[124].mxu0 }
 0x1f3   : > { %v2803_v23 = vadd.f32 %v2802_v30, %v2577_v34  ;;  %v2871_v8 = vadd.f32 %v2870_v6, %v2840_v16  ;;  %v2593_v10 = vadd.f32 %v3818_v62, %v4885_v22  ;;  %v3735_v60 = vpop.f32.mrb[125].mxu1  ;;  %v2584_v18 = vpop.f32.mrb[125].mxu0 }
 0x1f4   : > { %v3736_v26 = vadd.f32 %v3735_v60, %v3734_v7  ;;  %v2585_v58 = vadd.f32 %v2584_v18, %v4873_v39  ;;  %v3737_v52 = vpop.f32.mrb[126].mxu1  ;;  %v3819_v44 = vpop.f32.mrb[126].mxu0 }
 0x1f5   : > { %v2872_v36 = vadd.f32 %v2871_v8, %v2841_v51  ;;  %2776 = vst [vmem:[%s4897_s29 + $0x70] sm:$0xff] %v2593_v10  ;;  %v2804_v57 = vadd.f32 %v2803_v23, %v2580_v29  ;;  %v2596_v11 = vadd.f32 %v3819_v44, %v4892_v14  ;;  %v3738_v31 = vpop.f32.mrb[127].mxu1  ;;  %v2587_v9 = vpop.f32.mrb[127].mxu0  ;;  %v2845_v46 = vmul.f32 %v2593_v10, %v2593_v10 }
 0x1f6   : > { %2774 = vst [vmem:[%s4897_s29 + $0x60] sm:$0xff] %v2585_v58  ;;  %v2843_v21 = vmul.f32 %v2585_v58, %v2585_v58  ;;  %v3739_v22 = vadd.f32 %v3738_v31, %v3737_v52  ;;  %v2588_v61 = vadd.f32 %v2587_v9, %v4879_v50  ;;  %v2464_v32 = vadd.f32 %v3736_v26, %v4834_v40 }
 0x1f7   : > { %v2805_v39 = vadd.f32 %v2804_v57, %v2585_v58  ;;  %v2873_v38 = vadd.f32 %v2872_v36, %v2842_v33  ;;  %2777 = vst [vmem:[%s4897_s29 + $0x78] sm:$0xff] %v2596_v11 }
 0x1f8   : > { %2775 = vst [vmem:[%s4897_s29 + $0x68] sm:$0xff] %v2588_v61  ;;  %v2844_v48 = vmul.f32 %v2588_v61, %v2588_v61  ;;  %v2467_v34 = vadd.f32 %v3739_v22, %v4840_v20  ;;  %v2846_v20 = vmul.f32 %v2596_v11, %v2596_v11 }
 0x1f9   : > { %v2874_v45 = vadd.f32 %v2873_v38, %v2843_v21  ;;  %v2806_v42 = vadd.f32 %v2805_v39, %v2588_v61 }
 0x1fa   : > { %v3740_v14 = vpop.f32.mrb[128].mxu1  ;;  %v3822_v47 = vpop.f32.mrb[128].mxu0 }
 0x1fb   : > { %v2807_v15 = vadd.f32 %v2806_v42, %v2593_v10  ;;  %v2875_v0 = vadd.f32 %v2874_v45, %v2844_v48  ;;  %v2609_v50 = vadd.f32 %v3822_v47, %v4921_v25  ;;  %v3741_v35 = vpop.f32.mrb[129].mxu1  ;;  %v2600_v40 = vpop.f32.mrb[129].mxu0 }
 0x1fc   : > { %v3742_v56 = vadd.f32 %v3741_v35, %v3740_v14  ;;  %v2601_v49 = vadd.f32 %v2600_v40, %v4906_v28  ;;  %v3743_v29 = vpop.f32.mrb[130].mxu1  ;;  %v3823_v3 = vpop.f32.mrb[130].mxu0 }
 0x1fd   : > { %v2876_v37 = vadd.f32 %v2875_v0, %v2845_v46  ;;  %2780 = vst [vmem:[%s4897_s29 + $0x90] sm:$0xff] %v2609_v50  ;;  %v2808_v59 = vadd.f32 %v2807_v15, %v2596_v11  ;;  %v2612_v17 = vadd.f32 %v3823_v3, %v4924_v41  ;;  %v3744_v63 = vpop.f32.mrb[131].mxu1  ;;  %v2603_v55 = vpop.f32.mrb[131].mxu0  ;;  %v2849_v10 = vmul.f32 %v2609_v50, %v2609_v50 }
 0x1fe   : > { %2778 = vst [vmem:[%s4897_s29 + $0x80] sm:$0xff] %v2601_v49  ;;  %v2847_v12 = vmul.f32 %v2601_v49, %v2601_v49  ;;  %v3745_v25 = vadd.f32 %v3744_v63, %v3743_v29  ;;  %v2604_v16 = vadd.f32 %v2603_v55, %v4911_v53  ;;  %v2472_v6 = vadd.f32 %v3742_v56, %v4846_v2 }
 0x1ff   : > { %v2809_v28 = vadd.f32 %v2808_v59, %v2601_v49  ;;  %v2877_v30 = vadd.f32 %v2876_v37, %v2846_v20  ;;  %2781 = vst [vmem:[%s4897_s29 + $0x98] sm:$0xff] %v2612_v17 }
 0x200   : > { %2779 = vst [vmem:[%s4897_s29 + $0x88] sm:$0xff] %v2604_v16  ;;  %v2848_v7 = vmul.f32 %v2604_v16, %v2604_v16  ;;  %v2475_v62 = vadd.f32 %v3745_v25, %v4852_v19  ;;  %v2850_v19 = vmul.f32 %v2612_v17, %v2612_v17 }
 0x201   : > { %v2878_v51 = vadd.f32 %v2877_v30, %v2847_v12  ;;  %v2810_v23 = vadd.f32 %v2809_v28, %v2604_v16 }
 0x202   : > { %v3746_v41 = vpop.f32.mrb[132].mxu1  ;;  %v3826_v8 = vpop.f32.mrb[132].mxu0 }
 0x203   : > { %v2811_v60 = vadd.f32 %v2810_v23, %v2609_v50  ;;  %v2879_v18 = vadd.f32 %v2878_v51, %v2848_v7  ;;  %v2625_v26 = vadd.f32 %v3826_v8, %v2464_v32  ;;  %v3747_v53 = vpop.f32.mrb[133].mxu1  ;;  %v2616_v58 = vpop.f32.mrb[133].mxu0 }
 0x204   : > { %v3748_v2 = vadd.f32 %v3747_v53, %v3746_v41  ;;  %v2617_v52 = vadd.f32 %v2616_v58, %v4934_v13  ;;  %v3749_v44 = vpop.f32.mrb[134].mxu1  ;;  %v3827_v33 = vpop.f32.mrb[134].mxu0 }
 0x205   : > { %v2880_v36 = vadd.f32 %v2879_v18, %v2849_v10  ;;  %2784 = vst [vmem:[%s4897_s29 + $0xb0] sm:$0xff] %v2625_v26  ;;  %v2812_v57 = vadd.f32 %v2811_v60, %v2612_v17  ;;  %v2628_v11 = vadd.f32 %v3827_v33, %v2467_v34  ;;  %v3750_v31 = vpop.f32.mrb[135].mxu1  ;;  %v2619_v9 = vpop.f32.mrb[135].mxu0  ;;  %v2853_v47 = vmul.f32 %v2625_v26, %v2625_v26 }
 0x206   : > { %2782 = vst [vmem:[%s4897_s29 + $0xa0] sm:$0xff] %v2617_v52  ;;  %v2851_v21 = vmul.f32 %v2617_v52, %v2617_v52  ;;  %v3751_v22 = vadd.f32 %v3750_v31, %v3749_v44  ;;  %v2620_v61 = vadd.f32 %v2619_v9, %v4939_v5  ;;  %v2480_v32 = vadd.f32 %v3748_v2, %v4858_v27 }
 0x207   : > { %v2813_v39 = vadd.f32 %v2812_v57, %v2617_v52  ;;  %v2881_v13 = vadd.f32 %v2880_v36, %v2850_v19  ;;  %2785 = vst [vmem:[%s4897_s29 + $0xb8] sm:$0xff] %v2628_v11  ;;  %v2854_v49 = vmul.f32 %v2628_v11, %v2628_v11 }
 0x208   : > { %2783 = vst [vmem:[%s4897_s29 + $0xa8] sm:$0xff] %v2620_v61  ;;  %v2852_v38 = vmul.f32 %v2620_v61, %v2620_v61  ;;  %v2483_v48 = vadd.f32 %v3751_v22, %v4864_v43 }
 0x209   : > { %v2882_v45 = vadd.f32 %v2881_v13, %v2851_v21  ;;  %v2814_v42 = vadd.f32 %v2813_v39, %v2620_v61 }
 0x20a   : > { %v3752_v34 = vpop.f32.mrb[136].mxu1  ;;  %v3830_v14 = vpop.f32.mrb[136].mxu0 }
 0x20b   : > { %v2815_v46 = vadd.f32 %v2814_v42, %v2625_v26  ;;  %v2883_v15 = vadd.f32 %v2882_v45, %v2852_v38  ;;  %v2641_v0 = vadd.f32 %v3830_v14, %v2480_v32  ;;  %v3753_v5 = vpop.f32.mrb[137].mxu1  ;;  %v2632_v50 = vpop.f32.mrb[137].mxu0 }
 0x20c   : > { %v3754_v27 = vadd.f32 %v3753_v5, %v3752_v34  ;;  %v2633_v35 = vadd.f32 %v2632_v50, %v2472_v6  ;;  %v3755_v40 = vpop.f32.mrb[138].mxu1  ;;  %v3831_v56 = vpop.f32.mrb[138].mxu0 }
 0x20d   : > { %v2884_v43 = vadd.f32 %v2883_v15, %v2853_v47  ;;  %2788 = vst [vmem:[%s4897_s29 + $0xd0] sm:$0xff] %v2641_v0  ;;  %v2816_v29 = vadd.f32 %v2815_v46, %v2628_v11  ;;  %v2644_v3 = vadd.f32 %v3831_v56, %v2483_v48  ;;  %v3756_v20 = vpop.f32.mrb[139].mxu1  ;;  %v2635_v37 = vpop.f32.mrb[139].mxu0  ;;  %v2857_v23 = vmul.f32 %v2641_v0, %v2641_v0 }
 0x20e   : > { %2786 = vst [vmem:[%s4897_s29 + $0xc0] sm:$0xff] %v2633_v35  ;;  %v2855_v59 = vmul.f32 %v2633_v35, %v2633_v35  ;;  %v3757_v17 = vadd.f32 %v3756_v20, %v3755_v40  ;;  %v2636_v63 = vadd.f32 %v2635_v37, %v2475_v62  ;;  %v2488_v55 = vadd.f32 %v3754_v27, %v4870_v54 }
 0x20f   : > { %v2817_v12 = vadd.f32 %v2816_v29, %v2633_v35  ;;  %v2885_v25 = vadd.f32 %v2884_v43, %v2854_v49  ;;  %2789 = vst [vmem:[%s4897_s29 + $0xd8] sm:$0xff] %v2644_v3  ;;  %v2858_v53 = vmul.f32 %v2644_v3, %v2644_v3 }
 0x210   : > { %2787 = vst [vmem:[%s4897_s29 + $0xc8] sm:$0xff] %v2636_v63  ;;  %v2856_v16 = vmul.f32 %v2636_v63, %v2636_v63  ;;  %v2491_v6 = vadd.f32 %v3757_v17, %v4876_v1 }
 0x211   : > { %v2886_v28 = vadd.f32 %v2885_v25, %v2855_v59  ;;  %v2818_v30 = vadd.f32 %v2817_v12, %v2636_v63 }
 0x212   : > { %v3758_v7 = vpop.f32.mrb[140].mxu1  ;;  %v3834_v51 = vpop.f32.mrb[140].mxu0 }
 0x213   : > { %v2819_v41 = vadd.f32 %v2818_v30, %v2641_v0  ;;  %v2887_v8 = vadd.f32 %v2886_v28, %v2856_v16  ;;  %v3759_v10 = vpop.f32.mrb[141].mxu1  ;;  %v2648_v60 = vpop.f32.mrb[141].mxu0 }
 0x214   : > { %v3760_v62 = vadd.f32 %v3759_v10, %v3758_v7  ;;  %v2649_v18 = vadd.f32 %v2648_v60, %v2488_v55  ;;  %v3761_v54 = vpop.f32.mrb[142].mxu1  ;;  %v3835_v26 = vpop.f32.mrb[142].mxu0 }
 0x215   : > { %v2888_v58 = vadd.f32 %v2887_v8, %v2857_v23  ;;  %v2820_v2 = vadd.f32 %v2819_v41, %v2644_v3  ;;  %v3762_v1 = vpop.f32.mrb[143].mxu1  ;;  %v2651_v52 = vpop.f32.mrb[143].mxu0 }
 0x216   : > { %v2496_v44 = vadd.f32 %v3760_v62, %v4882_v4  ;;  %2790 = vst [vmem:[%s4897_s29 + $0xe0] sm:$0xff] %v2649_v18  ;;  %v2859_v33 = vmul.f32 %v2649_v18, %v2649_v18  ;;  %v3763_v19 = vadd.f32 %v3762_v1, %v3761_v54  ;;  %v2652_v36 = vadd.f32 %v2651_v52, %v2491_v6 }
 0x217   : > { %v2821_v57 = vadd.f32 %v2820_v2, %v2649_v18  ;;  %v2889_v11 = vadd.f32 %v2888_v58, %v2858_v53 }
 0x218   : > { %v2657_v31 = vadd.f32 %v3834_v51, %v2496_v44  ;;  %v2499_v9 = vadd.f32 %v3763_v19, %v4889_v24  ;;  %2791 = vst [vmem:[%s4897_s29 + $0xe8] sm:$0xff] %v2652_v36  ;;  %v2860_v21 = vmul.f32 %v2652_v36, %v2652_v36 }
 0x219   : > { %v2890_v22 = vadd.f32 %v2889_v11, %v2859_v33  ;;  %v2822_v61 = vadd.f32 %v2821_v57, %v2652_v36 }
 0x21a   : > { %2792 = vst [vmem:[%s4897_s29 + $0xf0] sm:$0xff] %v2657_v31  ;;  %v2861_v32 = vmul.f32 %v2657_v31, %v2657_v31  ;;  %v2660_v39 = vadd.f32 %v3835_v26, %v2499_v9 }
 0x21b   : > { %v2823_v4 = vadd.f32 %v2822_v61, %v2657_v31  ;;  %v2891_v13 = vadd.f32 %v2890_v22, %v2860_v21 }
 0x21c   : > { %2793 = vst [vmem:[%s4897_s29 + $0xf8] sm:$0xff] %v2660_v39  ;;  %v2862_v38 = vmul.f32 %v2660_v39, %v2660_v39 }
 0x21d   : > { %v2824_v48 = vadd.f32 %v2823_v4, %v2660_v39  ;;  %v2892_v45 = vadd.f32 %v2891_v13, %v2861_v32 }
 0x21f   : > { %v2825_v42 = vrot.slane %v2824_v48, 4  ;;  %v2893_v34 = vadd.f32 %v2892_v45, %v2862_v38 }
 0x221   : > { %v2826_v14 = vadd.f32 %v2825_v42, %v2824_v48  ;;  %v2894_v24 = vrot.slane %v2893_v34, 4 }
 0x223   : > { %v2827_v47 = vrot.slane %v2826_v14, 2  ;;  %v2895_v46 = vadd.f32 %v2894_v24, %v2893_v34 }
 0x225   : > { %v2828_v15 = vadd.f32 %v2827_v47, %v2826_v14  ;;  %v2896_v0 = vrot.slane %v2895_v46, 2 }
 0x227   : > { %v2829_v5 = vrot.slane %v2828_v15, 1  ;;  %v2897_v50 = vadd.f32 %v2896_v0, %v2895_v46 }
 0x229   : > { %v2830_v27 = vadd.f32 %v2829_v5, %v2828_v15  ;;  %v2898_v35 = vrot.slane %v2897_v50, 1 }
 0x22b   : > { %v2899_v40 = vadd.f32 %v2898_v35, %v2897_v50  ;;  %2900 = vst [vmem:[%s309_s6] sm:$0xff] %v2830_v27 }
 0x22d   : > { %2901 = vst [vmem:[%s316_s9] sm:$0xff] %v2899_v40 }
 0x22e PF: > { %s15_s17 = sadd.s32 1, %s4179_s17   ;;  %s5003_s15 = smov %s4175_s16 }
 0x22f   : > { %p12_p6 = scmp.ge.s32.totalorder %s15_s17, 4   ;;  %s5004_s16 = smov %s5006_s18 }
 0x231   :  { %14 = sbr.rel (!%p12_p6) target bundleno = 2 (0x2), region = 93 }

</bundles_post_ra>
